<compile_context>
chip_gen: v7x
topology: tpu7x:2x2x1
jax: 0.10.0
libtpu: 0.0.40
codegen_flags: <defaults>
</compile_context>

<pallas_src>
import jax
import jax.numpy as jnp
from jax.experimental import pallas as pl
from jax.experimental.pallas import tpu as pltpu


_EPS = 1e-5          # nn.InstanceNorm3d default
_NEG_SLOPE = 0.01    # nn.LeakyReLU() default


def _make_fused_kernel(D, H, W, c_in, c_hidden, c_out, EXT, SP, SPE, K1, K2):
    """Fused conv->IN->LReLU->conv->IN->LReLU kernel (one batch item per step)."""
    Dp, Hp, Wp = D + 2, H + 2, W + 2
    INV_COUNT = 1.0 / float(D * H * W)   # interior positions per (n, c)

    # Flat offsets of the 27 taps in the padded-flat layout, k = kd*9 + kh*3 + kw.
    tap_starts = []
    for kd in range(3):
        for kh in range(3):
            for kw in range(3):
                tap_starts.append(EXT + (kd - 1) * Hp * Wp + (kh - 1) * Wp + (kw - 1))

    def inorm_lrelu(acc, mask):
        # InstanceNorm3d(affine=False, eps=1e-5, biased var) + LeakyReLU(0.01).
        # Single-pass masked stats over exactly the D*H*W interior positions;
        # the trailing *mask restores the zero halo so the result doubles as
        # the zero-padded input of the next conv.
        masked = acc * mask
        s1 = jnp.sum(masked, axis=-1, keepdims=True)
        s2 = jnp.sum(masked * masked, axis=-1, keepdims=True)
        mean = s1 * INV_COUNT
        var = jnp.maximum(s2 * INV_COUNT - mean * mean, 0.0)
        y = (acc - mean) * jax.lax.rsqrt(var + _EPS)
        y = jnp.where(y >= 0, y, _NEG_SLOPE * y)
        return y * mask

    def kernel(x_ref, w1_ref, w2_ref, mask_ref, o_ref, stage_ref, h_ref):
        # x_ref    : [c_in, SPE]       bf16  extended padded input (one batch item)
        # w1_ref   : [c_hidden, K1]    bf16  K-fused weight slab, K1 = 27*c_in
        # w2_ref   : [c_out, K2]       bf16  K-fused weight slab, K2 = 27*c_hidden
        # mask_ref : [1, SP]           f32   1.0 at interior positions, else 0.0
        # o_ref    : [c_out, SP]       f32   padded-flat output (interior valid)
        # stage_ref: [max(K1,K2), SP]  bf16  scratch, reused by both convs
        # h_ref    : [c_hidden, SPE]   bf16  scratch, extended hidden activation
        mask = mask_ref[...]

        # ---- conv1: gather 27 taps into one slab, single MXU matmul ----
        for k, s in enumerate(tap_starts):
            stage_ref[k * c_in:(k + 1) * c_in, :] = x_ref[:, s:s + SP]
        acc1 = jnp.dot(w1_ref[...], stage_ref[:K1, :],
                       preferred_element_type=jnp.float32)       # [c_hidden, SP]
        hid = inorm_lrelu(acc1, mask)

        # Zero only the two EXT halos (tiny) — interior is fully overwritten.
        halo_zeros = jnp.zeros((c_hidden, EXT), h_ref.dtype)
        h_ref[:, :EXT] = halo_zeros
        h_ref[:, EXT + SP:] = halo_zeros
        h_ref[:, EXT:EXT + SP] = hid.astype(h_ref.dtype)

        # ---- conv2: same tap-fused matmul on the hidden activation ----
        for k, s in enumerate(tap_starts):
            stage_ref[k * c_hidden:(k + 1) * c_hidden, :] = h_ref[:, s:s + SP]
        acc2 = jnp.dot(w2_ref[...], stage_ref[:K2, :],
                       preferred_element_type=jnp.float32)       # [c_out, SP]
        o_ref[...] = inorm_lrelu(acc2, mask).astype(o_ref.dtype)

    return kernel


def conv_inorm_conv_forward(params, x):
    """x: [N, C_in, D, H, W] float32 (NCDHW), matching the PyTorch module."""
    assert x.ndim == 5
    w1 = params["conv1_w"]     # [C_hidden, C_in, 3, 3, 3], bias=False
    w2 = params["conv2_w"]     # [C_out, C_hidden, 3, 3, 3], bias=False
    N, c_in, D, H, W = x.shape
    c_hidden, c_out = w1.shape[0], w2.shape[0]
    assert w1.shape == (c_hidden, c_in, 3, 3, 3)
    assert w2.shape == (c_out, c_hidden, 3, 3, 3)

    Dp, Hp, Wp = D + 2, H + 2, W + 2
    SP = Dp * Hp * Wp                                  # padded flat spatial size
    halo = Hp * Wp + Wp + 1                            # max |flat offset| of a tap
    EXT = ((halo + 127) // 128) * 128                  # lane-aligned extension
    SPE = SP + 2 * EXT
    K1, K2 = 27 * c_in, 27 * c_hidden
    K_MAX = max(K1, K2)

    # Cast to bf16 BEFORE padding (halves both pad passes), pad spatially once,
    # flatten, and extend both ends so every 3x3x3 tap is a contiguous
    # lane-slice of length SP.
    # TODO(synk): at large volumes, pass the unpadded input via memory_space=pl.ANY
    # and build the padded/extended slab inside the kernel to drop these passes.
    x_bf = x.astype(jnp.bfloat16)
    xp = jnp.pad(x_bf, ((0, 0), (0, 0), (1, 1), (1, 1), (1, 1)))
    x_ext = jnp.pad(xp.reshape(N, c_in, SP), ((0, 0), (0, 0), (EXT, EXT)))

    # K-fused weight slabs: column index = k*C + c, with k = kd*9 + kh*3 + kw.
    w1_slab = jnp.transpose(w1, (0, 2, 3, 4, 1)).reshape(c_hidden, K1)
    w2_slab = jnp.transpose(w2, (0, 2, 3, 4, 1)).reshape(c_out, K2)
    w1_slab = w1_slab.astype(jnp.bfloat16)
    w2_slab = w2_slab.astype(jnp.bfloat16)

    # Interior (non-padding) mask over the padded flat spatial axis.
    dm = (jnp.arange(Dp) >= 1) & (jnp.arange(Dp) <= D)
    hm = (jnp.arange(Hp) >= 1) & (jnp.arange(Hp) <= H)
    wm = (jnp.arange(Wp) >= 1) & (jnp.arange(Wp) <= W)
    mask = (dm[:, None, None] & hm[None, :, None] & wm[None, None, :])
    mask = mask.reshape(1, SP).astype(jnp.float32)

    kernel = _make_fused_kernel(D, H, W, c_in, c_hidden, c_out,
                                EXT, SP, SPE, K1, K2)

    cost = pl.CostEstimate(
        flops=2 * (K1 * c_hidden + K2 * c_out) * SP * N,
        transcendentals=N * (c_hidden + c_out),
        bytes_accessed=(N * c_in * SPE * 2 + N * c_out * SP * 4
                        + (K1 * c_hidden + K2 * c_out) * 2 + SP * 4),
    )

    out_flat = pl.pallas_call(
        kernel,
        out_shape=jax.ShapeDtypeStruct((N, c_out, SP), jnp.float32),
        grid=(N,),
        in_specs=[
            pl.BlockSpec((pl.Squeezed(), c_in, SPE), lambda n: (n, 0, 0)),  # act
            pl.BlockSpec((c_hidden, K1), lambda n: (0, 0)),                 # w1
            pl.BlockSpec((c_out, K2), lambda n: (0, 0)),                    # w2
            pl.BlockSpec((1, SP), lambda n: (0, 0)),                        # mask
        ],
        out_specs=pl.BlockSpec((pl.Squeezed(), c_out, SP), lambda n: (n, 0, 0)),
        scratch_shapes=[
            pltpu.VMEM((K_MAX, SP), jnp.bfloat16),     # tap staging slab (shared)
            pltpu.VMEM((c_hidden, SPE), jnp.bfloat16)  # extended hidden activation
        ],
        compiler_params=pltpu.CompilerParams(
            dimension_semantics=("parallel",),
            # Toy size uses <2 MiB; raise this when scaling channels/volume.
            vmem_limit_bytes=32 * 1024 * 1024),
        cost_estimate=cost,
    )(x_ext, w1_slab, w2_slab, mask)

    # Channel-first layout: extracting the valid interior is a reshape + static
    # slice (no transposes).
    # TODO(synk): fold this slice into the consumer (or emit the compact interior
    # directly once the flat-spatial axis is tiled inside the kernel).
    out = out_flat.reshape(N, c_out, Dp, Hp, Wp)[:, :, 1:1 + D, 1:1 + H, 1:1 + W]
    return out


# --------------------------- pure-JAX reference -----------------------------

def _reference_forward(params, x):
    def conv3d(v, w):
        return jax.lax.conv_general_dilated(
            v, w, window_strides=(1, 1, 1),
            padding=((1, 1), (1, 1), (1, 1)),
            dimension_numbers=("NCDHW", "OIDHW", "NCDHW"))

    def inorm_lrelu(v):
        mean = jnp.mean(v, axis=(2, 3, 4), keepdims=True)
        var = jnp.mean((v - mean) ** 2, axis=(2, 3, 4), keepdims=True)
        y = (v - mean) * jax.lax.rsqrt(var + _EPS)
        return jnp.where(y >= 0, y, _NEG_SLOPE * y)

    v = inorm_lrelu(conv3d(x, params["conv1_w"]))
    v = inorm_lrelu(conv3d(v, params["conv2_w"]))
    return v


if __name__ == "__main__":
    key = jax.random.PRNGKey(0)
    k1, k2, kx = jax.random.split(key, 3)

    in_channels, out_channels = 4, 8
    hidden_channels = out_channels                   # module default
    N, D, H, W = 2, 8, 8, 8                          # input: [2, 4, 8, 8, 8]

    params = {
        "conv1_w": 0.1 * jax.random.normal(
            k1, (hidden_channels, in_channels, 3, 3, 3), jnp.float32),
        "conv2_w": 0.1 * jax.random.normal(
            k2, (out_channels, hidden_channels, 3, 3, 3), jnp.float32),
    }
    x = jax.random.normal(kx, (N, in_channels, D, H, W), jnp.float32)

    y = jax.jit(conv_inorm_conv_forward)(params, x)
    y = jax.block_until_ready(y)

    expected_shape = (N, out_channels, D, H, W)
    assert y.shape == expected_shape, (y.shape, expected_shape)
    assert bool(jnp.all(jnp.isfinite(y)))

    # Check vs an XLA reference (kernel uses bf16 MXU operands, f32 accum).
    y_ref = _reference_forward(params, x)
    err = float(jnp.max(jnp.abs(y - y_ref)))
    assert err < 0.1, err

    print("KERNEL_OK")
</pallas_src>

<mosaic_0001>
module attributes {stable_mosaic.version = 11 : i64} {
  func.func @kernel(%arg0: i32, %arg1: memref<1x4x1256xbf16, #tpu.memory_space<vmem>>, %arg2: memref<8x108xbf16, #tpu.memory_space<vmem>>, %arg3: memref<8x216xbf16, #tpu.memory_space<vmem>>, %arg4: memref<1x1000xf32, #tpu.memory_space<vmem>>, %arg5: memref<1x8x1000xf32, #tpu.memory_space<vmem>>, %arg6: memref<216x1000xbf16, #tpu.memory_space<vmem>>, %arg7: memref<8x1256xbf16, #tpu.memory_space<vmem>>) attributes {dimension_semantics = [#tpu.dimension_semantics<parallel>], iteration_bounds = array<i64: 2>, scalar_prefetch = 0 : i64, scratch_operands = 2 : i64, tpu.core_type = #tpu.core_type<tc>, window_params = [{transform_indices = @transform_0, window_bounds = array<i64: 1, 4, 1256>}, {pipeline_mode = #tpu.pipeline_mode<synchronous>, transform_indices = @transform_1, window_bounds = array<i64: 8, 108>}, {pipeline_mode = #tpu.pipeline_mode<synchronous>, transform_indices = @transform_2, window_bounds = array<i64: 8, 216>}, {pipeline_mode = #tpu.pipeline_mode<synchronous>, transform_indices = @transform_3, window_bounds = array<i64: 1, 1000>}, {transform_indices = @transform_4, window_bounds = array<i64: 1, 8, 1000>}]} {
    %c0 = arith.constant 0 : index
    %c0_0 = arith.constant 0 : index
    %0 = vector.load %arg4[%c0, %c0_0] : memref<1x1000xf32, #tpu.memory_space<vmem>>, vector<1x1000xf32>
    %c0_1 = arith.constant 0 : index
    %c0_2 = arith.constant 0 : index
    %c17 = arith.constant 17 : index
    %1 = vector.load %arg1[%c0_1, %c0_2, %c17] : memref<1x4x1256xbf16, #tpu.memory_space<vmem>>, vector<1x4x1000xbf16>
    %2 = vector.shape_cast %1 : vector<1x4x1000xbf16> to vector<4x1000xbf16>
    %c0_3 = arith.constant 0 : index
    %c0_4 = arith.constant 0 : index
    %3 = vector.load %arg6[%c0_3, %c0_4] : memref<216x1000xbf16, #tpu.memory_space<vmem>>, vector<4x1000xbf16>
    tpu.vector_store %arg6[%c0_3, %c0_4], %2 {strides = array<i32>} : memref<216x1000xbf16, #tpu.memory_space<vmem>>, vector<4x1000xbf16>,
    %c0_5 = arith.constant 0 : index
    %c0_6 = arith.constant 0 : index
    %c18 = arith.constant 18 : index
    %4 = vector.load %arg1[%c0_5, %c0_6, %c18] : memref<1x4x1256xbf16, #tpu.memory_space<vmem>>, vector<1x4x1000xbf16>
    %5 = vector.shape_cast %4 : vector<1x4x1000xbf16> to vector<4x1000xbf16>
    %c4 = arith.constant 4 : index
    %c0_7 = arith.constant 0 : index
    %6 = vector.load %arg6[%c4, %c0_7] : memref<216x1000xbf16, #tpu.memory_space<vmem>>, vector<4x1000xbf16>
    tpu.vector_store %arg6[%c4, %c0_7], %5 {strides = array<i32>} : memref<216x1000xbf16, #tpu.memory_space<vmem>>, vector<4x1000xbf16>,
    %c0_8 = arith.constant 0 : index
    %c0_9 = arith.constant 0 : index
    %c19 = arith.constant 19 : index
    %7 = vector.load %arg1[%c0_8, %c0_9, %c19] : memref<1x4x1256xbf16, #tpu.memory_space<vmem>>, vector<1x4x1000xbf16>
    %8 = vector.shape_cast %7 : vector<1x4x1000xbf16> to vector<4x1000xbf16>
    %c8 = arith.constant 8 : index
    %c0_10 = arith.constant 0 : index
    %9 = vector.load %arg6[%c8, %c0_10] : memref<216x1000xbf16, #tpu.memory_space<vmem>>, vector<4x1000xbf16>
    tpu.vector_store %arg6[%c8, %c0_10], %8 {strides = array<i32>} : memref<216x1000xbf16, #tpu.memory_space<vmem>>, vector<4x1000xbf16>,
    %c0_11 = arith.constant 0 : index
    %c0_12 = arith.constant 0 : index
    %c27 = arith.constant 27 : index
    %10 = vector.load %arg1[%c0_11, %c0_12, %c27] : memref<1x4x1256xbf16, #tpu.memory_space<vmem>>, vector<1x4x1000xbf16>
    %11 = vector.shape_cast %10 : vector<1x4x1000xbf16> to vector<4x1000xbf16>
    %c12 = arith.constant 12 : index
    %c0_13 = arith.constant 0 : index
    %12 = vector.load %arg6[%c12, %c0_13] : memref<216x1000xbf16, #tpu.memory_space<vmem>>, vector<4x1000xbf16>
    tpu.vector_store %arg6[%c12, %c0_13], %11 {strides = array<i32>} : memref<216x1000xbf16, #tpu.memory_space<vmem>>, vector<4x1000xbf16>,
    %c0_14 = arith.constant 0 : index
    %c0_15 = arith.constant 0 : index
    %c28 = arith.constant 28 : index
    %13 = vector.load %arg1[%c0_14, %c0_15, %c28] : memref<1x4x1256xbf16, #tpu.memory_space<vmem>>, vector<1x4x1000xbf16>
    %14 = vector.shape_cast %13 : vector<1x4x1000xbf16> to vector<4x1000xbf16>
    %c16 = arith.constant 16 : index
    %c0_16 = arith.constant 0 : index
    %15 = vector.load %arg6[%c16, %c0_16] : memref<216x1000xbf16, #tpu.memory_space<vmem>>, vector<4x1000xbf16>
    tpu.vector_store %arg6[%c16, %c0_16], %14 {strides = array<i32>} : memref<216x1000xbf16, #tpu.memory_space<vmem>>, vector<4x1000xbf16>,
    %c0_17 = arith.constant 0 : index
    %c0_18 = arith.constant 0 : index
    %c29 = arith.constant 29 : index
    %16 = vector.load %arg1[%c0_17, %c0_18, %c29] : memref<1x4x1256xbf16, #tpu.memory_space<vmem>>, vector<1x4x1000xbf16>
    %17 = vector.shape_cast %16 : vector<1x4x1000xbf16> to vector<4x1000xbf16>
    %c20 = arith.constant 20 : index
    %c0_19 = arith.constant 0 : index
    %18 = vector.load %arg6[%c20, %c0_19] : memref<216x1000xbf16, #tpu.memory_space<vmem>>, vector<4x1000xbf16>
    tpu.vector_store %arg6[%c20, %c0_19], %17 {strides = array<i32>} : memref<216x1000xbf16, #tpu.memory_space<vmem>>, vector<4x1000xbf16>,
    %c0_20 = arith.constant 0 : index
    %c0_21 = arith.constant 0 : index
    %c37 = arith.constant 37 : index
    %19 = vector.load %arg1[%c0_20, %c0_21, %c37] : memref<1x4x1256xbf16, #tpu.memory_space<vmem>>, vector<1x4x1000xbf16>
    %20 = vector.shape_cast %19 : vector<1x4x1000xbf16> to vector<4x1000xbf16>
    %c24 = arith.constant 24 : index
    %c0_22 = arith.constant 0 : index
    %21 = vector.load %arg6[%c24, %c0_22] : memref<216x1000xbf16, #tpu.memory_space<vmem>>, vector<4x1000xbf16>
    tpu.vector_store %arg6[%c24, %c0_22], %20 {strides = array<i32>} : memref<216x1000xbf16, #tpu.memory_space<vmem>>, vector<4x1000xbf16>,
    %c0_23 = arith.constant 0 : index
    %c0_24 = arith.constant 0 : index
    %c38 = arith.constant 38 : index
    %22 = vector.load %arg1[%c0_23, %c0_24, %c38] : memref<1x4x1256xbf16, #tpu.memory_space<vmem>>, vector<1x4x1000xbf16>
    %23 = vector.shape_cast %22 : vector<1x4x1000xbf16> to vector<4x1000xbf16>
    %c28_25 = arith.constant 28 : index
    %c0_26 = arith.constant 0 : index
    %24 = vector.load %arg6[%c28_25, %c0_26] : memref<216x1000xbf16, #tpu.memory_space<vmem>>, vector<4x1000xbf16>
    tpu.vector_store %arg6[%c28_25, %c0_26], %23 {strides = array<i32>} : memref<216x1000xbf16, #tpu.memory_space<vmem>>, vector<4x1000xbf16>,
    %c0_27 = arith.constant 0 : index
    %c0_28 = arith.constant 0 : index
    %c39 = arith.constant 39 : index
    %25 = vector.load %arg1[%c0_27, %c0_28, %c39] : memref<1x4x1256xbf16, #tpu.memory_space<vmem>>, vector<1x4x1000xbf16>
    %26 = vector.shape_cast %25 : vector<1x4x1000xbf16> to vector<4x1000xbf16>
    %c32 = arith.constant 32 : index
    %c0_29 = arith.constant 0 : index
    %27 = vector.load %arg6[%c32, %c0_29] : memref<216x1000xbf16, #tpu.memory_space<vmem>>, vector<4x1000xbf16>
    tpu.vector_store %arg6[%c32, %c0_29], %26 {strides = array<i32>} : memref<216x1000xbf16, #tpu.memory_space<vmem>>, vector<4x1000xbf16>,
    %c0_30 = arith.constant 0 : index
    %c0_31 = arith.constant 0 : index
    %c117 = arith.constant 117 : index
    %28 = vector.load %arg1[%c0_30, %c0_31, %c117] : memref<1x4x1256xbf16, #tpu.memory_space<vmem>>, vector<1x4x1000xbf16>
    %29 = vector.shape_cast %28 : vector<1x4x1000xbf16> to vector<4x1000xbf16>
    %c36 = arith.constant 36 : index
    %c0_32 = arith.constant 0 : index
    %30 = vector.load %arg6[%c36, %c0_32] : memref<216x1000xbf16, #tpu.memory_space<vmem>>, vector<4x1000xbf16>
    tpu.vector_store %arg6[%c36, %c0_32], %29 {strides = array<i32>} : memref<216x1000xbf16, #tpu.memory_space<vmem>>, vector<4x1000xbf16>,
    %c0_33 = arith.constant 0 : index
    %c0_34 = arith.constant 0 : index
    %c118 = arith.constant 118 : index
    %31 = vector.load %arg1[%c0_33, %c0_34, %c118] : memref<1x4x1256xbf16, #tpu.memory_space<vmem>>, vector<1x4x1000xbf16>
    %32 = vector.shape_cast %31 : vector<1x4x1000xbf16> to vector<4x1000xbf16>
    %c40 = arith.constant 40 : index
    %c0_35 = arith.constant 0 : index
    %33 = vector.load %arg6[%c40, %c0_35] : memref<216x1000xbf16, #tpu.memory_space<vmem>>, vector<4x1000xbf16>
    tpu.vector_store %arg6[%c40, %c0_35], %32 {strides = array<i32>} : memref<216x1000xbf16, #tpu.memory_space<vmem>>, vector<4x1000xbf16>,
    %c0_36 = arith.constant 0 : index
    %c0_37 = arith.constant 0 : index
    %c119 = arith.constant 119 : index
    %34 = vector.load %arg1[%c0_36, %c0_37, %c119] : memref<1x4x1256xbf16, #tpu.memory_space<vmem>>, vector<1x4x1000xbf16>
    %35 = vector.shape_cast %34 : vector<1x4x1000xbf16> to vector<4x1000xbf16>
    %c44 = arith.constant 44 : index
    %c0_38 = arith.constant 0 : index
    %36 = vector.load %arg6[%c44, %c0_38] : memref<216x1000xbf16, #tpu.memory_space<vmem>>, vector<4x1000xbf16>
    tpu.vector_store %arg6[%c44, %c0_38], %35 {strides = array<i32>} : memref<216x1000xbf16, #tpu.memory_space<vmem>>, vector<4x1000xbf16>,
    %c0_39 = arith.constant 0 : index
    %c0_40 = arith.constant 0 : index
    %c127 = arith.constant 127 : index
    %37 = vector.load %arg1[%c0_39, %c0_40, %c127] : memref<1x4x1256xbf16, #tpu.memory_space<vmem>>, vector<1x4x1000xbf16>
    %38 = vector.shape_cast %37 : vector<1x4x1000xbf16> to vector<4x1000xbf16>
    %c48 = arith.constant 48 : index
    %c0_41 = arith.constant 0 : index
    %39 = vector.load %arg6[%c48, %c0_41] : memref<216x1000xbf16, #tpu.memory_space<vmem>>, vector<4x1000xbf16>
    tpu.vector_store %arg6[%c48, %c0_41], %38 {strides = array<i32>} : memref<216x1000xbf16, #tpu.memory_space<vmem>>, vector<4x1000xbf16>,
    %c0_42 = arith.constant 0 : index
    %c0_43 = arith.constant 0 : index
    %c128 = arith.constant 128 : index
    %40 = vector.load %arg1[%c0_42, %c0_43, %c128] : memref<1x4x1256xbf16, #tpu.memory_space<vmem>>, vector<1x4x1000xbf16>
    %41 = vector.shape_cast %40 : vector<1x4x1000xbf16> to vector<4x1000xbf16>
    %c52 = arith.constant 52 : index
    %c0_44 = arith.constant 0 : index
    %42 = vector.load %arg6[%c52, %c0_44] : memref<216x1000xbf16, #tpu.memory_space<vmem>>, vector<4x1000xbf16>
    tpu.vector_store %arg6[%c52, %c0_44], %41 {strides = array<i32>} : memref<216x1000xbf16, #tpu.memory_space<vmem>>, vector<4x1000xbf16>,
    %c0_45 = arith.constant 0 : index
    %c0_46 = arith.constant 0 : index
    %c129 = arith.constant 129 : index
    %43 = vector.load %arg1[%c0_45, %c0_46, %c129] : memref<1x4x1256xbf16, #tpu.memory_space<vmem>>, vector<1x4x1000xbf16>
    %44 = vector.shape_cast %43 : vector<1x4x1000xbf16> to vector<4x1000xbf16>
    %c56 = arith.constant 56 : index
    %c0_47 = arith.constant 0 : index
    %45 = vector.load %arg6[%c56, %c0_47] : memref<216x1000xbf16, #tpu.memory_space<vmem>>, vector<4x1000xbf16>
    tpu.vector_store %arg6[%c56, %c0_47], %44 {strides = array<i32>} : memref<216x1000xbf16, #tpu.memory_space<vmem>>, vector<4x1000xbf16>,
    %c0_48 = arith.constant 0 : index
    %c0_49 = arith.constant 0 : index
    %c137 = arith.constant 137 : index
    %46 = vector.load %arg1[%c0_48, %c0_49, %c137] : memref<1x4x1256xbf16, #tpu.memory_space<vmem>>, vector<1x4x1000xbf16>
    %47 = vector.shape_cast %46 : vector<1x4x1000xbf16> to vector<4x1000xbf16>
    %c60 = arith.constant 60 : index
    %c0_50 = arith.constant 0 : index
    %48 = vector.load %arg6[%c60, %c0_50] : memref<216x1000xbf16, #tpu.memory_space<vmem>>, vector<4x1000xbf16>
    tpu.vector_store %arg6[%c60, %c0_50], %47 {strides = array<i32>} : memref<216x1000xbf16, #tpu.memory_space<vmem>>, vector<4x1000xbf16>,
    %c0_51 = arith.constant 0 : index
    %c0_52 = arith.constant 0 : index
    %c138 = arith.constant 138 : index
    %49 = vector.load %arg1[%c0_51, %c0_52, %c138] : memref<1x4x1256xbf16, #tpu.memory_space<vmem>>, vector<1x4x1000xbf16>
    %50 = vector.shape_cast %49 : vector<1x4x1000xbf16> to vector<4x1000xbf16>
    %c64 = arith.constant 64 : index
    %c0_53 = arith.constant 0 : index
    %51 = vector.load %arg6[%c64, %c0_53] : memref<216x1000xbf16, #tpu.memory_space<vmem>>, vector<4x1000xbf16>
    tpu.vector_store %arg6[%c64, %c0_53], %50 {strides = array<i32>} : memref<216x1000xbf16, #tpu.memory_space<vmem>>, vector<4x1000xbf16>,
    %c0_54 = arith.constant 0 : index
    %c0_55 = arith.constant 0 : index
    %c139 = arith.constant 139 : index
    %52 = vector.load %arg1[%c0_54, %c0_55, %c139] : memref<1x4x1256xbf16, #tpu.memory_space<vmem>>, vector<1x4x1000xbf16>
    %53 = vector.shape_cast %52 : vector<1x4x1000xbf16> to vector<4x1000xbf16>
    %c68 = arith.constant 68 : index
    %c0_56 = arith.constant 0 : index
    %54 = vector.load %arg6[%c68, %c0_56] : memref<216x1000xbf16, #tpu.memory_space<vmem>>, vector<4x1000xbf16>
    tpu.vector_store %arg6[%c68, %c0_56], %53 {strides = array<i32>} : memref<216x1000xbf16, #tpu.memory_space<vmem>>, vector<4x1000xbf16>,
    %c0_57 = arith.constant 0 : index
    %c0_58 = arith.constant 0 : index
    %c217 = arith.constant 217 : index
    %55 = vector.load %arg1[%c0_57, %c0_58, %c217] : memref<1x4x1256xbf16, #tpu.memory_space<vmem>>, vector<1x4x1000xbf16>
    %56 = vector.shape_cast %55 : vector<1x4x1000xbf16> to vector<4x1000xbf16>
    %c72 = arith.constant 72 : index
    %c0_59 = arith.constant 0 : index
    %57 = vector.load %arg6[%c72, %c0_59] : memref<216x1000xbf16, #tpu.memory_space<vmem>>, vector<4x1000xbf16>
    tpu.vector_store %arg6[%c72, %c0_59], %56 {strides = array<i32>} : memref<216x1000xbf16, #tpu.memory_space<vmem>>, vector<4x1000xbf16>,
    %c0_60 = arith.constant 0 : index
    %c0_61 = arith.constant 0 : index
    %c218 = arith.constant 218 : index
    %58 = vector.load %arg1[%c0_60, %c0_61, %c218] : memref<1x4x1256xbf16, #tpu.memory_space<vmem>>, vector<1x4x1000xbf16>
    %59 = vector.shape_cast %58 : vector<1x4x1000xbf16> to vector<4x1000xbf16>
    %c76 = arith.constant 76 : index
    %c0_62 = arith.constant 0 : index
    %60 = vector.load %arg6[%c76, %c0_62] : memref<216x1000xbf16, #tpu.memory_space<vmem>>, vector<4x1000xbf16>
    tpu.vector_store %arg6[%c76, %c0_62], %59 {strides = array<i32>} : memref<216x1000xbf16, #tpu.memory_space<vmem>>, vector<4x1000xbf16>,
    %c0_63 = arith.constant 0 : index
    %c0_64 = arith.constant 0 : index
    %c219 = arith.constant 219 : index
    %61 = vector.load %arg1[%c0_63, %c0_64, %c219] : memref<1x4x1256xbf16, #tpu.memory_space<vmem>>, vector<1x4x1000xbf16>
    %62 = vector.shape_cast %61 : vector<1x4x1000xbf16> to vector<4x1000xbf16>
    %c80 = arith.constant 80 : index
    %c0_65 = arith.constant 0 : index
    %63 = vector.load %arg6[%c80, %c0_65] : memref<216x1000xbf16, #tpu.memory_space<vmem>>, vector<4x1000xbf16>
    tpu.vector_store %arg6[%c80, %c0_65], %62 {strides = array<i32>} : memref<216x1000xbf16, #tpu.memory_space<vmem>>, vector<4x1000xbf16>,
    %c0_66 = arith.constant 0 : index
    %c0_67 = arith.constant 0 : index
    %c227 = arith.constant 227 : index
    %64 = vector.load %arg1[%c0_66, %c0_67, %c227] : memref<1x4x1256xbf16, #tpu.memory_space<vmem>>, vector<1x4x1000xbf16>
    %65 = vector.shape_cast %64 : vector<1x4x1000xbf16> to vector<4x1000xbf16>
    %c84 = arith.constant 84 : index
    %c0_68 = arith.constant 0 : index
    %66 = vector.load %arg6[%c84, %c0_68] : memref<216x1000xbf16, #tpu.memory_space<vmem>>, vector<4x1000xbf16>
    tpu.vector_store %arg6[%c84, %c0_68], %65 {strides = array<i32>} : memref<216x1000xbf16, #tpu.memory_space<vmem>>, vector<4x1000xbf16>,
    %c0_69 = arith.constant 0 : index
    %c0_70 = arith.constant 0 : index
    %c228 = arith.constant 228 : index
    %67 = vector.load %arg1[%c0_69, %c0_70, %c228] : memref<1x4x1256xbf16, #tpu.memory_space<vmem>>, vector<1x4x1000xbf16>
    %68 = vector.shape_cast %67 : vector<1x4x1000xbf16> to vector<4x1000xbf16>
    %c88 = arith.constant 88 : index
    %c0_71 = arith.constant 0 : index
    %69 = vector.load %arg6[%c88, %c0_71] : memref<216x1000xbf16, #tpu.memory_space<vmem>>, vector<4x1000xbf16>
    tpu.vector_store %arg6[%c88, %c0_71], %68 {strides = array<i32>} : memref<216x1000xbf16, #tpu.memory_space<vmem>>, vector<4x1000xbf16>,
    %c0_72 = arith.constant 0 : index
    %c0_73 = arith.constant 0 : index
    %c229 = arith.constant 229 : index
    %70 = vector.load %arg1[%c0_72, %c0_73, %c229] : memref<1x4x1256xbf16, #tpu.memory_space<vmem>>, vector<1x4x1000xbf16>
    %71 = vector.shape_cast %70 : vector<1x4x1000xbf16> to vector<4x1000xbf16>
    %c92 = arith.constant 92 : index
    %c0_74 = arith.constant 0 : index
    %72 = vector.load %arg6[%c92, %c0_74] : memref<216x1000xbf16, #tpu.memory_space<vmem>>, vector<4x1000xbf16>
    tpu.vector_store %arg6[%c92, %c0_74], %71 {strides = array<i32>} : memref<216x1000xbf16, #tpu.memory_space<vmem>>, vector<4x1000xbf16>,
    %c0_75 = arith.constant 0 : index
    %c0_76 = arith.constant 0 : index
    %c237 = arith.constant 237 : index
    %73 = vector.load %arg1[%c0_75, %c0_76, %c237] : memref<1x4x1256xbf16, #tpu.memory_space<vmem>>, vector<1x4x1000xbf16>
    %74 = vector.shape_cast %73 : vector<1x4x1000xbf16> to vector<4x1000xbf16>
    %c96 = arith.constant 96 : index
    %c0_77 = arith.constant 0 : index
    %75 = vector.load %arg6[%c96, %c0_77] : memref<216x1000xbf16, #tpu.memory_space<vmem>>, vector<4x1000xbf16>
    tpu.vector_store %arg6[%c96, %c0_77], %74 {strides = array<i32>} : memref<216x1000xbf16, #tpu.memory_space<vmem>>, vector<4x1000xbf16>,
    %c0_78 = arith.constant 0 : index
    %c0_79 = arith.constant 0 : index
    %c238 = arith.constant 238 : index
    %76 = vector.load %arg1[%c0_78, %c0_79, %c238] : memref<1x4x1256xbf16, #tpu.memory_space<vmem>>, vector<1x4x1000xbf16>
    %77 = vector.shape_cast %76 : vector<1x4x1000xbf16> to vector<4x1000xbf16>
    %c100 = arith.constant 100 : index
    %c0_80 = arith.constant 0 : index
    %78 = vector.load %arg6[%c100, %c0_80] : memref<216x1000xbf16, #tpu.memory_space<vmem>>, vector<4x1000xbf16>
    tpu.vector_store %arg6[%c100, %c0_80], %77 {strides = array<i32>} : memref<216x1000xbf16, #tpu.memory_space<vmem>>, vector<4x1000xbf16>,
    %c0_81 = arith.constant 0 : index
    %c0_82 = arith.constant 0 : index
    %c239 = arith.constant 239 : index
    %79 = vector.load %arg1[%c0_81, %c0_82, %c239] : memref<1x4x1256xbf16, #tpu.memory_space<vmem>>, vector<1x4x1000xbf16>
    %80 = vector.shape_cast %79 : vector<1x4x1000xbf16> to vector<4x1000xbf16>
    %c104 = arith.constant 104 : index
    %c0_83 = arith.constant 0 : index
    %81 = vector.load %arg6[%c104, %c0_83] : memref<216x1000xbf16, #tpu.memory_space<vmem>>, vector<4x1000xbf16>
    tpu.vector_store %arg6[%c104, %c0_83], %80 {strides = array<i32>} : memref<216x1000xbf16, #tpu.memory_space<vmem>>, vector<4x1000xbf16>,
    %c0_84 = arith.constant 0 : index
    %c0_85 = arith.constant 0 : index
    %82 = vector.load %arg2[%c0_84, %c0_85] : memref<8x108xbf16, #tpu.memory_space<vmem>>, vector<8x108xbf16>
    %c0_86 = arith.constant 0 : index
    %c0_87 = arith.constant 0 : index
    %83 = vector.load %arg6[%c0_86, %c0_87] : memref<216x1000xbf16, #tpu.memory_space<vmem>>, vector<108x1000xbf16>
    %cst = arith.constant dense<0.000000e+00> : vector<8x1000xf32>
    %84 = tpu.matmul %82, %83, %cst {dimension_numbers = #tpu.dot_dimension_numbers<[1], [0], [0], [1], [0, 0, 1, 1], [], []>} : vector<8x108xbf16>, vector<108x1000xbf16>, vector<8x1000xf32> -> vector<8x1000xf32>
    %85 = vector.broadcast %0 : vector<1x1000xf32> to vector<8x1000xf32>
    %86 = arith.mulf %84, %85 : vector<8x1000xf32>
    %cst_88 = arith.constant dense<0.000000e+00> : vector<8xf32>
    %87 = vector.multi_reduction <add>, %86, %cst_88 [1] : vector<8x1000xf32> to vector<8xf32>
    %88 = vector.shape_cast %87 : vector<8xf32> to vector<8x1xf32>
    %89 = arith.mulf %86, %86 : vector<8x1000xf32>
    %cst_89 = arith.constant dense<0.000000e+00> : vector<8xf32>
    %90 = vector.multi_reduction <add>, %89, %cst_89 [1] : vector<8x1000xf32> to vector<8xf32>
    %91 = vector.shape_cast %90 : vector<8xf32> to vector<8x1xf32>
    %cst_90 = arith.constant 0.001953125 : f32
    %92 = vector.broadcast %cst_90 : f32 to vector<8x1xf32>
    %93 = arith.mulf %88, %92 : vector<8x1xf32>
    %cst_91 = arith.constant 0.001953125 : f32
    %94 = vector.broadcast %cst_91 : f32 to vector<8x1xf32>
    %95 = arith.mulf %91, %94 : vector<8x1xf32>
    %96 = arith.mulf %93, %93 : vector<8x1xf32>
    %97 = arith.subf %95, %96 : vector<8x1xf32>
    %cst_92 = arith.constant 0.000000e+00 : f32
    %98 = vector.broadcast %cst_92 : f32 to vector<8x1xf32>
    %99 = arith.maximumf %97, %98 : vector<8x1xf32>
    %100 = vector.broadcast %93 : vector<8x1xf32> to vector<8x1000xf32>
    %101 = arith.subf %84, %100 : vector<8x1000xf32>
    %cst_93 = arith.constant 9.99999974E-6 : f32
    %102 = vector.broadcast %cst_93 : f32 to vector<8x1xf32>
    %103 = arith.addf %99, %102 : vector<8x1xf32>
    %104 = math.rsqrt %103 : vector<8x1xf32>
    %105 = vector.broadcast %104 : vector<8x1xf32> to vector<8x1000xf32>
    %106 = arith.mulf %101, %105 : vector<8x1000xf32>
    %cst_94 = arith.constant 0.000000e+00 : f32
    %107 = vector.broadcast %cst_94 : f32 to vector<8x1000xf32>
    %108 = arith.cmpf oge, %106, %107 : vector<8x1000xf32>
    %cst_95 = arith.constant 0.00999999977 : f32
    %109 = vector.broadcast %cst_95 : f32 to vector<8x1000xf32>
    %110 = arith.mulf %109, %106 : vector<8x1000xf32>
    %111 = arith.select %108, %106, %110 : vector<8x1000xi1>, vector<8x1000xf32>
    %112 = vector.broadcast %0 : vector<1x1000xf32> to vector<8x1000xf32>
    %113 = arith.mulf %111, %112 : vector<8x1000xf32>
    %cst_96 = arith.constant 0.000000e+00 : bf16
    %114 = vector.broadcast %cst_96 : bf16 to vector<8x128xbf16>
    %c0_97 = arith.constant 0 : index
    %c0_98 = arith.constant 0 : index
    %115 = vector.load %arg7[%c0_97, %c0_98] : memref<8x1256xbf16, #tpu.memory_space<vmem>>, vector<8x128xbf16>
    tpu.vector_store %arg7[%c0_97, %c0_98], %114 {strides = array<i32>} : memref<8x1256xbf16, #tpu.memory_space<vmem>>, vector<8x128xbf16>,
    %c0_99 = arith.constant 0 : index
    %c1128 = arith.constant 1128 : index
    %116 = vector.load %arg7[%c0_99, %c1128] : memref<8x1256xbf16, #tpu.memory_space<vmem>>, vector<8x128xbf16>
    tpu.vector_store %arg7[%c0_99, %c1128], %114 {strides = array<i32>} : memref<8x1256xbf16, #tpu.memory_space<vmem>>, vector<8x128xbf16>,
    %117 = arith.truncf %113 : vector<8x1000xf32> to vector<8x1000xbf16>
    %c0_100 = arith.constant 0 : index
    %c128_101 = arith.constant 128 : index
    %118 = vector.load %arg7[%c0_100, %c128_101] : memref<8x1256xbf16, #tpu.memory_space<vmem>>, vector<8x1000xbf16>
    tpu.vector_store %arg7[%c0_100, %c128_101], %117 {strides = array<i32>} : memref<8x1256xbf16, #tpu.memory_space<vmem>>, vector<8x1000xbf16>,
    %c0_102 = arith.constant 0 : index
    %c17_103 = arith.constant 17 : index
    %119 = vector.load %arg7[%c0_102, %c17_103] : memref<8x1256xbf16, #tpu.memory_space<vmem>>, vector<8x1000xbf16>
    %c0_104 = arith.constant 0 : index
    %c0_105 = arith.constant 0 : index
    %120 = vector.load %arg6[%c0_104, %c0_105] : memref<216x1000xbf16, #tpu.memory_space<vmem>>, vector<8x1000xbf16>
    tpu.vector_store %arg6[%c0_104, %c0_105], %119 {strides = array<i32>} : memref<216x1000xbf16, #tpu.memory_space<vmem>>, vector<8x1000xbf16>,
    %c0_106 = arith.constant 0 : index
    %c18_107 = arith.constant 18 : index
    %121 = vector.load %arg7[%c0_106, %c18_107] : memref<8x1256xbf16, #tpu.memory_space<vmem>>, vector<8x1000xbf16>
    %c8_108 = arith.constant 8 : index
    %c0_109 = arith.constant 0 : index
    %122 = vector.load %arg6[%c8_108, %c0_109] : memref<216x1000xbf16, #tpu.memory_space<vmem>>, vector<8x1000xbf16>
    tpu.vector_store %arg6[%c8_108, %c0_109], %121 {strides = array<i32>} : memref<216x1000xbf16, #tpu.memory_space<vmem>>, vector<8x1000xbf16>,
    %c0_110 = arith.constant 0 : index
    %c19_111 = arith.constant 19 : index
    %123 = vector.load %arg7[%c0_110, %c19_111] : memref<8x1256xbf16, #tpu.memory_space<vmem>>, vector<8x1000xbf16>
    %c16_112 = arith.constant 16 : index
    %c0_113 = arith.constant 0 : index
    %124 = vector.load %arg6[%c16_112, %c0_113] : memref<216x1000xbf16, #tpu.memory_space<vmem>>, vector<8x1000xbf16>
    tpu.vector_store %arg6[%c16_112, %c0_113], %123 {strides = array<i32>} : memref<216x1000xbf16, #tpu.memory_space<vmem>>, vector<8x1000xbf16>,
    %c0_114 = arith.constant 0 : index
    %c27_115 = arith.constant 27 : index
    %125 = vector.load %arg7[%c0_114, %c27_115] : memref<8x1256xbf16, #tpu.memory_space<vmem>>, vector<8x1000xbf16>
    %c24_116 = arith.constant 24 : index
    %c0_117 = arith.constant 0 : index
    %126 = vector.load %arg6[%c24_116, %c0_117] : memref<216x1000xbf16, #tpu.memory_space<vmem>>, vector<8x1000xbf16>
    tpu.vector_store %arg6[%c24_116, %c0_117], %125 {strides = array<i32>} : memref<216x1000xbf16, #tpu.memory_space<vmem>>, vector<8x1000xbf16>,
    %c0_118 = arith.constant 0 : index
    %c28_119 = arith.constant 28 : index
    %127 = vector.load %arg7[%c0_118, %c28_119] : memref<8x1256xbf16, #tpu.memory_space<vmem>>, vector<8x1000xbf16>
    %c32_120 = arith.constant 32 : index
    %c0_121 = arith.constant 0 : index
    %128 = vector.load %arg6[%c32_120, %c0_121] : memref<216x1000xbf16, #tpu.memory_space<vmem>>, vector<8x1000xbf16>
    tpu.vector_store %arg6[%c32_120, %c0_121], %127 {strides = array<i32>} : memref<216x1000xbf16, #tpu.memory_space<vmem>>, vector<8x1000xbf16>,
    %c0_122 = arith.constant 0 : index
    %c29_123 = arith.constant 29 : index
    %129 = vector.load %arg7[%c0_122, %c29_123] : memref<8x1256xbf16, #tpu.memory_space<vmem>>, vector<8x1000xbf16>
    %c40_124 = arith.constant 40 : index
    %c0_125 = arith.constant 0 : index
    %130 = vector.load %arg6[%c40_124, %c0_125] : memref<216x1000xbf16, #tpu.memory_space<vmem>>, vector<8x1000xbf16>
    tpu.vector_store %arg6[%c40_124, %c0_125], %129 {strides = array<i32>} : memref<216x1000xbf16, #tpu.memory_space<vmem>>, vector<8x1000xbf16>,
    %c0_126 = arith.constant 0 : index
    %c37_127 = arith.constant 37 : index
    %131 = vector.load %arg7[%c0_126, %c37_127] : memref<8x1256xbf16, #tpu.memory_space<vmem>>, vector<8x1000xbf16>
    %c48_128 = arith.constant 48 : index
    %c0_129 = arith.constant 0 : index
    %132 = vector.load %arg6[%c48_128, %c0_129] : memref<216x1000xbf16, #tpu.memory_space<vmem>>, vector<8x1000xbf16>
    tpu.vector_store %arg6[%c48_128, %c0_129], %131 {strides = array<i32>} : memref<216x1000xbf16, #tpu.memory_space<vmem>>, vector<8x1000xbf16>,
    %c0_130 = arith.constant 0 : index
    %c38_131 = arith.constant 38 : index
    %133 = vector.load %arg7[%c0_130, %c38_131] : memref<8x1256xbf16, #tpu.memory_space<vmem>>, vector<8x1000xbf16>
    %c56_132 = arith.constant 56 : index
    %c0_133 = arith.constant 0 : index
    %134 = vector.load %arg6[%c56_132, %c0_133] : memref<216x1000xbf16, #tpu.memory_space<vmem>>, vector<8x1000xbf16>
    tpu.vector_store %arg6[%c56_132, %c0_133], %133 {strides = array<i32>} : memref<216x1000xbf16, #tpu.memory_space<vmem>>, vector<8x1000xbf16>,
    %c0_134 = arith.constant 0 : index
    %c39_135 = arith.constant 39 : index
    %135 = vector.load %arg7[%c0_134, %c39_135] : memref<8x1256xbf16, #tpu.memory_space<vmem>>, vector<8x1000xbf16>
    %c64_136 = arith.constant 64 : index
    %c0_137 = arith.constant 0 : index
    %136 = vector.load %arg6[%c64_136, %c0_137] : memref<216x1000xbf16, #tpu.memory_space<vmem>>, vector<8x1000xbf16>
    tpu.vector_store %arg6[%c64_136, %c0_137], %135 {strides = array<i32>} : memref<216x1000xbf16, #tpu.memory_space<vmem>>, vector<8x1000xbf16>,
    %c0_138 = arith.constant 0 : index
    %c117_139 = arith.constant 117 : index
    %137 = vector.load %arg7[%c0_138, %c117_139] : memref<8x1256xbf16, #tpu.memory_space<vmem>>, vector<8x1000xbf16>
    %c72_140 = arith.constant 72 : index
    %c0_141 = arith.constant 0 : index
    %138 = vector.load %arg6[%c72_140, %c0_141] : memref<216x1000xbf16, #tpu.memory_space<vmem>>, vector<8x1000xbf16>
    tpu.vector_store %arg6[%c72_140, %c0_141], %137 {strides = array<i32>} : memref<216x1000xbf16, #tpu.memory_space<vmem>>, vector<8x1000xbf16>,
    %c0_142 = arith.constant 0 : index
    %c118_143 = arith.constant 118 : index
    %139 = vector.load %arg7[%c0_142, %c118_143] : memref<8x1256xbf16, #tpu.memory_space<vmem>>, vector<8x1000xbf16>
    %c80_144 = arith.constant 80 : index
    %c0_145 = arith.constant 0 : index
    %140 = vector.load %arg6[%c80_144, %c0_145] : memref<216x1000xbf16, #tpu.memory_space<vmem>>, vector<8x1000xbf16>
    tpu.vector_store %arg6[%c80_144, %c0_145], %139 {strides = array<i32>} : memref<216x1000xbf16, #tpu.memory_space<vmem>>, vector<8x1000xbf16>,
    %c0_146 = arith.constant 0 : index
    %c119_147 = arith.constant 119 : index
    %141 = vector.load %arg7[%c0_146, %c119_147] : memref<8x1256xbf16, #tpu.memory_space<vmem>>, vector<8x1000xbf16>
    %c88_148 = arith.constant 88 : index
    %c0_149 = arith.constant 0 : index
    %142 = vector.load %arg6[%c88_148, %c0_149] : memref<216x1000xbf16, #tpu.memory_space<vmem>>, vector<8x1000xbf16>
    tpu.vector_store %arg6[%c88_148, %c0_149], %141 {strides = array<i32>} : memref<216x1000xbf16, #tpu.memory_space<vmem>>, vector<8x1000xbf16>,
    %c0_150 = arith.constant 0 : index
    %c127_151 = arith.constant 127 : index
    %143 = vector.load %arg7[%c0_150, %c127_151] : memref<8x1256xbf16, #tpu.memory_space<vmem>>, vector<8x1000xbf16>
    %c96_152 = arith.constant 96 : index
    %c0_153 = arith.constant 0 : index
    %144 = vector.load %arg6[%c96_152, %c0_153] : memref<216x1000xbf16, #tpu.memory_space<vmem>>, vector<8x1000xbf16>
    tpu.vector_store %arg6[%c96_152, %c0_153], %143 {strides = array<i32>} : memref<216x1000xbf16, #tpu.memory_space<vmem>>, vector<8x1000xbf16>,
    %c0_154 = arith.constant 0 : index
    %c128_155 = arith.constant 128 : index
    %145 = vector.load %arg7[%c0_154, %c128_155] : memref<8x1256xbf16, #tpu.memory_space<vmem>>, vector<8x1000xbf16>
    %c104_156 = arith.constant 104 : index
    %c0_157 = arith.constant 0 : index
    %146 = vector.load %arg6[%c104_156, %c0_157] : memref<216x1000xbf16, #tpu.memory_space<vmem>>, vector<8x1000xbf16>
    tpu.vector_store %arg6[%c104_156, %c0_157], %145 {strides = array<i32>} : memref<216x1000xbf16, #tpu.memory_space<vmem>>, vector<8x1000xbf16>,
    %c0_158 = arith.constant 0 : index
    %c129_159 = arith.constant 129 : index
    %147 = vector.load %arg7[%c0_158, %c129_159] : memref<8x1256xbf16, #tpu.memory_space<vmem>>, vector<8x1000xbf16>
    %c112 = arith.constant 112 : index
    %c0_160 = arith.constant 0 : index
    %148 = vector.load %arg6[%c112, %c0_160] : memref<216x1000xbf16, #tpu.memory_space<vmem>>, vector<8x1000xbf16>
    tpu.vector_store %arg6[%c112, %c0_160], %147 {strides = array<i32>} : memref<216x1000xbf16, #tpu.memory_space<vmem>>, vector<8x1000xbf16>,
    %c0_161 = arith.constant 0 : index
    %c137_162 = arith.constant 137 : index
    %149 = vector.load %arg7[%c0_161, %c137_162] : memref<8x1256xbf16, #tpu.memory_space<vmem>>, vector<8x1000xbf16>
    %c120 = arith.constant 120 : index
    %c0_163 = arith.constant 0 : index
    %150 = vector.load %arg6[%c120, %c0_163] : memref<216x1000xbf16, #tpu.memory_space<vmem>>, vector<8x1000xbf16>
    tpu.vector_store %arg6[%c120, %c0_163], %149 {strides = array<i32>} : memref<216x1000xbf16, #tpu.memory_space<vmem>>, vector<8x1000xbf16>,
    %c0_164 = arith.constant 0 : index
    %c138_165 = arith.constant 138 : index
    %151 = vector.load %arg7[%c0_164, %c138_165] : memref<8x1256xbf16, #tpu.memory_space<vmem>>, vector<8x1000xbf16>
    %c128_166 = arith.constant 128 : index
    %c0_167 = arith.constant 0 : index
    %152 = vector.load %arg6[%c128_166, %c0_167] : memref<216x1000xbf16, #tpu.memory_space<vmem>>, vector<8x1000xbf16>
    tpu.vector_store %arg6[%c128_166, %c0_167], %151 {strides = array<i32>} : memref<216x1000xbf16, #tpu.memory_space<vmem>>, vector<8x1000xbf16>,
    %c0_168 = arith.constant 0 : index
    %c139_169 = arith.constant 139 : index
    %153 = vector.load %arg7[%c0_168, %c139_169] : memref<8x1256xbf16, #tpu.memory_space<vmem>>, vector<8x1000xbf16>
    %c136 = arith.constant 136 : index
    %c0_170 = arith.constant 0 : index
    %154 = vector.load %arg6[%c136, %c0_170] : memref<216x1000xbf16, #tpu.memory_space<vmem>>, vector<8x1000xbf16>
    tpu.vector_store %arg6[%c136, %c0_170], %153 {strides = array<i32>} : memref<216x1000xbf16, #tpu.memory_space<vmem>>, vector<8x1000xbf16>,
    %c0_171 = arith.constant 0 : index
    %c217_172 = arith.constant 217 : index
    %155 = vector.load %arg7[%c0_171, %c217_172] : memref<8x1256xbf16, #tpu.memory_space<vmem>>, vector<8x1000xbf16>
    %c144 = arith.constant 144 : index
    %c0_173 = arith.constant 0 : index
    %156 = vector.load %arg6[%c144, %c0_173] : memref<216x1000xbf16, #tpu.memory_space<vmem>>, vector<8x1000xbf16>
    tpu.vector_store %arg6[%c144, %c0_173], %155 {strides = array<i32>} : memref<216x1000xbf16, #tpu.memory_space<vmem>>, vector<8x1000xbf16>,
    %c0_174 = arith.constant 0 : index
    %c218_175 = arith.constant 218 : index
    %157 = vector.load %arg7[%c0_174, %c218_175] : memref<8x1256xbf16, #tpu.memory_space<vmem>>, vector<8x1000xbf16>
    %c152 = arith.constant 152 : index
    %c0_176 = arith.constant 0 : index
    %158 = vector.load %arg6[%c152, %c0_176] : memref<216x1000xbf16, #tpu.memory_space<vmem>>, vector<8x1000xbf16>
    tpu.vector_store %arg6[%c152, %c0_176], %157 {strides = array<i32>} : memref<216x1000xbf16, #tpu.memory_space<vmem>>, vector<8x1000xbf16>,
    %c0_177 = arith.constant 0 : index
    %c219_178 = arith.constant 219 : index
    %159 = vector.load %arg7[%c0_177, %c219_178] : memref<8x1256xbf16, #tpu.memory_space<vmem>>, vector<8x1000xbf16>
    %c160 = arith.constant 160 : index
    %c0_179 = arith.constant 0 : index
    %160 = vector.load %arg6[%c160, %c0_179] : memref<216x1000xbf16, #tpu.memory_space<vmem>>, vector<8x1000xbf16>
    tpu.vector_store %arg6[%c160, %c0_179], %159 {strides = array<i32>} : memref<216x1000xbf16, #tpu.memory_space<vmem>>, vector<8x1000xbf16>,
    %c0_180 = arith.constant 0 : index
    %c227_181 = arith.constant 227 : index
    %161 = vector.load %arg7[%c0_180, %c227_181] : memref<8x1256xbf16, #tpu.memory_space<vmem>>, vector<8x1000xbf16>
    %c168 = arith.constant 168 : index
    %c0_182 = arith.constant 0 : index
    %162 = vector.load %arg6[%c168, %c0_182] : memref<216x1000xbf16, #tpu.memory_space<vmem>>, vector<8x1000xbf16>
    tpu.vector_store %arg6[%c168, %c0_182], %161 {strides = array<i32>} : memref<216x1000xbf16, #tpu.memory_space<vmem>>, vector<8x1000xbf16>,
    %c0_183 = arith.constant 0 : index
    %c228_184 = arith.constant 228 : index
    %163 = vector.load %arg7[%c0_183, %c228_184] : memref<8x1256xbf16, #tpu.memory_space<vmem>>, vector<8x1000xbf16>
    %c176 = arith.constant 176 : index
    %c0_185 = arith.constant 0 : index
    %164 = vector.load %arg6[%c176, %c0_185] : memref<216x1000xbf16, #tpu.memory_space<vmem>>, vector<8x1000xbf16>
    tpu.vector_store %arg6[%c176, %c0_185], %163 {strides = array<i32>} : memref<216x1000xbf16, #tpu.memory_space<vmem>>, vector<8x1000xbf16>,
    %c0_186 = arith.constant 0 : index
    %c229_187 = arith.constant 229 : index
    %165 = vector.load %arg7[%c0_186, %c229_187] : memref<8x1256xbf16, #tpu.memory_space<vmem>>, vector<8x1000xbf16>
    %c184 = arith.constant 184 : index
    %c0_188 = arith.constant 0 : index
    %166 = vector.load %arg6[%c184, %c0_188] : memref<216x1000xbf16, #tpu.memory_space<vmem>>, vector<8x1000xbf16>
    tpu.vector_store %arg6[%c184, %c0_188], %165 {strides = array<i32>} : memref<216x1000xbf16, #tpu.memory_space<vmem>>, vector<8x1000xbf16>,
    %c0_189 = arith.constant 0 : index
    %c237_190 = arith.constant 237 : index
    %167 = vector.load %arg7[%c0_189, %c237_190] : memref<8x1256xbf16, #tpu.memory_space<vmem>>, vector<8x1000xbf16>
    %c192 = arith.constant 192 : index
    %c0_191 = arith.constant 0 : index
    %168 = vector.load %arg6[%c192, %c0_191] : memref<216x1000xbf16, #tpu.memory_space<vmem>>, vector<8x1000xbf16>
    tpu.vector_store %arg6[%c192, %c0_191], %167 {strides = array<i32>} : memref<216x1000xbf16, #tpu.memory_space<vmem>>, vector<8x1000xbf16>,
    %c0_192 = arith.constant 0 : index
    %c238_193 = arith.constant 238 : index
    %169 = vector.load %arg7[%c0_192, %c238_193] : memref<8x1256xbf16, #tpu.memory_space<vmem>>, vector<8x1000xbf16>
    %c200 = arith.constant 200 : index
    %c0_194 = arith.constant 0 : index
    %170 = vector.load %arg6[%c200, %c0_194] : memref<216x1000xbf16, #tpu.memory_space<vmem>>, vector<8x1000xbf16>
    tpu.vector_store %arg6[%c200, %c0_194], %169 {strides = array<i32>} : memref<216x1000xbf16, #tpu.memory_space<vmem>>, vector<8x1000xbf16>,
    %c0_195 = arith.constant 0 : index
    %c239_196 = arith.constant 239 : index
    %171 = vector.load %arg7[%c0_195, %c239_196] : memref<8x1256xbf16, #tpu.memory_space<vmem>>, vector<8x1000xbf16>
    %c208 = arith.constant 208 : index
    %c0_197 = arith.constant 0 : index
    %172 = vector.load %arg6[%c208, %c0_197] : memref<216x1000xbf16, #tpu.memory_space<vmem>>, vector<8x1000xbf16>
    tpu.vector_store %arg6[%c208, %c0_197], %171 {strides = array<i32>} : memref<216x1000xbf16, #tpu.memory_space<vmem>>, vector<8x1000xbf16>,
    %c0_198 = arith.constant 0 : index
    %c0_199 = arith.constant 0 : index
    %173 = vector.load %arg3[%c0_198, %c0_199] : memref<8x216xbf16, #tpu.memory_space<vmem>>, vector<8x216xbf16>
    %c0_200 = arith.constant 0 : index
    %c0_201 = arith.constant 0 : index
    %174 = vector.load %arg6[%c0_200, %c0_201] : memref<216x1000xbf16, #tpu.memory_space<vmem>>, vector<216x1000xbf16>
    %cst_202 = arith.constant dense<0.000000e+00> : vector<8x1000xf32>
    %175 = tpu.matmul %173, %174, %cst_202 {dimension_numbers = #tpu.dot_dimension_numbers<[1], [0], [0], [1], [0, 0, 1, 1], [], []>} : vector<8x216xbf16>, vector<216x1000xbf16>, vector<8x1000xf32> -> vector<8x1000xf32>
    %176 = vector.broadcast %0 : vector<1x1000xf32> to vector<8x1000xf32>
    %177 = arith.mulf %175, %176 : vector<8x1000xf32>
    %cst_203 = arith.constant dense<0.000000e+00> : vector<8xf32>
    %178 = vector.multi_reduction <add>, %177, %cst_203 [1] : vector<8x1000xf32> to vector<8xf32>
    %179 = vector.shape_cast %178 : vector<8xf32> to vector<8x1xf32>
    %180 = arith.mulf %177, %177 : vector<8x1000xf32>
    %cst_204 = arith.constant dense<0.000000e+00> : vector<8xf32>
    %181 = vector.multi_reduction <add>, %180, %cst_204 [1] : vector<8x1000xf32> to vector<8xf32>
    %182 = vector.shape_cast %181 : vector<8xf32> to vector<8x1xf32>
    %cst_205 = arith.constant 0.001953125 : f32
    %183 = vector.broadcast %cst_205 : f32 to vector<8x1xf32>
    %184 = arith.mulf %179, %183 : vector<8x1xf32>
    %cst_206 = arith.constant 0.001953125 : f32
    %185 = vector.broadcast %cst_206 : f32 to vector<8x1xf32>
    %186 = arith.mulf %182, %185 : vector<8x1xf32>
    %187 = arith.mulf %184, %184 : vector<8x1xf32>
    %188 = arith.subf %186, %187 : vector<8x1xf32>
    %cst_207 = arith.constant 0.000000e+00 : f32
    %189 = vector.broadcast %cst_207 : f32 to vector<8x1xf32>
    %190 = arith.maximumf %188, %189 : vector<8x1xf32>
    %191 = vector.broadcast %184 : vector<8x1xf32> to vector<8x1000xf32>
    %192 = arith.subf %175, %191 : vector<8x1000xf32>
    %cst_208 = arith.constant 9.99999974E-6 : f32
    %193 = vector.broadcast %cst_208 : f32 to vector<8x1xf32>
    %194 = arith.addf %190, %193 : vector<8x1xf32>
    %195 = math.rsqrt %194 : vector<8x1xf32>
    %196 = vector.broadcast %195 : vector<8x1xf32> to vector<8x1000xf32>
    %197 = arith.mulf %192, %196 : vector<8x1000xf32>
    %cst_209 = arith.constant 0.000000e+00 : f32
    %198 = vector.broadcast %cst_209 : f32 to vector<8x1000xf32>
    %199 = arith.cmpf oge, %197, %198 : vector<8x1000xf32>
    %cst_210 = arith.constant 0.00999999977 : f32
    %200 = vector.broadcast %cst_210 : f32 to vector<8x1000xf32>
    %201 = arith.mulf %200, %197 : vector<8x1000xf32>
    %202 = arith.select %199, %197, %201 : vector<8x1000xi1>, vector<8x1000xf32>
    %203 = vector.broadcast %0 : vector<1x1000xf32> to vector<8x1000xf32>
    %204 = arith.mulf %202, %203 : vector<8x1000xf32>
    %c0_211 = arith.constant 0 : index
    %c0_212 = arith.constant 0 : index
    %c0_213 = arith.constant 0 : index
    %205 = vector.load %arg5[%c0_211, %c0_212, %c0_213] : memref<1x8x1000xf32, #tpu.memory_space<vmem>>, vector<1x8x1000xf32>
    %206 = vector.shape_cast %205 : vector<1x8x1000xf32> to vector<8x1000xf32>
    %207 = vector.shape_cast %204 : vector<8x1000xf32> to vector<1x8x1000xf32>
    tpu.vector_store %arg5[%c0_211, %c0_212, %c0_213], %207 {strides = array<i32>} : memref<1x8x1000xf32, #tpu.memory_space<vmem>>, vector<1x8x1000xf32>,
    return
  }
  func.func @transform_0(%arg0: i32) -> (i32, i32, i32) {
    %c0_i32 = arith.constant 0 : i32
    %c0_i32_0 = arith.constant 0 : i32
    %c0_i32_1 = arith.constant 0 : i32
    return %arg0, %c0_i32, %c0_i32_0 : i32, i32, i32
  }
  func.func @transform_1(%arg0: i32) -> (i32, i32) {
    %c0_i32 = arith.constant 0 : i32
    %c0_i32_0 = arith.constant 0 : i32
    %c0_i32_1 = arith.constant 0 : i32
    return %c0_i32, %c0_i32_0 : i32, i32
  }
  func.func @transform_2(%arg0: i32) -> (i32, i32) {
    %c0_i32 = arith.constant 0 : i32
    %c0_i32_0 = arith.constant 0 : i32
    %c0_i32_1 = arith.constant 0 : i32
    return %c0_i32, %c0_i32_0 : i32, i32
  }
  func.func @transform_3(%arg0: i32) -> (i32, i32) {
    %c0_i32 = arith.constant 0 : i32
    %c0_i32_0 = arith.constant 0 : i32
    %c0_i32_1 = arith.constant 0 : i32
    return %c0_i32, %c0_i32_0 : i32, i32
  }
  func.func @transform_4(%arg0: i32) -> (i32, i32, i32) {
    %c0_i32 = arith.constant 0 : i32
    %c0_i32_0 = arith.constant 0 : i32
    %c0_i32_1 = arith.constant 0 : i32
    return %arg0, %c0_i32, %c0_i32_0 : i32, i32, i32
  }
}

</mosaic_0001>

<bundles_post_ra>
// kernel: conv_inorm_conv_forward.1
= control target key start
LH: loop header
LB: loop body
LE: loop exit
PB: predicated region body
PF: predicated region fallthrough
CT: control target
= control target key end

     0   :  { %s5189_s15 = smov 0   ;;  %s6867_s0 = inlined_call_operand.vmem [shape: bf16[2,4,1256], index: 0, kind: input, shape index: {}]   ;;  %s6868_s1 = inlined_call_operand.vmem [shape: bf16[8,108], index: 1, kind: input, shape index: {}]   ;;  %s6869_s2 = inlined_call_operand.vmem [shape: bf16[8,216], index: 2, kind: input, shape index: {}]   ;;  %s6870_s3 = inlined_call_operand.vmem [shape: f32[1,1000], index: 3, kind: input, shape index: {}]   ;;  %s6871_s4 = inlined_call_operand.vmem [shape: f32[2,8,1000], index: 4, kind: output, shape index: {}]  }
   0x1 LB: > { %s4848_s16 = sadd.s32 4294967295, %s5134_s15   ;;  %p4852_p0 = scmp.ge.s32.totalorder %s5134_s15, 1  ;;  %s5134_s15 = sphi %s5189_s15, %s14_s15  }
   0x2   : > { %p162_p1 = scmp.lt.s32.totalorder %s5134_s15, 3 }
   0x4   : > { %p163_p2 = pnand %p4852_p0, %p162_p1 }
   0x5   : > { %p188_p3 = scmp.lt.s32.totalorder (!%p163_p2), %s4848_s16, 1  ;;  %v208_v0 = vlaneseq (!%p163_p2)  ;;  %v5136_v1 = vmov (!%p163_p2), 1983009808   ;;  %s5137_s21 = smov (!%p163_p2), 110   ;;  %vm246_vm0 = vcmask (!%p163_p2), 1043456   ;;  %vm313_vm1 = vcmask (!%p163_p2), 900096  }
   0x6   : > { %166 = sbr.rel (%p163_p2) target bundleno = 1557 (0x615), region = 36  ;;  %v206_v2 = vunpack.c.l.s4 (!%p163_p2), %v5136_v1  ;;  %s5138_s22 = smov (!%p163_p2), 111   ;;  %vm248_vm2 = vcmask (!%p163_p2), 908288   ;;  %vm378_vm3 = vcmask (!%p163_p2), 891904   ;;  %vm453_vm4 = vcmask (!%p163_p2), 826368  }
   0x7   : > { %v5199_v3 = vshrl.u32 (!%p163_p2), %v208_v0, 7  ;;  %s5139_s23 = smov (!%p163_p2), 101   ;;  %s5140_s24 = smov (!%p163_p2), 109   ;;  %vm6911_vm5 = vcmask (!%p163_p2), 818176   ;;  %vm6910_vm6 = vcmask (!%p163_p2), 809984   ;;  %vm6908_vm7 = vcmask (!%p163_p2), 744448  }
   0x8   : > { %v207_v4 = vunpack.c.0.s8 (!%p163_p2), %v206_v2  ;;  %s5141_s25 = smov (!%p163_p2), 100   ;;  %s5142_s26 = smov (!%p163_p2), 99   ;;  %vm6909_vm8 = vcmask (!%p163_p2), 736256   ;;  %vm2773_vm9 = vcmask (!%p163_p2), 1044288   ;;  %vm6878_vm10 = vcmask (!%p163_p2), 850948  }
   0x9   : > { %s5143_s27 = smov (!%p163_p2), 91   ;;  %s5144_s28 = smov (!%p163_p2), 90   ;;  %vm2775_vm11 = vmor (!%p163_p2), %vm6878_vm10, %vm2773_vm9  ;;  %vm6901_vm12 = vcmask (!%p163_p2), 728064   ;;  %vm6880_vm13 = vcmask (!%p163_p2), 89088   ;;  %vm6881_vm14 = vcmask (!%p163_p2), 80896   ;;  %vm6879_vm15 = vcmask (!%p163_p2), 72704  }
   0xa   : > { %v5203_v5 = vsub.s32 (!%p163_p2), %v207_v4, %v5199_v3  ;;  %s5145_s29 = smov (!%p163_p2), 89   ;;  %s5146_s30 = smov (!%p163_p2), 11   ;;  %vm6900_vm9 = vcmask (!%p163_p2), 7168   ;;  %vm327_vm10 = vcmask (!%p163_p2), 1043458  }
   0xb   : > { %s5147_s5 = smov (!%p163_p2), 10   ;;  %s6912_s6 = smov (!%p163_p2), 9  }
   0xc   : > { %s5149_s7 = smov (!%p163_p2), 1   ;;  %s5150_s8 = smov (!%p163_p2), 127  }
   0xd   : > { %s7089_s16 = smov (!%p188_p3, %s4848_s16), 1  ;;  %s6888_s9 = smov 119  }
   0xe   : > { %s5066_s17 = smul.u32 20, %s7089_s16  ;;  %s6886_s10 = smov 118  }
   0xf   : > { %s6884_s11 = smov 117   ;;  %s5154_s12 = smov 39  }
  0x10   : > { %s5208_s20 = scalar_lea.vmem %s6867_s0, %s5066_s17  ;;  %s6914_s13 = smov 38  }
  0x11   : > { %v266_v6 = vld [vmem:[%s5208_s20] sm:$0xff]  ;;  %v5228_v14 = vld [vmem:[%s5208_s20 + $0x8] sm:$0xff]  ;;  %s5156_s14 = smov 37   ;;  %s6872_s17 = smov 29  }
  0x12   : > { %v5212_v7 = vld [vmem:[%s5208_s20 + $0x2] sm:$0xff]  ;;  %v284_v8 = vrot.slane %v266_v6, %v5203_v5  ;;  %v270_v10 = vcombine.low %v266_v6, %v266_v6  ;;  %v204_v11 = vcombine.high %v266_v6, %v266_v6  ;;  %v285_v15 = vcombine.low %v5228_v14, %v5228_v14  ;;  %v5295_v22 = vld [vmem:[%s5208_s20 + $0xa] sm:$0xff]  ;;  %s6876_s18 = smov 28   ;;  %s6874_s19 = smov 27  }
  0x13   : > { %4862 = vst.sshfl [vmem:[#allocation2 + $0xc8] sm:$0xf0 pattern:$0x76325410] %v5212_v7  ;;  %v5218_v9 = vcombine.low %v5212_v7, %v5212_v7  ;;  %v5239_v17 = vrot.slane %v5228_v14, %v5203_v5  ;;  %v1194_v18 = vcombine.high %v5212_v7, %v5212_v7  ;;  %v5284_v20 = vrot.slane %v5212_v7, %v5203_v5 }
  0x14   : > { %302 = vrot.lane.b32.xlu1 %v284_v8, %s5137_s21  ;;  %234 = vrot.lane.b32.xlu0 %v284_v8, %s5138_s22  ;;  %v277_v12 = vrot.slane %v270_v10, %v5203_v5  ;;  %v218_v13 = vrot.slane %v204_v11, %v5203_v5  ;;  %v292_v16 = vrot.slane %v285_v15, %v5203_v5 }
  0x15   : > { %4861 = vst.sshfl [vmem:[#allocation2 + $0xc0] sm:$0xf0 pattern:$0x76325410] %v5218_v9  ;;  %v5280_v19 = vrot.slane %v1194_v18, %v5203_v5  ;;  %v5292_v21 = vrot.slane %v5218_v9, %v5203_v5  ;;  %v5303_v23 = vrot.slane %v5295_v22, %v5203_v5  ;;  %v1271_v24 = vcombine.low %v5295_v22, %v5295_v22 }
  0x17   : > { %v5312_v25 = vrot.slane %v1271_v24, %v5203_v5 }
  0x18   : > { %439 = vrot.lane.b32.xlu1 %v284_v8, %s5139_s23  ;;  %365 = vrot.lane.b32.xlu0 %v284_v8, %s5140_s24 }
  0x1c   : > { %300 = vrot.lane.b32.xlu1 %v277_v12, %s5137_s21  ;;  %236 = vrot.lane.b32.xlu0 %v218_v13, %s5138_s22 }
  0x20   : > { %367 = vrot.lane.b32.xlu1 %v218_v13, %s5140_s24  ;;  %437 = vrot.lane.b32.xlu0 %v277_v12, %s5139_s23 }
  0x24   : > { %304 = vrot.lane.b32.xlu1 %v292_v16, %s5137_s21  ;;  %238 = vrot.lane.b32.xlu0 %v5239_v17, %s5138_s22 }
  0x28   : > { %441 = vrot.lane.b32.xlu1 %v292_v16, %s5139_s23  ;;  %369 = vrot.lane.b32.xlu0 %v5239_v17, %s5140_s24 }
  0x2c   : > { %514 = vrot.lane.b32.xlu1 %v218_v13, %s5141_s25  ;;  %512 = vrot.lane.b32.xlu0 %v284_v8, %s5141_s25 }
  0x30   : > { %590 = vrot.lane.b32.xlu1 %v284_v8, %s5142_s26  ;;  %588 = vrot.lane.b32.xlu0 %v277_v12, %s5142_s26 }
  0x34   : > { %665 = vrot.lane.b32.xlu1 %v218_v13, %s5143_s27  ;;  %663 = vrot.lane.b32.xlu0 %v284_v8, %s5143_s27 }
  0x38   : > { %741 = vrot.lane.b32.xlu1 %v284_v8, %s5144_s28  ;;  %739 = vrot.lane.b32.xlu0 %v277_v12, %s5144_s28 }
  0x3c   : > { %592 = vrot.lane.b32.xlu1 %v292_v16, %s5142_s26  ;;  %516 = vrot.lane.b32.xlu0 %v5239_v17, %s5141_s25 }
  0x40   : > { %743 = vrot.lane.b32.xlu1 %v292_v16, %s5144_s28  ;;  %667 = vrot.lane.b32.xlu0 %v5239_v17, %s5143_s27 }
  0x44   : > { %816 = vrot.lane.b32.xlu1 %v218_v13, %s5145_s29  ;;  %814 = vrot.lane.b32.xlu0 %v284_v8, %s5145_s29 }
  0x48   : > { %892 = vrot.lane.b32.xlu1 %v284_v8, %s5146_s30  ;;  %890 = vrot.lane.b32.xlu0 %v277_v12, %s5146_s30 }
  0x4c   : > { %967 = vrot.lane.b32.xlu1 %v218_v13, %s5147_s5  ;;  %965 = vrot.lane.b32.xlu0 %v284_v8, %s5147_s5 }
  0x50   : > { %1043 = vrot.lane.b32.xlu1 %v284_v8, %s6912_s6  ;;  %1041 = vrot.lane.b32.xlu0 %v277_v12, %s6912_s6  ;;  %v1094_v12 = vcombine.high %v5228_v14, %v5228_v14 }
  0x52   : > { %v5418_v14 = vrot.slane %v1094_v12, %v5203_v5 }
  0x54   : > { %894 = vrot.lane.b32.xlu1 %v292_v16, %s5146_s30  ;;  %818 = vrot.lane.b32.xlu0 %v5239_v17, %s5145_s29 }
  0x58   : > { %1045 = vrot.lane.b32.xlu1 %v292_v16, %s6912_s6  ;;  %969 = vrot.lane.b32.xlu0 %v5239_v17, %s5147_s5 }
  0x5c   : > { %1118 = vrot.lane.b32.xlu1 %v218_v13, %s5149_s7  ;;  %1116 = vrot.lane.b32.xlu0 %v284_v8, %s5149_s7 }
  0x60   : > { %1226 = vrot.lane.b32.xlu1 %v5280_v19, %s5150_s8  ;;  %1224 = vrot.lane.b32.xlu0 %v5284_v20, %s5150_s8 }
  0x64   : > { %1288 = vrot.lane.b32.xlu1 %v5284_v20, %s6888_s9  ;;  %1286 = vrot.lane.b32.xlu0 %v5292_v21, %s6888_s9 }
  0x68   : > { %1228 = vrot.lane.b32.xlu1 %v5303_v23, %s5150_s8  ;;  %1120 = vrot.lane.b32.xlu0 %v5239_v17, %s5149_s7 }
  0x6c   : > { %1348 = vrot.lane.b32.xlu1 %v5284_v20, %s6886_s10  ;;  %1290 = vrot.lane.b32.xlu0 %v5312_v25, %s6888_s9 }
  0x70   : > { %1410 = vrot.lane.b32.xlu1 %v5292_v21, %s6884_s11  ;;  %1350 = vrot.lane.b32.xlu0 %v5280_v19, %s6886_s10 }
  0x74   : > { %1481 = vrot.lane.b32.xlu1 %v5284_v20, %s5154_s12  ;;  %1412 = vrot.lane.b32.xlu0 %v5284_v20, %s6884_s11 }
  0x78   : > { %1557 = vrot.lane.b32.xlu1 %v5292_v21, %s6914_s13  ;;  %1483 = vrot.lane.b32.xlu0 %v5280_v19, %s5154_s12 }
  0x7c   : > { %1352 = vrot.lane.b32.xlu1 %v5303_v23, %s6886_s10  ;;  %1559 = vrot.lane.b32.xlu0 %v5284_v20, %s6914_s13 }
  0x80   : > { %1485 = vrot.lane.b32.xlu1 %v5303_v23, %s5154_s12  ;;  %1414 = vrot.lane.b32.xlu0 %v5312_v25, %s6884_s11 }
  0x84   : > { %1632 = vrot.lane.b32.xlu1 %v5284_v20, %s5156_s14  ;;  %1561 = vrot.lane.b32.xlu0 %v5312_v25, %s6914_s13 }
  0x86   : > { %v303_v26 = vpop.permute.xlu1 %302  ;;  %v235_v27 = vpop.permute.xlu0 %234 }
  0x87   : > { %v309_v32 = vrot.slane %v303_v26, 4  ;;  %v242_v33 = vrot.slane %v235_v27, 4 }
  0x88   : > { %1708 = vrot.lane.b32.xlu1 %v5292_v21, %s6872_s17  ;;  %1634 = vrot.lane.b32.xlu0 %v5280_v19, %s5156_s14 }
  0x8a   : > { %v440_v28 = vpop.permute.xlu1 %439  ;;  %v366_v29 = vpop.permute.xlu0 %365 }
  0x8b   : > { %v448_v42 = vrot.slane %v440_v28, 4  ;;  %v373_v43 = vrot.slane %v366_v29, 4 }
  0x8c   : > { %1783 = vrot.lane.b32.xlu1 %v5284_v20, %s6876_s18  ;;  %1710 = vrot.lane.b32.xlu0 %v5284_v20, %s6872_s17 }
  0x8e   : > { %v301_v30 = vpop.permute.xlu1 %300  ;;  %v237_v31 = vpop.permute.xlu0 %236 }
  0x8f   : > { %v308_v34 = vrot.slane %v301_v30, 4  ;;  %v243_v35 = vrot.slane %v237_v31, 4 }
  0x90   : > { %1859 = vrot.lane.b32.xlu1 %v5292_v21, %s6874_s19  ;;  %1785 = vrot.lane.b32.xlu0 %v5280_v19, %s6876_s18 }
  0x91   : > { %v312_v36 = vsel %vm246_vm0, %v308_v34, %v309_v32  ;;  %v247_v37 = vsel %vm246_vm0, %v242_v33, %v243_v35 }
  0x92   : > { %v314_v38 = vsel %vm313_vm1, %v301_v30, %v312_v36  ;;  %v249_v39 = vsel %vm248_vm2, %v235_v27, %v247_v37  ;;  %v368_v40 = vpop.permute.xlu1 %367  ;;  %v438_v41 = vpop.permute.xlu0 %437 }
  0x93   : > { %324 = vst [vmem:[#allocation2] sm:$0xcc] %v314_v38  ;;  %259 = vst [vmem:[#allocation2] sm:$0x33] %v249_v39  ;;  %v374_v44 = vrot.slane %v368_v40, 4  ;;  %v447_v45 = vrot.slane %v438_v41, 4 }
  0x94   : > { %1636 = vrot.lane.b32.xlu1 %v5303_v23, %s5156_s14  ;;  %1861 = vrot.lane.b32.xlu0 %v5284_v20, %s6874_s19 }
  0x95   : > { %v377_v46 = vsel %vm246_vm0, %v373_v43, %v374_v44  ;;  %v452_v47 = vsel %vm246_vm0, %v447_v45, %v448_v42 }
  0x96   : > { %v379_v48 = vsel %vm378_vm3, %v366_v29, %v377_v46  ;;  %v454_v49 = vsel %vm453_vm4, %v438_v41, %v452_v47  ;;  %v5366_v50 = vpop.permute.xlu1 %304  ;;  %v5368_v51 = vpop.permute.xlu0 %238  ;;  %v5111_v46 = vld [vmem:[%s5208_s20 + $0x10] ss:$0 sps:$4 sm:$0x33]  }
  0x97   : > { %389 = vst [vmem:[#allocation2 + $0x20] sm:$0x33] %v379_v48  ;;  %465 = vst [vmem:[#allocation2 + $0x20] sm:$0xcc] %v454_v49  ;;  %v310_v52 = vrot.slane %v5366_v50, 4  ;;  %v244_v53 = vrot.slane %v5368_v51, 4 }
  0x98   : > { %1787 = vrot.lane.b32.xlu1 %v5303_v23, %s6876_s18  ;;  %1712 = vrot.lane.b32.xlu0 %v5312_v25, %s6872_s17  ;;  %s6917_s17 = smov 19   ;;  %s6906_s18 = smov 17   ;;  %v5163_v49 = vmov 0  }
  0x99   : > { %v315_v54 = vsel %vm246_vm0, %v309_v32, %v310_v52  ;;  %v250_v55 = vsel %vm246_vm0, %v243_v35, %v244_v53  ;;  %2507 = vmatprep.mubr.bf16.mxu0 %v5163_v49  ;;  %2772 = vst [vmem:[#allocation3] sm:$0xf] %v5163_v49  ;;  %2548 = vmatprep.mubr.bf16.mxu1 %v5163_v49  ;;  %2776 = vst.msk [vmem:[#allocation3 + $0x20] sm:$0xff] %vm2775_vm11, %v5163_v49  ;;  %vm6882_vm11 = vcmask 1039360  }
  0x9a   : > { %v316_v56 = vsel %vm313_vm1, %v303_v26, %v315_v54  ;;  %v251_v57 = vsel %vm248_vm2, %v237_v31, %v250_v55  ;;  %v5384_v58 = vpop.permute.xlu1 %441  ;;  %v5386_v59 = vpop.permute.xlu0 %369  ;;  %v2118_v6 = vld [vmem:[#allocation2] sm:$0xff] }
  0x9b   : > { %325 = vst [vmem:[#allocation2 + $0x8] sm:$0xcc] %v316_v56  ;;  %260 = vst [vmem:[#allocation2 + $0x8] sm:$0x33] %v251_v57  ;;  %v449_v60 = vrot.slane %v5384_v58, 4  ;;  %v375_v61 = vrot.slane %v5386_v59, 4 }
  0x9c   : > { %1934 = vrot.lane.b32.xlu1 %v5284_v20, %s6917_s17  ;;  %1863 = vrot.lane.b32.xlu0 %v5312_v25, %s6874_s19  ;;  %s6915_s19 = smov 18  }
  0x9d   : > { %v455_v62 = vsel %vm246_vm0, %v448_v42, %v449_v60  ;;  %v380_v63 = vsel %vm246_vm0, %v374_v44, %v375_v61 }
  0x9e   : > { %v456_v0 = vsel %vm453_vm4, %v440_v28, %v455_v62  ;;  %v381_v1 = vsel %vm378_vm3, %v368_v40, %v380_v63  ;;  %v5402_v2 = vpop.permute.xlu1 %514  ;;  %v513_v4 = vpop.permute.xlu0 %512  ;;  %v2122_v7 = vld [vmem:[#allocation2 + $0x20] sm:$0xff] }
  0x9f   : > { %466 = vst [vmem:[#allocation2 + $0x28] sm:$0xcc] %v456_v0  ;;  %390 = vst [vmem:[#allocation2 + $0x28] sm:$0x33] %v381_v1  ;;  %v523_v8 = vrot.slane %v5402_v2, 4  ;;  %v522_v9 = vrot.slane %v513_v4, 4  ;;  %v4870_v10 = vcombine.high %v2118_v6, %v2122_v7  ;;  %v4869_v11 = vcombine.low %v2118_v6, %v2122_v7 }
  0xa0   : > { %2010 = vrot.lane.b32.xlu1 %v5292_v21, %s6915_s19  ;;  %1936 = vrot.lane.b32.xlu0 %v5280_v19, %s6917_s17  ;;  %v436_v0 = vrot.slane %v5111_v46, %v5203_v5 }
  0xa1   : > { %v527_v13 = vsel %vm246_vm0, %v522_v9, %v523_v8  ;;  %2475 = vmatprep.subr.bf16.mxu0 %v4870_v10 }
  0xa2   : > { %v529_v15 = vsel %vm6911_vm5, %v513_v4, %v527_v13  ;;  %v591_v16 = vpop.permute.xlu1 %590  ;;  %2476 = vmatpush1.bf16.msra.mxu0 %v4869_v11  ;;  %v589_v18 = vpop.permute.xlu0 %588  ;;  %v2119_v30 = vld [vmem:[#allocation2 + $0x8] sm:$0xff] }
  0xa3   : > { %540 = vst [vmem:[#allocation2 + $0x40] sm:$0x33] %v529_v15  ;;  %v599_v24 = vrot.slane %v591_v16, 4  ;;  %v598_v26 = vrot.slane %v589_v18, 4 }
  0xa4   : > { %2085 = vrot.lane.b32.xlu1 %v5284_v20, %s6906_s18  ;;  %2012 = vrot.lane.b32.xlu0 %v5284_v20, %s6915_s19 }
  0xa5   : > { %v603_v21 = vsel %vm246_vm0, %v598_v26, %v599_v24 }
  0xa6   : > { %v605_v27 = vsel %vm6910_vm6, %v589_v18, %v603_v21  ;;  %v666_v28 = vpop.permute.xlu1 %665  ;;  %v664_v29 = vpop.permute.xlu0 %663  ;;  %v2123_v31 = vld [vmem:[#allocation2 + $0x28] sm:$0xff] }
  0xa7   : > { %616 = vst [vmem:[#allocation2 + $0x40] sm:$0xcc] %v605_v27  ;;  %v674_v32 = vrot.slane %v666_v28, 4  ;;  %v673_v33 = vrot.slane %v664_v29, 4  ;;  %v4872_v34 = vcombine.high %v2119_v30, %v2123_v31  ;;  %v4871_v35 = vcombine.low %v2119_v30, %v2123_v31 }
  0xa8   : > { %240 = vrot.lane.b32.xlu1 %v5418_v14, %s5138_s22  ;;  %2087 = vrot.lane.b32.xlu0 %v5280_v19, %s6906_s18  ;;  %v5112_v27 = vld [vmem:[%s5208_s20 + $0x10] ss:$0 sps:$4 sm:$0x33]  }
  0xa9   : > { %v678_v20 = vsel %vm246_vm0, %v673_v33, %v674_v32  ;;  %2516 = vmatprep.subr.bf16.mxu1 %v4872_v34 }
  0xaa   : > { %v680_v36 = vsel %vm6908_vm7, %v664_v29, %v678_v20  ;;  %v742_v37 = vpop.permute.xlu1 %741  ;;  %2517 = vmatpush1.bf16.msra.mxu1 %v4871_v35  ;;  %v740_v38 = vpop.permute.xlu0 %739  ;;  %v5493_v29 = vld.sshfl [vmem:[%s5208_s20 + $0x10] sm:$0x3 pattern:$0x76325410] }
  0xab   : > { %691 = vst [vmem:[#allocation2 + $0x60] sm:$0x33] %v680_v36  ;;  %v750_v39 = vrot.slane %v742_v37, 4  ;;  %v749_v40 = vrot.slane %v740_v38, 4 }
  0xac   : > { %371 = vrot.lane.b32.xlu1 %v5418_v14, %s5140_s24  ;;  %306 = vrot.lane.b32.xlu0 %v5239_v17, %s5137_s21 }
  0xad   : > { %v754_v19 = vsel %vm246_vm0, %v749_v40, %v750_v39 }
  0xae   : > { %v756_v41 = vsel %vm6909_vm8, %v740_v38, %v754_v19  ;;  %v5434_v42 = vpop.permute.xlu1 %592  ;;  %v5436_v43 = vpop.permute.xlu0 %516  ;;  %v587_v38 = vrot.slane %v5112_v27, %v5203_v5 }
  0xaf   : > { %767 = vst [vmem:[#allocation2 + $0x60] sm:$0xcc] %v756_v41  ;;  %v600_v44 = vrot.slane %v5434_v42, 4  ;;  %v524_v45 = vrot.slane %v5436_v43, 4 }
  0xb0   : > { %1938 = vrot.lane.b32.xlu1 %v5303_v23, %s6917_s17  ;;  %443 = vrot.lane.b32.xlu0 %v5239_v17, %s5139_s23 }
  0xb1   : > { %v606_v47 = vsel %vm246_vm0, %v599_v24, %v600_v44  ;;  %v530_v48 = vsel %vm246_vm0, %v523_v8, %v524_v45  ;;  %v2126_v8 = vld [vmem:[#allocation2 + $0x40] sm:$0xff] }
  0xb2   : > { %v607_v54 = vsel %vm6910_vm6, %v591_v16, %v606_v47  ;;  %v531_v55 = vsel %vm6911_vm5, %v5402_v2, %v530_v48  ;;  %v5457_v56 = vpop.permute.xlu1 %743  ;;  %v5459_v57 = vpop.permute.xlu0 %667 }
  0xb3   : > { %617 = vst [vmem:[#allocation2 + $0x48] sm:$0xcc] %v607_v54  ;;  %541 = vst [vmem:[#allocation2 + $0x48] sm:$0x33] %v531_v55  ;;  %v751_v62 = vrot.slane %v5457_v56, 4  ;;  %v675_v63 = vrot.slane %v5459_v57, 4 }
  0xb4   : > { %2089 = vrot.lane.b32.xlu1 %v5303_v23, %s6906_s18  ;;  %2014 = vrot.lane.b32.xlu0 %v5312_v25, %s6915_s19 }
  0xb5   : > { %v757_v1 = vsel %vm246_vm0, %v750_v39, %v751_v62  ;;  %v681_v2 = vsel %vm246_vm0, %v674_v32, %v675_v63  ;;  %v5113_v39 = vld [vmem:[%s5208_s20 + $0x10] ss:$0 sps:$4 sm:$0x33]  }
  0xb6   : > { %v758_v4 = vsel %vm6909_vm8, %v742_v37, %v757_v1  ;;  %v682_v6 = vsel %vm6908_vm7, %v666_v28, %v681_v2  ;;  %v5478_v7 = vpop.permute.xlu1 %816  ;;  %v815_v25 = vpop.permute.xlu0 %814  ;;  %v2130_v9 = vld [vmem:[#allocation2 + $0x60] sm:$0xff]  ;;  %v738_v54 = vrot.slane %v5113_v39, %v5203_v5 }
  0xb7   : > { %768 = vst [vmem:[#allocation2 + $0x68] sm:$0xcc] %v758_v4  ;;  %692 = vst [vmem:[#allocation2 + $0x68] sm:$0x33] %v682_v6  ;;  %v825_v10 = vrot.slane %v5478_v7, 4  ;;  %v824_v11 = vrot.slane %v815_v25, 4  ;;  %v4878_v12 = vcombine.high %v2126_v8, %v2130_v9  ;;  %v4877_v13 = vcombine.low %v2126_v8, %v2130_v9 }
  0xb8   : > { %518 = vrot.lane.b32.xlu1 %v5418_v14, %s5141_s25  ;;  %445 = vrot.lane.b32.xlu0 %v436_v0, %s5139_s23 }
  0xb9   : > { %v829_v15 = vsel %vm246_vm0, %v824_v11, %v825_v10  ;;  %2477 = vmatprep.subr.bf16.mxu0 %v4878_v12 }
  0xba   : > { %v831_v16 = vsel %vm6901_vm12, %v815_v25, %v829_v15  ;;  %v893_v18 = vpop.permute.xlu1 %892  ;;  %2478 = vmatpush1.bf16.msra.mxu0 %v4877_v13  ;;  %v891_v24 = vpop.permute.xlu0 %890  ;;  %v2127_v33 = vld [vmem:[#allocation2 + $0x48] sm:$0xff] }
  0xbb   : > { %842 = vst [vmem:[#allocation2 + $0x80] sm:$0x33] %v831_v16  ;;  %v901_v26 = vrot.slane %v893_v18, 4  ;;  %v900_v21 = vrot.slane %v891_v24, 4 }
  0xbc   : > { %669 = vrot.lane.b32.xlu1 %v5418_v14, %s5143_s27  ;;  %594 = vrot.lane.b32.xlu0 %v5239_v17, %s5142_s26 }
  0xbd   : > { %v905_v28 = vsel %vm246_vm0, %v900_v21, %v901_v26 }
  0xbe   : > { %v907_v30 = vsel %vm6880_vm13, %v891_v24, %v905_v28  ;;  %v968_v31 = vpop.permute.xlu1 %967  ;;  %v966_v32 = vpop.permute.xlu0 %965  ;;  %v2131_v34 = vld [vmem:[#allocation2 + $0x68] sm:$0xff] }
  0xbf   : > { %918 = vst [vmem:[#allocation2 + $0x80] sm:$0xcc] %v907_v30  ;;  %v976_v35 = vrot.slane %v968_v31, 4  ;;  %v975_v20 = vrot.slane %v966_v32, 4  ;;  %v4880_v36 = vcombine.high %v2127_v33, %v2131_v34  ;;  %v4879_v37 = vcombine.low %v2127_v33, %v2131_v34 }
  0xc0   : > { %520 = vrot.lane.b32.xlu1 %v5493_v29, %s5141_s25  ;;  %745 = vrot.lane.b32.xlu0 %v5239_v17, %s5144_s28 }
  0xc1   : > { %v980_v40 = vsel %vm246_vm0, %v975_v20, %v976_v35  ;;  %2518 = vmatprep.subr.bf16.mxu1 %v4880_v36 }
  0xc2   : > { %v982_v19 = vsel %vm6881_vm14, %v966_v32, %v980_v40  ;;  %v1044_v41 = vpop.permute.xlu1 %1043  ;;  %2519 = vmatpush1.bf16.msra.mxu1 %v4879_v37  ;;  %v1042_v46 = vpop.permute.xlu0 %1041 }
  0xc3   : > { %993 = vst [vmem:[#allocation2 + $0xa0] sm:$0x33] %v982_v19  ;;  %v1052_v47 = vrot.slane %v1044_v41, 4  ;;  %v1051_v48 = vrot.slane %v1042_v46, 4 }
  0xc4   : > { %671 = vrot.lane.b32.xlu1 %v5493_v29, %s5143_s27  ;;  %596 = vrot.lane.b32.xlu0 %v587_v38, %s5142_s26 }
  0xc5   : > { %v1056_v55 = vsel %vm246_vm0, %v1051_v48, %v1052_v47 }
  0xc6   : > { %v1058_v0 = vsel %vm6879_vm15, %v1042_v46, %v1056_v55  ;;  %v5510_v1 = vpop.permute.xlu1 %894  ;;  %v5512_v2 = vpop.permute.xlu0 %818  ;;  %v2134_v32 = vld [vmem:[#allocation2 + $0x80] sm:$0xff] }
  0xc7   : > { %1069 = vst [vmem:[#allocation2 + $0xa0] sm:$0xcc] %v1058_v0  ;;  %v902_v4 = vrot.slane %v5510_v1, 4  ;;  %v826_v6 = vrot.slane %v5512_v2, 4 }
  0xc8   : > { %820 = vrot.lane.b32.xlu1 %v5418_v14, %s5145_s29  ;;  %747 = vrot.lane.b32.xlu0 %v738_v54, %s5144_s28 }
  0xc9   : > { %v908_v25 = vsel %vm246_vm0, %v901_v26, %v902_v4  ;;  %v832_v8 = vsel %vm246_vm0, %v825_v10, %v826_v6  ;;  %v5114_v10 = vld [vmem:[%s5208_s20 + $0x10] ss:$0 sps:$4 sm:$0x33]  }
  0xca   : > { %v909_v9 = vsel %vm6880_vm13, %v893_v18, %v908_v25  ;;  %v833_v11 = vsel %vm6901_vm12, %v5478_v7, %v832_v8  ;;  %v5528_v12 = vpop.permute.xlu1 %1045  ;;  %v5530_v13 = vpop.permute.xlu0 %969  ;;  %v1149_v18 = vld [vmem:[%s5208_s20 + $0xa] sm:$0xff]  ;;  %vm6883_vm13 = vcmask 973824  }
  0xcb   : > { %919 = vst [vmem:[#allocation2 + $0x88] sm:$0xcc] %v909_v9  ;;  %843 = vst [vmem:[#allocation2 + $0x88] sm:$0x33] %v833_v11  ;;  %v1053_v15 = vrot.slane %v5528_v12, 4  ;;  %v977_v16 = vrot.slane %v5530_v13, 4  ;;  %v1167_v26 = vcombine.low %v1149_v18, %v1149_v18  ;;  %v1181_v54 = vrot.slane %v1149_v18, %v5203_v5 }
  0xcc   : > { %971 = vrot.lane.b32.xlu1 %v5418_v14, %s5147_s5  ;;  %896 = vrot.lane.b32.xlu0 %v5239_v17, %s5146_s30 }
  0xcd   : > { %v1059_v7 = vsel %vm246_vm0, %v1052_v47, %v1053_v15  ;;  %v983_v24 = vsel %vm246_vm0, %v976_v35, %v977_v16  ;;  %4863 = vst.sshfl [vmem:[#allocation2 + $0xd0] sm:$0xf0 pattern:$0x76325410] %v1167_v26 }
  0xce   : > { %v1060_v21 = vsel %vm6879_vm15, %v1044_v41, %v1059_v7  ;;  %v984_v27 = vsel %vm6881_vm14, %v968_v31, %v983_v24  ;;  %v5548_v28 = vpop.permute.xlu1 %1118  ;;  %v1117_v30 = vpop.permute.xlu0 %1116  ;;  %v2138_v33 = vld [vmem:[#allocation2 + $0xa0] sm:$0xff]  ;;  %v889_v31 = vrot.slane %v5114_v10, %v5203_v5  ;;  %v5115_v35 = vld [vmem:[%s5208_s20 + $0x10] ss:$0 sps:$4 sm:$0x33]   ;;  %vm328_vm15 = vcmask 850950  }
  0xcf   : > { %1070 = vst [vmem:[#allocation2 + $0xa8] sm:$0xcc] %v1060_v21  ;;  %994 = vst [vmem:[#allocation2 + $0xa8] sm:$0x33] %v984_v27  ;;  %v1127_v34 = vrot.slane %v5548_v28, 4  ;;  %v1126_v20 = vrot.slane %v1117_v30, 4  ;;  %v4886_v36 = vcombine.high %v2134_v32, %v2138_v33  ;;  %v4885_v37 = vcombine.low %v2134_v32, %v2138_v33 }
  0xd0   : > { %822 = vrot.lane.b32.xlu1 %v5493_v29, %s5145_s29  ;;  %1047 = vrot.lane.b32.xlu0 %v5239_v17, %s6912_s6  ;;  %v1209_v17 = vcombine.high %v5295_v22, %v5295_v22  ;;  %v1040_v47 = vrot.slane %v5115_v35, %v5203_v5  ;;  %vm5568_vm14 = vmor %vm328_vm15, %vm327_vm10  ;;  %vm6893_vm10 = vcmask 965632   ;;  %vm6892_vm15 = vcmask 957440  }
  0xd1   : > { %v1131_v38 = vsel %vm246_vm0, %v1126_v20, %v1127_v34  ;;  %2479 = vmatprep.subr.bf16.mxu0 %v4886_v36  ;;  %1189 = vst.msk [vmem:[#allocation2 + $0xd8] sm:$0xcc] %vm5568_vm14, %v1181_v54 }
  0xd2   : > { %v1133_v39 = vsel %vm6900_vm9, %v1117_v30, %v1131_v38  ;;  %v1227_v40 = vpop.permute.xlu1 %1226  ;;  %2480 = vmatpush1.bf16.msra.mxu0 %v4885_v37  ;;  %v1225_v19 = vpop.permute.xlu0 %1224  ;;  %v2135_v8 = vld [vmem:[#allocation2 + $0x88] sm:$0xff]  ;;  %v5578_v18 = vrot.slane %v1209_v17, %v5203_v5 }
  0xd3   : > { %1144 = vst [vmem:[#allocation2 + $0xc0] sm:$0x33] %v1133_v39  ;;  %v1233_v41 = vrot.slane %v1227_v40, 4  ;;  %v1232_v46 = vrot.slane %v1225_v19, 4 }
  0xd4   : > { %973 = vrot.lane.b32.xlu1 %v5493_v29, %s5147_s5  ;;  %898 = vrot.lane.b32.xlu0 %v889_v31, %s5146_s30 }
  0xd5   : > { %v1236_v48 = vsel %vm246_vm0, %v1232_v46, %v1233_v41 }
  0xd6   : > { %v1238_v55 = vsel %vm6882_vm11, %v1225_v19, %v1236_v48  ;;  %v1289_v0 = vpop.permute.xlu1 %1288  ;;  %v1287_v25 = vpop.permute.xlu0 %1286  ;;  %v2139_v9 = vld [vmem:[#allocation2 + $0xa8] sm:$0xff] }
  0xd7   : > { %1248 = vst [vmem:[#allocation2 + $0xe0] sm:$0x33] %v1238_v55  ;;  %v1295_v11 = vrot.slane %v1289_v0, 4  ;;  %v1294_v10 = vrot.slane %v1287_v25, 4  ;;  %v4888_v7 = vcombine.high %v2135_v8, %v2139_v9  ;;  %v4887_v24 = vcombine.low %v2135_v8, %v2139_v9 }
  0xd8   : > { %1122 = vrot.lane.b32.xlu1 %v5418_v14, %s5149_s7  ;;  %1049 = vrot.lane.b32.xlu0 %v1040_v47, %s6912_s6 }
  0xd9   : > { %v1298_v26 = vsel %vm246_vm0, %v1294_v10, %v1295_v11  ;;  %2520 = vmatprep.subr.bf16.mxu1 %v4888_v7 }
  0xda   : > { %v1300_v21 = vsel %vm6883_vm13, %v1287_v25, %v1298_v26  ;;  %v5582_v27 = vpop.permute.xlu1 %1228  ;;  %2521 = vmatpush1.bf16.msra.mxu1 %v4887_v24  ;;  %v5584_v30 = vpop.permute.xlu0 %1120 }
  0xdb   : > { %1310 = vst [vmem:[#allocation2 + $0xe0] sm:$0xcc] %v1300_v21  ;;  %v1234_v32 = vrot.slane %v5582_v27, 4  ;;  %v1128_v14 = vrot.slane %v5584_v30, 4 }
  0xdc   : > { %1292 = vrot.lane.b32.xlu1 %v5303_v23, %s6888_s9  ;;  %1230 = vrot.lane.b32.xlu0 %v5578_v18, %s5150_s8  ;;  %s6944_s9 = smov 27  }
  0xdd   : > { %v1239_v33 = vsel %vm246_vm0, %v1233_v41, %v1234_v32  ;;  %v1134_v20 = vsel %vm246_vm0, %v1127_v34, %v1128_v14  ;;  %v2142_v41 = vld [vmem:[#allocation2 + $0xc0] sm:$0xff] }
  0xde   : > { %v1240_v36 = vsel %vm6882_vm11, %v1227_v40, %v1239_v33  ;;  %v1135_v37 = vsel %vm6900_vm9, %v5548_v28, %v1134_v20  ;;  %v1349_v31 = vpop.permute.xlu1 %1348  ;;  %v5601_v35 = vpop.permute.xlu0 %1290  ;;  %vm6890_vm11 = vcmask 318464   ;;  %vm2101_vm9 = vcmask 138240  }
  0xdf   : > { %1249 = vst [vmem:[#allocation2 + $0xe8] sm:$0x33] %v1240_v36  ;;  %1145 = vst [vmem:[#allocation2 + $0xc8] sm:$0x33] %v1135_v37  ;;  %v1296_v38 = vrot.slane %v5601_v35, 4  ;;  %v1356_v34 = vrot.slane %v1349_v31, 4 }
  0xe0   : > { %1354 = vrot.lane.b32.xlu1 %v5578_v18, %s6886_s10  ;;  %1124 = vrot.lane.b32.xlu0 %v5493_v29, %s5149_s7  ;;  %v5116_v29 = vld [vmem:[%s5208_s20 + $0x12] ss:$0 sps:$4 sm:$0x33]   ;;  %s6943_s10 = smov 29  }
  0xe1   : > { %v1301_v39 = vsel %vm246_vm0, %v1295_v11, %v1296_v38  ;;  %v1556_v10 = vrot.slane %v5116_v29, %v5203_v5  ;;  %v5117_v29 = vld [vmem:[%s5208_s20 + $0x12] ss:$0 sps:$4 sm:$0x33]  }
  0xe2   : > { %v1302_v28 = vsel %vm6883_vm13, %v1289_v0, %v1301_v39  ;;  %v1411_v40 = vpop.permute.xlu1 %1410  ;;  %v1351_v19 = vpop.permute.xlu0 %1350  ;;  %v2146_v46 = vld [vmem:[#allocation2 + $0xe0] sm:$0xff]  ;;  %v5619_v0 = vld.sshfl [vmem:[%s5208_s20 + $0x12] sm:$0x3 pattern:$0x76325410]  ;;  %vm6891_vm13 = vcmask 310272  }
  0xe3   : > { %1311 = vst [vmem:[#allocation2 + $0xe8] sm:$0xcc] %v1302_v28  ;;  %v1357_v17 = vrot.slane %v1351_v19, 4  ;;  %v4894_v47 = vcombine.high %v2142_v41, %v2146_v46  ;;  %v4893_v48 = vcombine.low %v2142_v41, %v2146_v46  ;;  %v1418_v54 = vrot.slane %v1411_v40, 4 }
  0xe4   : > { %1487 = vrot.lane.b32.xlu1 %v5578_v18, %s5154_s12  ;;  %1416 = vrot.lane.b32.xlu0 %v5303_v23, %s6884_s11  ;;  %s6942_s11 = smov 28  }
  0xe5   : > { %v1360_v55 = vsel %vm246_vm0, %v1356_v34, %v1357_v17  ;;  %2481 = vmatprep.subr.bf16.mxu0 %v4894_v47 }
  0xe6   : > { %v1362_v25 = vsel %vm6893_vm10, %v1349_v31, %v1360_v55  ;;  %v1482_v8 = vpop.permute.xlu1 %1481  ;;  %2482 = vmatpush1.bf16.msra.mxu0 %v4893_v48  ;;  %v1413_v9 = vpop.permute.xlu0 %1412  ;;  %v2143_v20 = vld [vmem:[#allocation2 + $0xc8] sm:$0xff] }
  0xe7   : > { %1372 = vst [vmem:[#allocation2 + $0x100] sm:$0x33] %v1362_v25  ;;  %v1419_v11 = vrot.slane %v1413_v9, 4  ;;  %v1491_v7 = vrot.slane %v1482_v8, 4 }
  0xe8   : > { %1489 = vrot.lane.b32.xlu1 %v5619_v0, %s5154_s12  ;;  %1563 = vrot.lane.b32.xlu0 %v5303_v23, %s6914_s13 }
  0xe9   : > { %v1422_v24 = vsel %vm246_vm0, %v1418_v54, %v1419_v11 }
  0xea   : > { %v1424_v26 = vsel %vm6892_vm15, %v1411_v40, %v1422_v24  ;;  %v1558_v21 = vpop.permute.xlu1 %1557  ;;  %v1484_v33 = vpop.permute.xlu0 %1483  ;;  %v2147_v36 = vld [vmem:[#allocation2 + $0xe8] sm:$0xff] }
  0xeb   : > { %1434 = vst [vmem:[#allocation2 + $0x100] sm:$0xcc] %v1424_v26  ;;  %v1492_v37 = vrot.slane %v1484_v33, 4  ;;  %v4896_v31 = vcombine.high %v2143_v20, %v2147_v36  ;;  %v4895_v34 = vcombine.low %v2143_v20, %v2147_v36  ;;  %v1567_v39 = vrot.slane %v1558_v21, 4 }
  0xec   : > { %1638 = vrot.lane.b32.xlu1 %v5578_v18, %s5156_s14  ;;  %1565 = vrot.lane.b32.xlu0 %v1556_v10, %s6914_s13 }
  0xed   : > { %v1496_v28 = vsel %vm246_vm0, %v1491_v7, %v1492_v37  ;;  %2522 = vmatprep.subr.bf16.mxu1 %v4896_v31 }
  0xee   : > { %v1498_v40 = vsel %vm6890_vm11, %v1482_v8, %v1496_v28  ;;  %v5634_v41 = vpop.permute.xlu1 %1352  ;;  %2523 = vmatpush1.bf16.msra.mxu1 %v4895_v34  ;;  %v1560_v46 = vpop.permute.xlu0 %1559 }
  0xef   : > { %1509 = vst [vmem:[#allocation2 + $0x120] sm:$0x33] %v1498_v40  ;;  %v1358_v47 = vrot.slane %v5634_v41, 4  ;;  %v1568_v48 = vrot.slane %v1560_v46, 4 }
  0xf0   : > { %1789 = vrot.lane.b32.xlu1 %v5578_v18, %s6942_s11  ;;  %1714 = vrot.lane.b32.xlu0 %v5303_v23, %s6943_s10 }
  0xf1   : > { %v1363_v54 = vsel %vm246_vm0, %v1357_v17, %v1358_v47  ;;  %v1572_v55 = vsel %vm246_vm0, %v1567_v39, %v1568_v48  ;;  %v5118_v17 = vld [vmem:[%s5208_s20 + $0x12] ss:$0 sps:$4 sm:$0x33]  }
  0xf2   : > { %v1364_v25 = vsel %vm6893_vm10, %v1351_v19, %v1363_v54  ;;  %v1574_v8 = vsel %vm6891_vm13, %v1558_v21, %v1572_v55  ;;  %v5648_v10 = vpop.permute.xlu1 %1485  ;;  %v5650_v7 = vpop.permute.xlu0 %1414  ;;  %v1707_v19 = vrot.slane %v5117_v29, %v5203_v5  ;;  %v2150_v54 = vld [vmem:[#allocation2 + $0x100] sm:$0xff]  ;;  %vm6896_vm10 = vcmask 220160  }
  0xf3   : > { %1373 = vst [vmem:[#allocation2 + $0x108] sm:$0x33] %v1364_v25  ;;  %1585 = vst [vmem:[#allocation2 + $0x120] sm:$0xcc] %v1574_v8  ;;  %v1493_v24 = vrot.slane %v5648_v10, 4  ;;  %v6905_v26 = vrot.slane %v5650_v7, 4 }
  0xf4   : > { %1640 = vrot.lane.b32.xlu1 %v5619_v0, %s5156_s14  ;;  %1865 = vrot.lane.b32.xlu0 %v5303_v23, %s6944_s9 }
  0xf5   : > { %v1499_v21 = vsel %vm246_vm0, %v1492_v37, %v1493_v24  ;;  %v1425_v20 = vsel %vm246_vm0, %v1419_v11, %v6905_v26  ;;  %v1858_v37 = vrot.slane %v5118_v17, %v5203_v5 }
  0xf6   : > { %v1500_v36 = vsel %vm6890_vm11, %v1484_v33, %v1499_v21  ;;  %v1426_v31 = vsel %vm6892_vm15, %v1413_v9, %v1425_v20  ;;  %v1633_v34 = vpop.permute.xlu1 %1632  ;;  %v5668_v39 = vpop.permute.xlu0 %1561  ;;  %vm6898_vm11 = vcmask 302080   ;;  %vm6897_vm15 = vcmask 228352  }
  0xf7   : > { %1510 = vst [vmem:[#allocation2 + $0x128] sm:$0x33] %v1500_v36  ;;  %1435 = vst [vmem:[#allocation2 + $0x108] sm:$0xcc] %v1426_v31  ;;  %v6904_v28 = vrot.slane %v5668_v39, 4  ;;  %v1642_v11 = vrot.slane %v1633_v34, 4 }
  0xf8   : > { %1791 = vrot.lane.b32.xlu1 %v5619_v0, %s6942_s11  ;;  %1716 = vrot.lane.b32.xlu0 %v1707_v19, %s6943_s10  ;;  %v5119_v19 = vld [vmem:[%s5208_s20 + $0x12] ss:$0 sps:$4 sm:$0x33]   ;;  %s6983_s20 = smov 118  }
  0xf9   : > { %v1575_v9 = vsel %vm246_vm0, %v1568_v48, %v6904_v28 }
  0xfa   : > { %v1576_v33 = vsel %vm6891_vm13, %v1560_v46, %v1575_v9  ;;  %v1709_v40 = vpop.permute.xlu1 %1708  ;;  %v1635_v29 = vpop.permute.xlu0 %1634  ;;  %v2154_v55 = vld [vmem:[#allocation2 + $0x120] sm:$0xff]  ;;  %vm6894_vm13 = vcmask 236544  }
  0xfb   : > { %1586 = vst [vmem:[#allocation2 + $0x128] sm:$0xcc] %v1576_v33  ;;  %v1643_v25 = vrot.slane %v1635_v29, 4  ;;  %v4902_v8 = vcombine.high %v2150_v54, %v2154_v55  ;;  %v4901_v21 = vcombine.low %v2150_v54, %v2154_v55  ;;  %v1718_v17 = vrot.slane %v1709_v40, 4 }
  0xfc   : > { %1940 = vrot.lane.b32.xlu1 %v5578_v18, %s6917_s17  ;;  %1867 = vrot.lane.b32.xlu0 %v1858_v37, %s6944_s9  ;;  %v2009_v37 = vrot.slane %v5119_v19, %v5203_v5 }
  0xfd   : > { %v1647_v48 = vsel %vm246_vm0, %v1642_v11, %v1643_v25  ;;  %2483 = vmatprep.subr.bf16.mxu0 %v4902_v8 }
  0xfe   : > { %v1649_v46 = vsel %vm6898_vm11, %v1633_v34, %v1647_v48  ;;  %v1784_v20 = vpop.permute.xlu1 %1783  ;;  %2484 = vmatpush1.bf16.msra.mxu0 %v4901_v21  ;;  %v1711_v36 = vpop.permute.xlu0 %1710  ;;  %v2151_v55 = vld [vmem:[#allocation2 + $0x108] sm:$0xff] }
  0xff   : > { %1660 = vst [vmem:[#allocation2 + $0x140] sm:$0x33] %v1649_v46  ;;  %v1719_v31 = vrot.slane %v1711_v36, 4  ;;  %v1793_v9 = vrot.slane %v1784_v20, 4 }
 0x100   : > { %2091 = vrot.lane.b32.xlu1 %v5578_v18, %s6906_s18  ;;  %2016 = vrot.lane.b32.xlu0 %v5303_v23, %s6915_s19 }
 0x101   : > { %v1723_v11 = vsel %vm246_vm0, %v1718_v17, %v1719_v31 }
 0x102   : > { %v1725_v33 = vsel %vm6894_vm13, %v1709_v40, %v1723_v11  ;;  %v1860_v34 = vpop.permute.xlu1 %1859  ;;  %v1786_v54 = vpop.permute.xlu0 %1785  ;;  %v2155_v8 = vld [vmem:[#allocation2 + $0x128] sm:$0xff] }
 0x103   : > { %1736 = vst [vmem:[#allocation2 + $0x140] sm:$0xcc] %v1725_v33  ;;  %v1794_v21 = vrot.slane %v1786_v54, 4  ;;  %v4904_v48 = vcombine.high %v2151_v55, %v2155_v8  ;;  %v4903_v46 = vcombine.low %v2151_v55, %v2155_v8  ;;  %v1869_v5 = vrot.slane %v1860_v34, 4 }
 0x104   : > { %2018 = vrot.lane.b32.xlu1 %v2009_v37, %s6915_s19  ;;  %1942 = vrot.lane.b32.xlu0 %v5619_v0, %s6917_s17 }
 0x105   : > { %v1798_v23 = vsel %vm246_vm0, %v1793_v9, %v1794_v21  ;;  %2524 = vmatprep.subr.bf16.mxu1 %v4904_v48 }
 0x106   : > { %v1800_v18 = vsel %vm6897_vm15, %v1784_v20, %v1798_v23  ;;  %v5697_v40 = vpop.permute.xlu1 %1636  ;;  %2525 = vmatpush1.bf16.msra.mxu1 %v4903_v46  ;;  %v1862_v19 = vpop.permute.xlu0 %1861  ;;  %v3523_v46 = vld [vmem:[#allocation3 + $0x24] sm:$0xf] }
 0x107   : > { %1811 = vst [vmem:[#allocation2 + $0x160] sm:$0x33] %v1800_v18  ;;  %v6903_v17 = vrot.slane %v5697_v40, 4  ;;  %v1870_v11 = vrot.slane %v1862_v19, 4 }
 0x108   : > { %2093 = vrot.lane.b32.xlu0 %v5619_v0, %s6906_s18  ;;  %3537 = vrot.lane.b32.xlu1 %v3523_v46, %s6914_s13  ;;  %s6982_s18 = smov 119  }
 0x109   : > { %v1650_v37 = vsel %vm246_vm0, %v1643_v25, %v6903_v17  ;;  %v1874_v9 = vsel %vm246_vm0, %v1869_v5, %v1870_v11 }
 0x10a   : > { %v1651_v20 = vsel %vm6898_vm11, %v1635_v29, %v1650_v37  ;;  %v1876_v33 = vsel %vm6896_vm10, %v1860_v34, %v1874_v9  ;;  %v5708_v55 = vpop.permute.xlu1 %1787  ;;  %v5710_v8 = vpop.permute.xlu0 %1712  ;;  %v3482_v34 = vld [vmem:[#allocation3 + $0x24] sm:$0xf]  ;;  %vm263_vm11 = vcmask 848900  }
 0x10b   : > { %1661 = vst [vmem:[#allocation2 + $0x148] sm:$0x33] %v1651_v20  ;;  %1887 = vst [vmem:[#allocation2 + $0x160] sm:$0xcc] %v1876_v33  ;;  %v6902_v48 = vrot.slane %v5708_v55, 4  ;;  %v6895_v0 = vrot.slane %v5710_v8, 4 }
 0x10c   : > { %3496 = vrot.lane.b32.xlu0 %v3482_v34, %s5154_s12  ;;  %v2158_v33 = vld [vmem:[#allocation2 + $0x140] sm:$0xff] }
 0x10d   : > { %v1801_v25 = vsel %vm246_vm0, %v1794_v21, %v6902_v48  ;;  %v1726_v29 = vsel %vm246_vm0, %v1719_v31, %v6895_v0 }
 0x10e   : > { %v1802_v5 = vsel %vm6897_vm15, %v1786_v54, %v1801_v25  ;;  %v1727_v23 = vsel %vm6894_vm13, %v1711_v36, %v1726_v29  ;;  %v1935_v18 = vpop.permute.xlu1 %1934  ;;  %v5722_v37 = vpop.permute.xlu0 %1863  ;;  %vm1950_vm13 = vcmask 154624   ;;  %vm262_vm15 = vcmask 1041408  }
 0x10f   : > { %1812 = vst [vmem:[#allocation2 + $0x168] sm:$0x33] %v1802_v5  ;;  %1737 = vst [vmem:[#allocation2 + $0x148] sm:$0xcc] %v1727_v23  ;;  %v6899_v21 = vrot.slane %v5722_v37, 4  ;;  %v1944_v9 = vrot.slane %v1935_v18, 4 }
 0x110   : > { %vm5741_vm12 = vmor %vm263_vm11, %vm262_vm15  ;;  %vm2450_vm11 = vcmask 1045504   ;;  %vm2446_vm15 = vcmask 883712  }
 0x111   : > { %v1877_v31 = vsel %vm246_vm0, %v1870_v11, %v6899_v21 }
 0x112   : > { %v1878_v54 = vsel %vm6896_vm10, %v1862_v19, %v1877_v31  ;;  %v2011_v20 = vpop.permute.xlu1 %2010  ;;  %v5731_v36 = vpop.permute.xlu0 %1936  ;;  %v2162_v25 = vld [vmem:[#allocation2 + $0x160] sm:$0xff]  ;;  %vm2026_vm10 = vcmask 146432  }
 0x113   : > { %1888 = vst [vmem:[#allocation2 + $0x168] sm:$0xcc] %v1878_v54  ;;  %v1945_v29 = vrot.slane %v5731_v36, 4  ;;  %v4910_v46 = vcombine.high %v2158_v33, %v2162_v25  ;;  %v4909_v34 = vcombine.low %v2158_v33, %v2162_v25  ;;  %v2020_v5 = vrot.slane %v2011_v20, 4 }
 0x115   : > { %v1949_v23 = vsel %vm246_vm0, %v1944_v9, %v1945_v29  ;;  %2485 = vmatprep.subr.bf16.mxu0 %v4910_v46 }
 0x116   : > { %v1951_v0 = vsel %vm1950_vm13, %v1935_v18, %v1949_v23  ;;  %v2086_v11 = vpop.permute.xlu1 %2085  ;;  %2486 = vmatpush1.bf16.msra.mxu0 %v4909_v34  ;;  %v5736_v19 = vpop.permute.xlu0 %2012  ;;  %v2159_v46 = vld [vmem:[#allocation2 + $0x148] sm:$0xff] }
 0x117   : > { %1962 = vst [vmem:[#allocation2 + $0x180] sm:$0x33] %v1951_v0  ;;  %v2021_v31 = vrot.slane %v5736_v19, 4  ;;  %v2095_v54 = vrot.slane %v2086_v11, 4 }
 0x119   : > { %v2025_v21 = vsel %vm246_vm0, %v2020_v5, %v2021_v31 }
 0x11a   : > { %v2027_v33 = vsel %vm2026_vm10, %v2011_v20, %v2025_v21  ;;  %v241_v25 = vpop.permute.xlu1 %240  ;;  %v2088_v9 = vpop.permute.xlu0 %2087  ;;  %v2163_v18 = vld [vmem:[#allocation2 + $0x168] sm:$0xff] }
 0x11b   : > { %2038 = vst [vmem:[#allocation2 + $0x180] sm:$0xcc] %v2027_v33  ;;  %v245_v0 = vrot.slane %v241_v25, 4  ;;  %v2096_v23 = vrot.slane %v2088_v9, 4  ;;  %v4912_v48 = vcombine.high %v2159_v46, %v2163_v18  ;;  %v4911_v17 = vcombine.low %v2159_v46, %v2163_v18 }
 0x11d   : > { %v252_v5 = vsel %vm246_vm0, %v244_v53, %v245_v0  ;;  %v254_v21 = vsel %vm248_vm2, %v241_v25, %v245_v0  ;;  %v2100_v20 = vsel %vm246_vm0, %v2095_v54, %v2096_v23  ;;  %2526 = vmatprep.subr.bf16.mxu1 %v4912_v48 }
 0x11e   : > { %v253_v33 = vsel %vm248_vm2, %v5368_v51, %v252_v5  ;;  %265 = vst.msk [vmem:[#allocation2 + $0x18] sm:$0x33] %vm5741_vm12, %v254_v21  ;;  %v2102_v28 = vsel %vm2101_vm9, %v2086_v11, %v2100_v20  ;;  %v372_v26 = vpop.permute.xlu1 %371  ;;  %2527 = vmatpush1.bf16.msra.mxu1 %v4911_v17  ;;  %v307_v46 = vpop.permute.xlu0 %306 }
 0x11f   : > { %261 = vst [vmem:[#allocation2 + $0x10] sm:$0x33] %v253_v33  ;;  %2113 = vst [vmem:[#allocation2 + $0x1a0] sm:$0x33] %v2102_v28  ;;  %v376_v18 = vrot.slane %v372_v26, 4  ;;  %v311_v53 = vrot.slane %v307_v46, 4 }
 0x121   : > { %v382_v54 = vsel %vm246_vm0, %v375_v61, %v376_v18  ;;  %v384_v48 = vsel %vm378_vm3, %v372_v26, %v376_v18  ;;  %v317_v51 = vsel %vm246_vm0, %v310_v52, %v311_v53  ;;  %v319_v25 = vsel %vm313_vm1, %v307_v46, %v311_v53 }
 0x122   : > { %v383_v17 = vsel %vm378_vm3, %v5386_v59, %v382_v54  ;;  %392 = vst.msk [vmem:[#allocation2 + $0x38] sm:$0x33] %vm5741_vm12, %v384_v48  ;;  %v318_v28 = vsel %vm313_vm1, %v5366_v50, %v317_v51  ;;  %v5771_v61 = vpop.permute.xlu1 %1938  ;;  %v444_v26 = vpop.permute.xlu0 %443  ;;  %v2166_v33 = vld [vmem:[#allocation2 + $0x180] sm:$0xff] }
 0x123   : > { %330 = vst.msk [vmem:[#allocation2 + $0x18] sm:$0xcc] %vm5568_vm14, %v319_v25  ;;  %391 = vst [vmem:[#allocation2 + $0x30] sm:$0x33] %v383_v17  ;;  %v1946_v52 = vrot.slane %v5771_v61, 4  ;;  %v450_v11 = vrot.slane %v444_v26, 4 }
 0x124   : > { %326 = vst [vmem:[#allocation2 + $0x10] sm:$0xcc] %v318_v28 }
 0x125   : > { %v1952_v59 = vsel %vm246_vm0, %v1945_v29, %v1946_v52  ;;  %v457_v0 = vsel %vm246_vm0, %v449_v60, %v450_v11 }
 0x126   : > { %v1953_v50 = vsel %vm1950_vm13, %v5731_v36, %v1952_v59  ;;  %v458_v5 = vsel %vm453_vm4, %v5384_v58, %v457_v0  ;;  %v5784_v21 = vpop.permute.xlu1 %2089  ;;  %v5786_v20 = vpop.permute.xlu0 %2014  ;;  %v2170_v46 = vld [vmem:[#allocation2 + $0x1a0] sm:$0x33] }
 0x127   : > { %1963 = vst [vmem:[#allocation2 + $0x188] sm:$0x33] %v1953_v50  ;;  %467 = vst [vmem:[#allocation2 + $0x30] sm:$0xcc] %v458_v5  ;;  %v2097_v29 = vrot.slane %v5784_v21, 4  ;;  %v2022_v18 = vrot.slane %v5786_v20, 4  ;;  %v4918_v60 = vcombine.high %v2166_v33, %v2170_v46  ;;  %v4917_v53 = vcombine.low %v2166_v33, %v2170_v46 }
 0x129   : > { %v2103_v36 = vsel %vm246_vm0, %v2096_v23, %v2097_v29  ;;  %v2028_v58 = vsel %vm246_vm0, %v2021_v31, %v2022_v18  ;;  %4925 = vmatprep.subr.msk.bf16.mxu0 %vm2450_vm11, %v4918_v60  ;;  %v2452_v54 = vsel %vm2450_vm11, %v4917_v53, 0  ;;  %v5804_v23 = vld [vmem:[%s6868_s1] sm:$0xf] }
 0x12a   : > { %v2104_v48 = vsel %vm2101_vm9, %v2088_v9, %v2103_v36  ;;  %v2029_v51 = vsel %vm2026_vm10, %v5736_v19, %v2028_v58  ;;  %v519_v25 = vpop.permute.xlu1 %518  ;;  %2488 = vmatpush1.bf16.msra.mxu0 %v2452_v54  ;;  %v446_v17 = vpop.permute.xlu0 %445 }
 0x12b   : > { %2114 = vst [vmem:[#allocation2 + $0x1a8] sm:$0x33] %v2104_v48  ;;  %2039 = vst [vmem:[#allocation2 + $0x188] sm:$0xcc] %v2029_v51  ;;  %v525_v31 = vrot.slane %v519_v25, 4  ;;  %v451_v28 = vrot.slane %v446_v17, 4 }
 0x12c   : > { %v2120_v33 = vld [vmem:[#allocation2 + $0x10] sm:$0xff] }
 0x12d   : > { %v532_v9 = vsel %vm246_vm0, %v524_v45, %v525_v31  ;;  %v459_v59 = vsel %vm246_vm0, %v450_v11, %v451_v28  ;;  %4926 = vmatmul.mubr.msk.bf16.vlgmr.msra.gmra.mrb[0].mxu0 %vm2446_vm15, %v5804_v23 }
 0x12e   : > { %v533_v19 = vsel %vm6911_vm5, %v5436_v43, %v532_v9  ;;  %v460_v0 = vsel %vm453_vm4, %v444_v26, %v459_v59  ;;  %v670_v50 = vpop.permute.xlu1 %669  ;;  %v595_v5 = vpop.permute.xlu0 %594  ;;  %v2124_v46 = vld [vmem:[#allocation2 + $0x30] sm:$0xff]  ;;  %2589 = vmatprep.mubr.bf16.mxu0 %v5163_v49 }
 0x12f   : > { %542 = vst [vmem:[#allocation2 + $0x50] sm:$0x33] %v533_v19  ;;  %468 = vst.msk [vmem:[#allocation2 + $0x38] sm:$0xcc] %vm5568_vm14, %v460_v0  ;;  %v676_v45 = vrot.slane %v670_v50, 4  ;;  %v601_v11 = vrot.slane %v595_v5, 4  ;;  %v4874_v60 = vcombine.high %v2120_v33, %v2124_v46  ;;  %v4873_v53 = vcombine.low %v2120_v33, %v2124_v46 }
 0x131   : > { %v683_v43 = vsel %vm246_vm0, %v675_v63, %v676_v45  ;;  %v608_v26 = vsel %vm246_vm0, %v600_v44, %v601_v11  ;;  %2557 = vmatprep.subr.bf16.mxu0 %v4874_v60  ;;  %v2121_v60 = vld [vmem:[#allocation2 + $0x18] sm:$0xff] }
 0x132   : > { %v684_v36 = vsel %vm6908_vm7, %v5459_v57, %v683_v43  ;;  %v609_v58 = vsel %vm6910_vm6, %v5434_v42, %v608_v26  ;;  %v521_v54 = vpop.permute.xlu1 %520  ;;  %2558 = vmatpush1.bf16.msra.mxu0 %v4873_v53  ;;  %v746_v48 = vpop.permute.xlu0 %745  ;;  %v2167_v51 = vld [vmem:[#allocation2 + $0x188] sm:$0xff] }
 0x133   : > { %v2171_v17 = vld [vmem:[#allocation2 + $0x1a8] sm:$0x33]  ;;  %693 = vst [vmem:[#allocation2 + $0x70] sm:$0x33] %v684_v36  ;;  %618 = vst [vmem:[#allocation2 + $0x50] sm:$0xcc] %v609_v58 }
 0x134   : > { %v526_v28 = vrot.slane %v521_v54, 4  ;;  %v752_v63 = vrot.slane %v746_v48, 4  ;;  %v4920_v9 = vcombine.high %v2167_v51, %v2171_v17  ;;  %v4919_v59 = vcombine.low %v2167_v51, %v2171_v17 }
 0x136   : > { %v534_v44 = vsel %vm246_vm0, %v525_v31, %v526_v28  ;;  %v759_v57 = vsel %vm246_vm0, %v751_v62, %v752_v63  ;;  %4927 = vmatprep.subr.msk.bf16.mxu1 %vm2450_vm11, %v4920_v9  ;;  %v2458_v42 = vsel %vm2450_vm11, %v4919_v59, 0  ;;  %v672_v33 = vpop.permute.xlu1 %671  ;;  %v597_v46 = vpop.permute.xlu0 %596  ;;  %v2125_v53 = vld [vmem:[#allocation2 + $0x38] sm:$0xff] }
 0x137   : > { %v535_v19 = vsel %vm6911_vm5, %v519_v25, %v534_v44  ;;  %v760_v0 = vsel %vm6909_vm8, %v5457_v56, %v759_v57  ;;  %2529 = vmatpush1.bf16.msra.mxu1 %v2458_v42  ;;  %v677_v31 = vrot.slane %v672_v33, 4  ;;  %v602_v62 = vrot.slane %v597_v46, 4 }
 0x138   : > { %543 = vst.msk [vmem:[#allocation2 + $0x58] sm:$0x33] %vm5741_vm12, %v535_v19  ;;  %769 = vst [vmem:[#allocation2 + $0x70] sm:$0xcc] %v760_v0  ;;  %v4876_v43 = vcombine.high %v2121_v60, %v2125_v53  ;;  %v4875_v26 = vcombine.low %v2121_v60, %v2125_v53 }
 0x139   : > { %v685_v36 = vsel %vm246_vm0, %v676_v45, %v677_v31  ;;  %v610_v25 = vsel %vm246_vm0, %v601_v11, %v602_v62 }
 0x13a   : > { %2598 = vmatprep.subr.bf16.mxu1 %v4876_v43  ;;  %4928 = vmatmul.mubr.msk.bf16.vlgmr.msra.gmra.mrb[0].mxu1 %vm2446_vm15, %v5804_v23  ;;  %v686_v56 = vsel %vm6908_vm7, %v670_v50, %v685_v36  ;;  %v611_v58 = vsel %vm6910_vm6, %v595_v5, %v610_v25  ;;  %v821_v54 = vpop.permute.xlu1 %820  ;;  %v748_v51 = vpop.permute.xlu0 %747  ;;  %vm6947_vm7 = vcmask 728064   ;;  %v2128_v59 = vld [vmem:[#allocation2 + $0x50] sm:$0xff]  ;;  %vm6950_vm6 = vcmask 728064  }
 0x13b   : > { %2599 = vmatpush1.bf16.msra.mxu1 %v4875_v26  ;;  %2630 = vmatprep.mubr.bf16.mxu1 %v5163_v49  ;;  %694 = vst.msk [vmem:[#allocation2 + $0x78] sm:$0x33] %vm5741_vm12, %v686_v56  ;;  %v827_v45 = vrot.slane %v821_v54, 4  ;;  %v753_v11 = vrot.slane %v748_v51, 4 }
 0x13c   : > { %619 = vst.msk [vmem:[#allocation2 + $0x58] sm:$0xcc] %vm5568_vm14, %v611_v58 }
 0x13d   : > { %v834_v17 = vsel %vm246_vm0, %v826_v6, %v827_v45  ;;  %v761_v50 = vsel %vm246_vm0, %v752_v63, %v753_v11 }
 0x13e   : > { %v835_v5 = vsel %vm6947_vm7, %v5512_v2, %v834_v17  ;;  %v762_v28 = vsel %vm6909_vm8, %v746_v48, %v761_v50  ;;  %v972_v49 = vpop.permute.xlu1 %971  ;;  %v897_v9 = vpop.permute.xlu0 %896  ;;  %vm6948_vm7 = vcmask 80896   ;;  %vm6949_vm8 = vcmask 89088  }
 0x13f   : > { %v2132_v44 = vld [vmem:[#allocation2 + $0x70] sm:$0xff]  ;;  %844 = vst [vmem:[#allocation2 + $0x90] sm:$0x33] %v835_v5  ;;  %770 = vst.msk [vmem:[#allocation2 + $0x78] sm:$0xcc] %vm5568_vm14, %v762_v28  ;;  %v978_v57 = vrot.slane %v972_v49, 4 }
 0x140   : > { %v903_v42 = vrot.slane %v897_v9, 4  ;;  %v4882_v19 = vcombine.high %v2128_v59, %v2132_v44  ;;  %v4881_v0 = vcombine.low %v2128_v59, %v2132_v44 }
 0x141   : > { %v985_v6 = vsel %vm246_vm0, %v977_v16, %v978_v57 }
 0x142   : > { %v910_v2 = vsel %vm246_vm0, %v902_v4, %v903_v42  ;;  %2559 = vmatprep.subr.bf16.mxu0 %v4882_v19  ;;  %v986_v48 = vsel %vm6948_vm7, %v5530_v13, %v985_v6  ;;  %v823_v33 = vpop.permute.xlu1 %822  ;;  %v1048_v46 = vpop.permute.xlu0 %1047  ;;  %vm6951_vm7 = vcmask 72704  }
 0x143   : > { %v911_v63 = vsel %vm6949_vm8, %v5510_v1, %v910_v2  ;;  %2560 = vmatpush1.bf16.msra.mxu0 %v4881_v0  ;;  %995 = vst [vmem:[#allocation2 + $0xb0] sm:$0x33] %v986_v48  ;;  %v828_v60 = vrot.slane %v823_v33, 4  ;;  %v1054_v53 = vrot.slane %v1048_v46, 4  ;;  %v2129_v43 = vld [vmem:[#allocation2 + $0x58] sm:$0xff] }
 0x144   : > { %920 = vst [vmem:[#allocation2 + $0x90] sm:$0xcc] %v911_v63 }
 0x145   : > { %v836_v16 = vsel %vm246_vm0, %v827_v45, %v828_v60  ;;  %v1061_v4 = vsel %vm246_vm0, %v1053_v15, %v1054_v53 }
 0x146   : > { %v837_v31 = vsel %vm6950_vm6, %v821_v54, %v836_v16  ;;  %v1062_v13 = vsel %vm6951_vm7, %v5528_v12, %v1061_v4  ;;  %v974_v62 = vpop.permute.xlu1 %973  ;;  %v899_v1 = vpop.permute.xlu0 %898  ;;  %v2133_v26 = vld [vmem:[#allocation2 + $0x78] sm:$0xff]  ;;  %vm6952_vm6 = vcmask 80896   ;;  %vm6953_vm7 = vcmask 7168  }
 0x147   : > { %845 = vst.msk [vmem:[#allocation2 + $0x98] sm:$0x33] %vm5741_vm12, %v837_v31  ;;  %1071 = vst [vmem:[#allocation2 + $0xb0] sm:$0xcc] %v1062_v13  ;;  %v979_v36 = vrot.slane %v974_v62, 4  ;;  %v904_v25 = vrot.slane %v899_v1, 4  ;;  %v4884_v56 = vcombine.high %v2129_v43, %v2133_v26  ;;  %v4883_v58 = vcombine.low %v2129_v43, %v2133_v26 }
 0x149   : > { %v987_v51 = vsel %vm246_vm0, %v978_v57, %v979_v36  ;;  %v912_v15 = vsel %vm246_vm0, %v903_v42, %v904_v25  ;;  %2600 = vmatprep.subr.bf16.mxu1 %v4884_v56  ;;  %v6962_v56 = vrot.slane %v5650_v7, 4 }
 0x14a   : > { %v988_v54 = vsel %vm6952_vm6, %v972_v49, %v987_v51  ;;  %v913_v12 = vsel %vm6949_vm8, %v897_v9, %v912_v15  ;;  %v1123_v45 = vpop.permute.xlu1 %1122  ;;  %2601 = vmatpush1.bf16.msra.mxu1 %v4883_v58  ;;  %v1050_v11 = vpop.permute.xlu0 %1049  ;;  %vm6954_vm6 = vcmask 72704   ;;  %vm6955_vm8 = vcmask 973824  }
 0x14b   : > { %996 = vst.msk [vmem:[#allocation2 + $0xb8] sm:$0x33] %vm5741_vm12, %v988_v54  ;;  %v1129_v17 = vrot.slane %v1123_v45, 4  ;;  %v1055_v50 = vrot.slane %v1050_v11, 4  ;;  %v2136_v57 = vld [vmem:[#allocation2 + $0x90] sm:$0xff] }
 0x14c   : > { %921 = vst.msk [vmem:[#allocation2 + $0x98] sm:$0xcc] %vm5568_vm14, %v913_v12 }
 0x14d   : > { %v1136_v5 = vsel %vm246_vm0, %v1128_v14, %v1129_v17  ;;  %v1063_v28 = vsel %vm246_vm0, %v1054_v53, %v1055_v50 }
 0x14e   : > { %v1137_v49 = vsel %vm6953_vm7, %v5584_v30, %v1136_v5  ;;  %v1064_v9 = vsel %vm6954_vm6, %v1048_v46, %v1063_v28  ;;  %v1293_v59 = vpop.permute.xlu1 %1292  ;;  %v1231_v44 = vpop.permute.xlu0 %1230  ;;  %v2140_v42 = vld [vmem:[#allocation2 + $0xb0] sm:$0xff]  ;;  %vm6956_vm7 = vcmask 1039360   ;;  %vm6957_vm6 = vmmov %vm6955_vm8 }
 0x14f   : > { %1146 = vst [vmem:[#allocation2 + $0xd0] sm:$0x33] %v1137_v49  ;;  %1072 = vst.msk [vmem:[#allocation2 + $0xb8] sm:$0xcc] %vm5568_vm14, %v1064_v9  ;;  %v1297_v19 = vrot.slane %v1293_v59, 4  ;;  %v1235_v0 = vrot.slane %v1231_v44, 4  ;;  %v4890_v6 = vcombine.high %v2136_v57, %v2140_v42  ;;  %v4889_v2 = vcombine.low %v2136_v57, %v2140_v42 }
 0x150   : > { %vm6958_vm5 = vmmov %vm6956_vm7 }
 0x151   : > { %v1303_v14 = vsel %vm246_vm0, %v1296_v38, %v1297_v19  ;;  %v1305_v30 = vsel %vm6955_vm8, %v1293_v59, %v1297_v19  ;;  %v1241_v48 = vsel %vm246_vm0, %v1234_v32, %v1235_v0  ;;  %v1243_v63 = vsel %vm6956_vm7, %v1231_v44, %v1235_v0  ;;  %2561 = vmatprep.subr.bf16.mxu0 %v4890_v6 }
 0x152   : > { %v1304_v33 = vsel %vm6957_vm6, %v5601_v35, %v1303_v14  ;;  %1313 = vst.msk [vmem:[#allocation2 + $0xf8] sm:$0xcc] %vm5568_vm14, %v1305_v30  ;;  %v1242_v46 = vsel %vm6958_vm5, %v5582_v27, %v1241_v48  ;;  %v1355_v38 = vpop.permute.xlu1 %1354  ;;  %2562 = vmatpush1.bf16.msra.mxu0 %v4889_v2  ;;  %v1125_v60 = vpop.permute.xlu0 %1124  ;;  %vm6959_vm8 = vcmask 965632   ;;  %vm6961_vm7 = vcmask 7168  }
 0x153   : > { %1251 = vst.msk [vmem:[#allocation2 + $0xf8] sm:$0x33] %vm5741_vm12, %v1243_v63  ;;  %1312 = vst [vmem:[#allocation2 + $0xf0] sm:$0xcc] %v1304_v33  ;;  %v1359_v32 = vrot.slane %v1355_v38, 4  ;;  %v1130_v53 = vrot.slane %v1125_v60, 4 }
 0x154   : > { %1250 = vst [vmem:[#allocation2 + $0xf0] sm:$0x33] %v1242_v46  ;;  %vm6960_vm5 = vmmov %vm6959_vm8  ;;  %v2137_v1 = vld [vmem:[#allocation2 + $0x98] sm:$0xff]  ;;  %vm6963_vm6 = vcmask 957440   ;;  %v6969_v30 = vrot.slane %v5697_v40, 4 }
 0x155   : > { %v1365_v35 = vsel %vm246_vm0, %v1358_v47, %v1359_v32  ;;  %v1367_v16 = vsel %vm6959_vm8, %v1355_v38, %v1359_v32  ;;  %v1138_v4 = vsel %vm246_vm0, %v1129_v17, %v1130_v53  ;;  %vm6964_vm8 = vcmask 318464  }
 0x156   : > { %v1366_v27 = vsel %vm6960_vm5, %v5634_v41, %v1365_v35  ;;  %1375 = vst.msk [vmem:[#allocation2 + $0x118] sm:$0x33] %vm5741_vm12, %v1367_v16  ;;  %v1139_v31 = vsel %vm6961_vm7, %v1123_v45, %v1138_v4  ;;  %v1488_v13 = vpop.permute.xlu1 %1487  ;;  %v1417_v62 = vpop.permute.xlu0 %1416  ;;  %v2141_v43 = vld [vmem:[#allocation2 + $0xb8] sm:$0xff]  ;;  %vm6965_vm5 = vmmov %vm6963_vm6  ;;  %v6972_v53 = vrot.slane %v5708_v55, 4  ;;  %v6973_v16 = vrot.slane %v5710_v8, 4 }
 0x157   : > { %1374 = vst [vmem:[#allocation2 + $0x110] sm:$0x33] %v1366_v27  ;;  %1147 = vst.msk [vmem:[#allocation2 + $0xd8] sm:$0x33] %vm5741_vm12, %v1139_v31  ;;  %v1494_v47 = vrot.slane %v1488_v13, 4  ;;  %v1421_v26 = vrot.slane %v1417_v62, 4  ;;  %v4892_v36 = vcombine.high %v2137_v1, %v2141_v43  ;;  %v4891_v25 = vcombine.low %v2137_v1, %v2141_v43 }
 0x158   : > { %vm6967_vm7 = vmmov %vm6964_vm8 }
 0x159   : > { %v1501_v41 = vsel %vm246_vm0, %v1493_v24, %v1494_v47  ;;  %v1427_v58 = vsel %vm246_vm0, %v6962_v56, %v1421_v26  ;;  %v1429_v51 = vsel %vm6963_vm6, %v1417_v62, %v1421_v26  ;;  %2602 = vmatprep.subr.bf16.mxu1 %v4892_v36  ;;  %v2144_v24 = vld [vmem:[#allocation2 + $0xd0] sm:$0xff]  ;;  %vm6968_vm6 = vcmask 310272  }
 0x15a   : > { %v1502_v15 = vsel %vm6964_vm8, %v5648_v10, %v1501_v41  ;;  %v1428_v54 = vsel %vm6965_vm5, %v5650_v7, %v1427_v58  ;;  %1437 = vst.msk [vmem:[#allocation2 + $0x118] sm:$0xcc] %vm5568_vm14, %v1429_v51  ;;  %v1490_v12 = vpop.permute.xlu1 %1489  ;;  %2603 = vmatpush1.bf16.msra.mxu1 %v4891_v25  ;;  %v1564_v45 = vpop.permute.xlu0 %1563  ;;  %v6966_v10 = vrot.slane %v5668_v39, 4  ;;  %v2149_v19 = vld [vmem:[#allocation2 + $0xf8] sm:$0xff]  ;;  %vm6970_vm8 = vcmask 302080   ;;  %vm6971_vm5 = vmmov %vm6968_vm6 }
 0x15b   : > { %v2148_v11 = vld [vmem:[#allocation2 + $0xf0] sm:$0xff]  ;;  %1511 = vst [vmem:[#allocation2 + $0x130] sm:$0x33] %v1502_v15  ;;  %1436 = vst [vmem:[#allocation2 + $0x110] sm:$0xcc] %v1428_v54  ;;  %v1495_v17 = vrot.slane %v1490_v12, 4 }
 0x15c   : > { %v1570_v50 = vrot.slane %v1564_v45, 4  ;;  %v4898_v5 = vcombine.high %v2144_v24, %v2148_v11  ;;  %v4897_v28 = vcombine.low %v2144_v24, %v2148_v11  ;;  %v6976_v41 = vrot.slane %v5722_v37, 4 }
 0x15d   : > { %v1503_v49 = vsel %vm246_vm0, %v1494_v47, %v1495_v17 }
 0x15e   : > { %v1577_v7 = vsel %vm246_vm0, %v6966_v10, %v1570_v50  ;;  %2563 = vmatprep.subr.bf16.mxu0 %v4898_v5  ;;  %v1504_v9 = vsel %vm6967_vm7, %v1488_v13, %v1503_v49  ;;  %v1639_v44 = vpop.permute.xlu1 %1638  ;;  %v1566_v57 = vpop.permute.xlu0 %1565  ;;  %v2145_v42 = vld [vmem:[#allocation2 + $0xd8] sm:$0xff]  ;;  %vm6974_vm7 = vcmask 228352  }
 0x15f   : > { %v1578_v59 = vsel %vm6968_vm6, %v5668_v39, %v1577_v7  ;;  %2564 = vmatpush1.bf16.msra.mxu0 %v4897_v28  ;;  %1512 = vst.msk [vmem:[#allocation2 + $0x138] sm:$0x33] %vm5741_vm12, %v1504_v9  ;;  %v1645_v0 = vrot.slane %v1639_v44, 4  ;;  %v1571_v6 = vrot.slane %v1566_v57, 4  ;;  %v4900_v2 = vcombine.high %v2145_v42, %v2149_v19 }
 0x160   : > { %1587 = vst [vmem:[#allocation2 + $0x130] sm:$0xcc] %v1578_v59  ;;  %v4899_v14 = vcombine.low %v2145_v42, %v2149_v19  ;;  %vm6975_vm6 = vcmask 236544  }
 0x161   : > { %v1652_v48 = vsel %vm246_vm0, %v6969_v30, %v1645_v0  ;;  %v1579_v63 = vsel %vm246_vm0, %v1570_v50, %v1571_v6  ;;  %2604 = vmatprep.subr.bf16.mxu1 %v4900_v2  ;;  %v2153_v15 = vld [vmem:[#allocation2 + $0x118] sm:$0xff] }
 0x162   : > { %v1653_v39 = vsel %vm6970_vm8, %v5697_v40, %v1652_v48  ;;  %v1580_v33 = vsel %vm6971_vm5, %v1564_v45, %v1579_v63  ;;  %v1790_v46 = vpop.permute.xlu1 %1789  ;;  %2605 = vmatpush1.bf16.msra.mxu1 %v4899_v14  ;;  %v1715_v38 = vpop.permute.xlu0 %1714  ;;  %v2152_v62 = vld [vmem:[#allocation2 + $0x110] sm:$0xff]  ;;  %vm6977_vm5 = vcmask 220160  }
 0x163   : > { %1662 = vst [vmem:[#allocation2 + $0x150] sm:$0x33] %v1653_v39  ;;  %1588 = vst.msk [vmem:[#allocation2 + $0x138] sm:$0xcc] %vm5568_vm14, %v1580_v33  ;;  %v1796_v60 = vrot.slane %v1790_v46, 4  ;;  %v1721_v32 = vrot.slane %v1715_v38, 4 }
 0x165   : > { %v1803_v35 = vsel %vm246_vm0, %v6972_v53, %v1796_v60  ;;  %v1728_v4 = vsel %vm246_vm0, %v6973_v16, %v1721_v32 }
 0x166   : > { %v1804_v40 = vsel %vm6974_vm7, %v5708_v55, %v1803_v35  ;;  %v1729_v27 = vsel %vm6975_vm6, %v5710_v8, %v1728_v4  ;;  %v1641_v31 = vpop.permute.xlu1 %1640  ;;  %v1866_v13 = vpop.permute.xlu0 %1865 }
 0x167   : > { %v2156_v1 = vld [vmem:[#allocation2 + $0x130] sm:$0xff]  ;;  %1813 = vst [vmem:[#allocation2 + $0x170] sm:$0x33] %v1804_v40  ;;  %1738 = vst [vmem:[#allocation2 + $0x150] sm:$0xcc] %v1729_v27  ;;  %v1646_v43 = vrot.slane %v1641_v31, 4 }
 0x168   : > { %v1872_v47 = vrot.slane %v1866_v13, 4  ;;  %v4906_v26 = vcombine.high %v2152_v62, %v2156_v1  ;;  %v4905_v36 = vcombine.low %v2152_v62, %v2156_v1 }
 0x169   : > { %v1654_v25 = vsel %vm246_vm0, %v1645_v0, %v1646_v43 }
 0x16a   : > { %v1879_v56 = vsel %vm246_vm0, %v6976_v41, %v1872_v47  ;;  %2565 = vmatprep.subr.bf16.mxu0 %v4906_v26  ;;  %v1655_v55 = vsel %vm6970_vm8, %v1639_v44, %v1654_v25  ;;  %v1792_v58 = vpop.permute.xlu1 %1791  ;;  %v1717_v51 = vpop.permute.xlu0 %1716  ;;  %v2157_v54 = vld [vmem:[#allocation2 + $0x138] sm:$0xff]  ;;  %vm6978_vm8 = vmmov %vm6977_vm5  ;;  %v3564_v25 = vld [vmem:[#allocation3 + $0x24] sm:$0xf] }
 0x16b   : > { %v1880_v8 = vsel %vm6977_vm5, %v5722_v37, %v1879_v56  ;;  %2566 = vmatpush1.bf16.msra.mxu0 %v4905_v36  ;;  %1663 = vst.msk [vmem:[#allocation2 + $0x158] sm:$0x33] %vm5741_vm12, %v1655_v55  ;;  %v1797_v12 = vrot.slane %v1792_v58, 4  ;;  %v1722_v45 = vrot.slane %v1717_v51, 4  ;;  %v4908_v24 = vcombine.high %v2153_v15, %v2157_v54  ;;  %3578 = vrot.lane.b32.xlu0 %v3564_v25, %s5156_s14  ;;  %v3687_v55 = vld [vmem:[#allocation3 + $0x24] sm:$0xf] }
 0x16c   : > { %1889 = vst [vmem:[#allocation2 + $0x170] sm:$0xcc] %v1880_v8  ;;  %v4907_v11 = vcombine.low %v2153_v15, %v2157_v54  ;;  %v3646_v8 = vld [vmem:[#allocation3 + $0x24] sm:$0xf]  ;;  %v2642_v51 = vsub.s32 0, %v5199_v3  ;;  %v2646_v54 = vsub.s32 1, %v5199_v3 }
 0x16d   : > { %v1805_v17 = vsel %vm246_vm0, %v1796_v60, %v1797_v12  ;;  %v1730_v50 = vsel %vm246_vm0, %v1721_v32, %v1722_v45  ;;  %2606 = vmatprep.subr.bf16.mxu1 %v4908_v24  ;;  %v3728_v58 = vld [vmem:[#allocation3 + $0x24] sm:$0xf] }
 0x16e   : > { %v1806_v37 = vsel %vm6974_vm7, %v1790_v46, %v1805_v17  ;;  %v1731_v5 = vsel %vm6975_vm6, %v1715_v38, %v1730_v50  ;;  %v1941_v28 = vpop.permute.xlu1 %1940  ;;  %2607 = vmatpush1.bf16.msra.mxu1 %v4907_v11  ;;  %v1868_v49 = vpop.permute.xlu0 %1867  ;;  %v2160_v0 = vld [vmem:[#allocation2 + $0x150] sm:$0xff]  ;;  %v199_v15 = vld [vmem:[%s6870_s3] sm:$0xff] }
 0x16f   : > { %1814 = vst.msk [vmem:[#allocation2 + $0x178] sm:$0x33] %vm5741_vm12, %v1806_v37  ;;  %v1947_v10 = vrot.slane %v1941_v28, 4  ;;  %v1873_v7 = vrot.slane %v1868_v49, 4  ;;  %3660 = vrot.lane.b32.xlu0 %v3646_v8, %s6942_s11  ;;  %v6030_v12 = vrot.slane %v199_v15, %v2642_v51 }
 0x170   : > { %1739 = vst.msk [vmem:[#allocation2 + $0x158] sm:$0xcc] %vm5568_vm14, %v1731_v5 }
 0x171   : > { %v1954_v9 = vsel %vm246_vm0, %v1946_v52, %v1947_v10  ;;  %v1881_v59 = vsel %vm246_vm0, %v1872_v47, %v1873_v7  ;;  %v3605_v47 = vld [vmem:[#allocation3 + $0x24] sm:$0xf] }
 0x172   : > { %v1955_v44 = vsel %vm1950_vm13, %v5771_v61, %v1954_v9  ;;  %v1882_v57 = vsel %vm6978_vm8, %v1866_v13, %v1881_v59  ;;  %v2092_v42 = vpop.permute.xlu1 %2091  ;;  %v2017_v19 = vpop.permute.xlu0 %2016  ;;  %3619 = vrot.lane.b32.xlu1 %v3605_v47, %s6943_s10  ;;  %v2654_v9 = vsub.s32 3, %v5199_v3 }
 0x173   : > { %v2164_v6 = vld [vmem:[#allocation2 + $0x170] sm:$0xff]  ;;  %1964 = vst [vmem:[#allocation2 + $0x190] sm:$0x33] %v1955_v44  ;;  %1890 = vst.msk [vmem:[#allocation2 + $0x178] sm:$0xcc] %vm5568_vm14, %v1882_v57  ;;  %v2098_v2 = vrot.slane %v2092_v42, 4  ;;  %3742 = vrot.lane.b32.xlu0 %v3728_v58, %s6917_s17 }
 0x174   : > { %v2023_v14 = vrot.slane %v2017_v19, 4  ;;  %v4914_v30 = vcombine.high %v2160_v0, %v2164_v6  ;;  %v4913_v48 = vcombine.low %v2160_v0, %v2164_v6  ;;  %v6046_v44 = vrot.slane %v199_v15, %v2654_v9 }
 0x175   : > { %v2105_v52 = vsel %vm246_vm0, %v2097_v29, %v2098_v2 }
 0x176   : > { %v2030_v61 = vsel %vm246_vm0, %v2022_v18, %v2023_v14  ;;  %2567 = vmatprep.subr.bf16.mxu0 %v4914_v30  ;;  %v2106_v63 = vsel %vm2101_vm9, %v5784_v21, %v2105_v52  ;;  %v2019_v33 = vpop.permute.xlu1 %2018  ;;  %v1943_v46 = vpop.permute.xlu0 %1942  ;;  %3701 = vrot.lane.b32.xlu1 %v3687_v55, %s6944_s9 }
 0x177   : > { %v2031_v39 = vsel %vm2026_vm10, %v5786_v20, %v2030_v61  ;;  %2568 = vmatpush1.bf16.msra.mxu0 %v4913_v48  ;;  %2115 = vst [vmem:[#allocation2 + $0x1b0] sm:$0x33] %v2106_v63  ;;  %v2024_v38 = vrot.slane %v2019_v33, 4  ;;  %v1948_v60 = vrot.slane %v1943_v46, 4  ;;  %v2161_v21 = vld [vmem:[#allocation2 + $0x158] sm:$0xff]  ;;  %v2662_v33 = vsub.s32 5, %v5199_v3 }
 0x178   : > { %2040 = vst [vmem:[#allocation2 + $0x190] sm:$0xcc] %v2031_v39  ;;  %v2658_v39 = vsub.s32 4, %v5199_v3 }
 0x179   : > { %v2032_v29 = vsel %vm246_vm0, %v2023_v14, %v2024_v38  ;;  %v1956_v32 = vsel %vm246_vm0, %v1947_v10, %v1948_v60  ;;  %v2650_v10 = vsub.s32 2, %v5199_v3  ;;  %v6060_v38 = vrot.slane %v199_v15, %v2662_v33 }
 0x17a   : > { %v2033_v18 = vsel %vm2026_vm10, %v2017_v19, %v2032_v29  ;;  %v1957_v53 = vsel %vm1950_vm13, %v1941_v28, %v1956_v32  ;;  %v2094_v35 = vpop.permute.xlu0 %2093  ;;  %v2165_v16 = vld [vmem:[#allocation2 + $0x178] sm:$0xff]  ;;  %v6058_v46 = vrot.slane %v199_v15, %v2658_v39 }
 0x17b   : > { %2041 = vst.msk [vmem:[#allocation2 + $0x198] sm:$0xcc] %vm5568_vm14, %v2033_v18  ;;  %v2099_v20 = vrot.slane %v2094_v35, 4  ;;  %v4916_v4 = vcombine.high %v2161_v21, %v2165_v16  ;;  %v4915_v40 = vcombine.low %v2161_v21, %v2165_v16  ;;  %v6044_v59 = vrot.slane %v199_v15, %v2650_v10 }
 0x17c   : > { %1965 = vst.msk [vmem:[#allocation2 + $0x198] sm:$0x33] %vm5741_vm12, %v1957_v53  ;;  %v2666_v18 = vsub.s32 6, %v5199_v3  ;;  %v2670_v21 = vsub.s32 7, %v5199_v3 }
 0x17d   : > { %v2107_v27 = vsel %vm246_vm0, %v2098_v2, %v2099_v20  ;;  %2608 = vmatprep.subr.bf16.mxu1 %v4916_v4 }
 0x17e   : > { %v2108_v31 = vsel %vm2101_vm9, %v2092_v42, %v2107_v27  ;;  %2609 = vmatpush1.bf16.msra.mxu1 %v4915_v40  ;;  %v2172_v62 = vld [vmem:[#allocation2 + $0x1b0] sm:$0x33] }
 0x17f   : > { %v2168_v13 = vld [vmem:[#allocation2 + $0x190] sm:$0xff]  ;;  %2116 = vst.msk [vmem:[#allocation2 + $0x1b8] sm:$0x33] %vm5741_vm12, %v2108_v31  ;;  %vm2694_vm12 = vcmask 850944  }
 0x180   : > { %v4922_v1 = vcombine.high %v2168_v13, %v2172_v62  ;;  %v4921_v22 = vcombine.low %v2168_v13, %v2172_v62  ;;  %v6069_v13 = vrot.slane %v199_v15, %v2666_v18  ;;  %v6071_v62 = vrot.slane %v199_v15, %v2670_v21 }
 0x182   : > { %4929 = vmatprep.subr.msk.bf16.mxu0 %vm2450_vm11, %v4922_v1  ;;  %v2464_v43 = vsel %vm2450_vm11, %v4921_v22, 0 }
 0x183   : > { %2570 = vmatpush1.bf16.msra.mxu0 %v2464_v43  ;;  %v2169_v26 = vld [vmem:[#allocation2 + $0x198] sm:$0xff] }
 0x186   : > { %4930 = vmatmul.mubr.msk.bf16.vlgmr.msra.gmra.mrb[4].mxu0 %vm2446_vm15, %v5804_v23  ;;  %v2173_v36 = vld [vmem:[#allocation2 + $0x1b8] sm:$0x33] }
 0x187   : > { %v4924_v41 = vcombine.high %v2169_v26, %v2173_v36  ;;  %v4923_v56 = vcombine.low %v2169_v26, %v2173_v36 }
 0x189   : > { %4931 = vmatprep.subr.msk.bf16.mxu1 %vm2450_vm11, %v4924_v41  ;;  %v2470_v34 = vsel %vm2450_vm11, %v4923_v56, 0 }
 0x18a   : > { %2611 = vmatpush1.bf16.msra.mxu1 %v2470_v34 }
 0x18d   : > { %4932 = vmatmul.mubr.msk.bf16.vlgmr.msra.gmra.mrb[4].mxu1 %vm2446_vm15, %v5804_v23  ;;  %v6032_v23 = vrot.slane %v199_v15, %v2646_v54  ;;  %v6077_v15 = vpop.permute.xlu0 %3496  ;;  %v6079_v54 = vpop.permute.xlu1 %3537 }
 0x200   : > { %v6034_v45 = vpop.f32.mrb[0].mxu0 }
 0x201   : > { %v2680_v24 = vmul.f32 %v6030_v12, %v6034_v45  ;;  %v6038_v11 = vpop.f32.mrb[1].mxu0 }
 0x202   : > { %v2681_v17 = vmul.f32 %v6032_v23, %v6038_v11  ;;  %v2513_v50 = vpop.f32.mrb[2].mxu0 }
 0x203   : > { %v2699_v37 = vmul.f32 %v2680_v24, %v2680_v24  ;;  %v2514_v5 = vpop.f32.mrb[3].mxu0 }
 0x204   : > { %v2688_v28 = vadd.f32 %v2681_v17, %v2680_v24  ;;  %v2700_v49 = vmul.f32 %v2681_v17, %v2681_v17  ;;  %v6081_v24 = vpop.permute.xlu0 %3578  ;;  %v6083_v17 = vpop.permute.xlu1 %3619 }
 0x206   : > { %v2707_v7 = vadd.f32 %v2700_v49, %v2699_v37 }
 0x208   : > { %v6085_v50 = vpop.permute.xlu0 %3660  ;;  %v6087_v37 = vpop.permute.xlu1 %3701 }
 0x20c   : > { %v6089_v5 = vpop.permute.xlu0 %3742 }
 0x20d   : > { %v6048_v57 = vpop.f32.mrb[0].mxu1 }
 0x20e   : > { %v2682_v42 = vmul.f32 %v6044_v59, %v6048_v57  ;;  %v6052_v19 = vpop.f32.mrb[1].mxu1 }
 0x20f   : > { %v2683_v0 = vmul.f32 %v6046_v44, %v6052_v19  ;;  %v2554_v6 = vpop.f32.mrb[2].mxu1 }
 0x210   : > { %v2689_v2 = vadd.f32 %v2688_v28, %v2682_v42  ;;  %v2701_v14 = vmul.f32 %v2682_v42, %v2682_v42  ;;  %v2555_v30 = vpop.f32.mrb[3].mxu1 }
 0x211   : > { %v2702_v48 = vmul.f32 %v2683_v0, %v2683_v0 }
 0x212   : > { %v2708_v52 = vadd.f32 %v2707_v7, %v2701_v14  ;;  %v2690_v61 = vadd.f32 %v2689_v2, %v2683_v0 }
 0x214   : > { %v2709_v63 = vadd.f32 %v2708_v52, %v2702_v48 }
 0x259   : > { %v6062_v60 = vpop.f32.mrb[4].mxu0 }
 0x25a   : > { %v2684_v29 = vmul.f32 %v6058_v46, %v6062_v60  ;;  %v2593_v32 = vpop.f32.mrb[5].mxu0 }
 0x25b   : > { %v2685_v53 = vmul.f32 %v6060_v38, %v2593_v32  ;;  %v2595_v35 = vpop.f32.mrb[6].mxu0 }
 0x25c   : > { %v2691_v16 = vadd.f32 %v2690_v61, %v2684_v29  ;;  %v2703_v20 = vmul.f32 %v2684_v29, %v2684_v29  ;;  %v2596_v4 = vpop.f32.mrb[7].mxu0 }
 0x25d   : > { %v2704_v40 = vmul.f32 %v2685_v53, %v2685_v53 }
 0x25e   : > { %v2710_v27 = vadd.f32 %v2709_v63, %v2703_v20  ;;  %v2692_v31 = vadd.f32 %v2691_v16, %v2685_v53 }
 0x260   : > { %v2711_v1 = vadd.f32 %v2710_v27, %v2704_v40  ;;  %v2632_v22 = vpop.f32.mrb[4].mxu1 }
 0x261   : > { %v2686_v43 = vmul.f32 %v6069_v13, %v2632_v22  ;;  %v2634_v47 = vpop.f32.mrb[5].mxu1 }
 0x262   : > { %v2687_v26 = vmul.f32 %v6071_v62, %v2634_v47  ;;  %v2636_v36 = vpop.f32.mrb[6].mxu1 }
 0x263   : > { %v2693_v3 = vadd.f32 %v2692_v31, %v2686_v43  ;;  %v2705_v25 = vmul.f32 %v2686_v43, %v2686_v43  ;;  %v2637_v41 = vpop.f32.mrb[7].mxu1 }
 0x264   : > { %v2695_v56 = vsel %vm2694_vm12, %v2687_v26, 0.0  ;;  %v2706_v34 = vmul.f32 %v2687_v26, %v2687_v26 }
 0x265   : > { %v2712_v55 = vadd.f32 %v2711_v1, %v2705_v25  ;;  %v2696_v8 = vadd.f32 %v2695_v56, %v2693_v3 }
 0x266   : > { %v2713_v58 = vsel %vm2694_vm12, %v2706_v34, 0.0 }
 0x267   : > { %2697 = vadd.xlane.f32.xlu1 %v2696_v8  ;;  %v2714_v51 = vadd.f32 %v2713_v58, %v2712_v55 }
 0x269   : > { %2715 = vadd.xlane.f32.xlu0 %v2714_v51 }
 0x2f4   : > { %v2698_v28 = vpop.xlane.xlu1 %2697 }
 0x2f5   : > { %v2717_v49 = vmul.f32 0.001953125, %v2698_v28 }
 0x2f6   : > { %v2716_v10 = vpop.xlane.xlu0 %2715 }
 0x2f7   : > { %v2719_v7 = vmul.f32 %v2717_v49, %v2717_v49  ;;  %v2718_v9 = vmul.f32 0.001953125, %v2716_v10  ;;  %v2722_v2 = vsub.f32 %v6034_v45, %v2717_v49  ;;  %v2723_v14 = vsub.f32 %v6038_v11, %v2717_v49 }
 0x2f8   : > { %v2724_v30 = vsub.f32 %v6048_v57, %v2717_v49  ;;  %v2725_v48 = vsub.f32 %v6052_v19, %v2717_v49  ;;  %v2726_v61 = vsub.f32 %v6062_v60, %v2717_v49  ;;  %v2727_v63 = vsub.f32 %v2593_v32, %v2717_v49 }
 0x2f9   : > { %v2720_v42 = vsub.f32 %v2718_v9, %v2719_v7  ;;  %v2728_v39 = vsub.f32 %v2632_v22, %v2717_v49  ;;  %v2729_v35 = vsub.f32 %v2634_v47, %v2717_v49 }
 0x2fb   : > { %v2721_v0 = vmax.f32 %v2720_v42, 0.0 }
 0x2fd   : > { %v2730_v6 = vadd.f32 1e-05, %v2721_v0 }
 0x2ff   : > { %5124 = vrsqrt.f32 %v2730_v6 }
 0x309   : > { %v5125_v52 = vpop.eup %5124 }
 0x30a   : > { %v2732_v33 = vmul.f32 %v5125_v52, %v2722_v2  ;;  %v2733_v29 = vmul.f32 %v5125_v52, %v2723_v14  ;;  %v2734_v18 = vmul.f32 %v5125_v52, %v2724_v30  ;;  %v2735_v53 = vmul.f32 %v5125_v52, %v2725_v48 }
 0x30b   : > { %v2736_v21 = vmul.f32 %v5125_v52, %v2726_v61  ;;  %v2737_v16 = vmul.f32 %v5125_v52, %v2727_v63  ;;  %v2738_v20 = vmul.f32 %v5125_v52, %v2728_v39  ;;  %v2739_v19 = vmul.f32 %v5125_v52, %v2729_v35 }
 0x30c   : > { %vm2740_vm14 = vcmp.ge.f32.partialorder %v2732_v33, 0.0  ;;  %vm2741_vm11 = vcmp.ge.f32.partialorder %v2733_v29, 0.0  ;;  %vm2742_vm15 = vcmp.ge.f32.partialorder %v2734_v18, 0.0  ;;  %vm2743_vm5 = vcmp.ge.f32.partialorder %v2735_v53, 0.0 }
 0x30d   : > { %v2748_v45 = vmul.f32 0.01, %v2732_v33  ;;  %v2749_v11 = vmul.f32 0.01, %v2733_v29  ;;  %v2750_v57 = vmul.f32 0.01, %v2734_v18 }
 0x30e   : > { %v2751_v4 = vmul.f32 0.01, %v2735_v53  ;;  %vm2744_vm7 = vcmp.ge.f32.partialorder %v2736_v21, 0.0  ;;  %vm2745_vm6 = vcmp.ge.f32.partialorder %v2737_v16, 0.0  ;;  %v2752_v60 = vmul.f32 0.01, %v2736_v21 }
 0x30f   : > { %v2756_v32 = vsel %vm2740_vm14, %v2732_v33, %v2748_v45  ;;  %v2757_v40 = vsel %vm2741_vm11, %v2733_v29, %v2749_v11  ;;  %v2758_v27 = vsel %vm2742_vm15, %v2734_v18, %v2750_v57  ;;  %v2753_v31 = vmul.f32 0.01, %v2737_v16 }
 0x310   : > { %v2759_v1 = vsel %vm2743_vm5, %v2735_v53, %v2751_v4  ;;  %v2764_v22 = vmul.f32 %v2756_v32, %v6030_v12  ;;  %v2765_v43 = vmul.f32 %v2757_v40, %v6032_v23  ;;  %v2766_v47 = vmul.f32 %v2758_v27, %v6044_v59 }
 0x311   : > { %v2767_v26 = vmul.f32 %v2759_v1, %v6046_v44  ;;  %v2760_v36 = vsel %vm2744_vm7, %v2736_v21, %v2752_v60  ;;  %v2761_v3 = vsel %vm2745_vm6, %v2737_v16, %v2753_v31  ;;  %vm2746_vm8 = vcmp.ge.f32.partialorder %v2738_v20, 0.0 }
 0x312   : > { %v6100_v25 = vpack.c.bf16 %v2765_v43, %v2764_v22  ;;  %v2768_v41 = vmul.f32 %v2760_v36, %v6058_v46  ;;  %v2769_v56 = vmul.f32 %v2761_v3, %v6060_v38  ;;  %vm2747_vm14 = vcmp.ge.f32.partialorder %v2739_v19, 0.0 }
 0x313   : > { %v6104_v34 = vpack.c.bf16 %v2767_v26, %v2766_v47  ;;  %v2754_v55 = vmul.f32 0.01, %v2738_v20  ;;  %v2755_v8 = vmul.f32 0.01, %v2739_v19  ;;  %vm6979_vm11 = vcmask 850948  }
 0x314   : > { %2809 = vst [vmem:[#allocation3 + $0x4] sm:$0xff] %v6100_v25  ;;  %3334 = vst [vmem:[#allocation2 + $0x1a0] sm:$0xff] %v6100_v25  ;;  %v6108_v58 = vpack.c.bf16 %v2769_v56, %v2768_v41  ;;  %vm6985_vm5 = vcmask 818176   ;;  %vm6986_vm7 = vcmask 809984  }
 0x315   : > { %2810 = vst [vmem:[#allocation3 + $0xc] sm:$0xff] %v6104_v34  ;;  %3335 = vst [vmem:[#allocation2 + $0x1a8] sm:$0xff] %v6104_v34  ;;  %v2762_v51 = vsel %vm2746_vm8, %v2738_v20, %v2754_v55  ;;  %v2763_v28 = vsel %vm2747_vm14, %v2739_v19, %v2755_v8  ;;  %vm6990_vm14 = vcmask 744448  }
 0x316   : > { %2811 = vst [vmem:[#allocation3 + $0x14] sm:$0xff] %v6108_v58  ;;  %3336 = vst [vmem:[#allocation2 + $0x1b0] sm:$0xff] %v6108_v58  ;;  %v2770_v49 = vmul.f32 %v2762_v51, %v6069_v13  ;;  %v2771_v10 = vmul.f32 %v2763_v28, %v6071_v62 }
 0x317   : > { %vm6118_vm15 = vmor %vm6979_vm11, %vm246_vm0  ;;  %vm4502_vm11 = vcmask 719872  }
 0x318   : > { %v5065_v9 = vpack.c.bf16 %v2771_v10, %v2770_v49  ;;  %vm6988_vm6 = vmmov %vm6986_vm7 }
 0x319   : > { %vm6989_vm8 = vmmov %vm6985_vm5 }
 0x31a   : > { %2814 = vst.msk [vmem:[#allocation3 + $0x1c] sm:$0xff] %vm6118_vm15, %v5065_v9 }
 0x31b   : > { %v2815_v42 = vld [vmem:[#allocation3] sm:$0xff] }
 0x31c   : > { %v2816_v0 = vld [vmem:[#allocation3 + $0x8] sm:$0xff]  ;;  %2823 = vrot.lane.b32.xlu0 %v2815_v42, %s5138_s22 }
 0x31d   : > { %2825 = vrot.lane.b32.xlu1 %v2816_v0, %s5138_s22  ;;  %v2817_v2 = vld [vmem:[#allocation3 + $0x10] sm:$0xff] }
 0x320   : > { %2860 = vrot.lane.b32.xlu0 %v2816_v0, %s5137_s21 }
 0x321   : > { %2858 = vrot.lane.b32.xlu1 %v2815_v42, %s5137_s21  ;;  %v6128_v6 = vld [vmem:[#allocation3 + $0x1c] sm:$0xff] }
 0x322   : > { %3337 = vst.msk [vmem:[#allocation2 + $0x1b8] sm:$0xff] %vm6118_vm15, %v6128_v6 }
 0x324   : > { %2862 = vrot.lane.b32.xlu0 %v2817_v2, %s5137_s21 }
 0x325   : > { %2827 = vrot.lane.b32.xlu1 %v2817_v2, %s5138_s22 }
 0x328   : > { %2895 = vrot.lane.b32.xlu0 %v2816_v0, %s5140_s24 }
 0x329   : > { %2893 = vrot.lane.b32.xlu1 %v2815_v42, %s5140_s24 }
 0x32c   : > { %2932 = vrot.lane.b32.xlu0 %v2816_v0, %s5139_s23 }
 0x32d   : > { %2930 = vrot.lane.b32.xlu1 %v2815_v42, %s5139_s23 }
 0x330   : > { %2934 = vrot.lane.b32.xlu0 %v2817_v2, %s5139_s23 }
 0x331   : > { %2897 = vrot.lane.b32.xlu1 %v2817_v2, %s5140_s24 }
 0x334   : > { %2973 = vrot.lane.b32.xlu0 %v2816_v0, %s5141_s25 }
 0x335   : > { %2971 = vrot.lane.b32.xlu1 %v2815_v42, %s5141_s25 }
 0x338   : > { %3014 = vrot.lane.b32.xlu0 %v2816_v0, %s5142_s26 }
 0x339   : > { %3012 = vrot.lane.b32.xlu1 %v2815_v42, %s5142_s26 }
 0x33c   : > { %3016 = vrot.lane.b32.xlu0 %v2817_v2, %s5142_s26 }
 0x33d   : > { %2975 = vrot.lane.b32.xlu1 %v2817_v2, %s5141_s25 }
 0x340   : > { %3055 = vrot.lane.b32.xlu0 %v2816_v0, %s5143_s27 }
 0x341   : > { %3053 = vrot.lane.b32.xlu1 %v2815_v42, %s5143_s27 }
 0x344   : > { %3096 = vrot.lane.b32.xlu0 %v2816_v0, %s5144_s28 }
 0x345   : > { %3094 = vrot.lane.b32.xlu1 %v2815_v42, %s5144_s28 }
 0x348   : > { %3098 = vrot.lane.b32.xlu0 %v2817_v2, %s5144_s28 }
 0x349   : > { %3057 = vrot.lane.b32.xlu1 %v2817_v2, %s5143_s27 }
 0x34c   : > { %3137 = vrot.lane.b32.xlu0 %v2816_v0, %s5145_s29 }
 0x34d   : > { %3135 = vrot.lane.b32.xlu1 %v2815_v42, %s5145_s29 }
 0x350   : > { %3178 = vrot.lane.b32.xlu0 %v2816_v0, %s5146_s30 }
 0x351   : > { %3176 = vrot.lane.b32.xlu1 %v2815_v42, %s5146_s30 }
 0x354   : > { %3180 = vrot.lane.b32.xlu0 %v2817_v2, %s5146_s30 }
 0x355   : > { %3139 = vrot.lane.b32.xlu1 %v2817_v2, %s5145_s29 }
 0x358   : > { %3219 = vrot.lane.b32.xlu0 %v2816_v0, %s5147_s5 }
 0x359   : > { %3217 = vrot.lane.b32.xlu1 %v2815_v42, %s5147_s5 }
 0x35c   : > { %3260 = vrot.lane.b32.xlu0 %v2816_v0, %s6912_s6 }
 0x35d   : > { %3258 = vrot.lane.b32.xlu1 %v2815_v42, %s6912_s6 }
 0x360   : > { %3262 = vrot.lane.b32.xlu0 %v2817_v2, %s6912_s6  ;;  %s6984_s6 = smov 117  }
 0x361   : > { %3221 = vrot.lane.b32.xlu1 %v2817_v2, %s5147_s5 }
 0x364   : > { %3301 = vrot.lane.b32.xlu0 %v2816_v0, %s5149_s7 }
 0x365   : > { %3299 = vrot.lane.b32.xlu1 %v2815_v42, %s5149_s7 }
 0x368   : > { %3346 = vrot.lane.b32.xlu0 %v6100_v25, %s5150_s8 }
 0x369   : > { %3303 = vrot.lane.b32.xlu1 %v2817_v2, %s5149_s7 }
 0x36c   : > { %3381 = vrot.lane.b32.xlu0 %v6100_v25, %s6982_s18 }
 0x36d   : > { %3348 = vrot.lane.b32.xlu1 %v6104_v34, %s5150_s8 }
 0x370   : > { %3350 = vrot.lane.b32.xlu0 %v6108_v58, %s5150_s8 }
 0x371   : > { %3383 = vrot.lane.b32.xlu1 %v6104_v34, %s6982_s18 }
 0x374   : > { %3416 = vrot.lane.b32.xlu0 %v6100_v25, %s6983_s20 }
 0x375   : > { %3385 = vrot.lane.b32.xlu1 %v6108_v58, %s6982_s18 }
 0x378   : > { %3451 = vrot.lane.b32.xlu0 %v6100_v25, %s6984_s6 }
 0x379   : > { %3418 = vrot.lane.b32.xlu1 %v6104_v34, %s6983_s20 }
 0x37c   : > { %3420 = vrot.lane.b32.xlu0 %v6108_v58, %s6983_s20 }
 0x37d   : > { %3453 = vrot.lane.b32.xlu1 %v6104_v34, %s6984_s6 }
 0x380   : > { %3488 = vrot.lane.b32.xlu0 %v6100_v25, %s5154_s12 }
 0x381   : > { %3455 = vrot.lane.b32.xlu1 %v6108_v58, %s6984_s6 }
 0x384   : > { %3529 = vrot.lane.b32.xlu0 %v6100_v25, %s6914_s13 }
 0x385   : > { %3490 = vrot.lane.b32.xlu1 %v6104_v34, %s5154_s12 }
 0x388   : > { %3492 = vrot.lane.b32.xlu0 %v6108_v58, %s5154_s12 }
 0x389   : > { %3531 = vrot.lane.b32.xlu1 %v6104_v34, %s6914_s13 }
 0x38c   : > { %3570 = vrot.lane.b32.xlu0 %v6100_v25, %s5156_s14 }
 0x38d   : > { %3533 = vrot.lane.b32.xlu1 %v6108_v58, %s6914_s13  ;;  %s6987_s13 = smov 17  }
 0x38e   : > { %v2824_v14 = vpop.permute.xlu0 %2823 }
 0x38f   : > { %v2826_v30 = vpop.permute.xlu1 %2825  ;;  %v2831_v48 = vrot.slane %v2824_v14, 4 }
 0x390   : > { %v2832_v52 = vrot.slane %v2826_v30, 4  ;;  %3611 = vrot.lane.b32.xlu0 %v6100_v25, %s6943_s10 }
 0x391   : > { %3572 = vrot.lane.b32.xlu1 %v6104_v34, %s5156_s14 }
 0x392   : > { %v2835_v61 = vsel %vm246_vm0, %v2831_v48, %v2832_v52  ;;  %v2861_v63 = vpop.permute.xlu0 %2860 }
 0x393   : > { %v2836_v39 = vsel %vm248_vm2, %v2824_v14, %v2835_v61  ;;  %v2859_v33 = vpop.permute.xlu1 %2858  ;;  %v2867_v29 = vrot.slane %v2861_v63, 4 }
 0x394   : > { %2846 = vst [vmem:[#allocation2] sm:$0xff] %v2836_v39  ;;  %v2866_v18 = vrot.slane %v2859_v33, 4  ;;  %3574 = vrot.lane.b32.xlu0 %v6108_v58, %s5156_s14 }
 0x395   : > { %3613 = vrot.lane.b32.xlu1 %v6104_v34, %s6943_s10 }
 0x396   : > { %v2870_v53 = vsel %vm246_vm0, %v2866_v18, %v2867_v29  ;;  %v6217_v35 = vpop.permute.xlu0 %2862 }
 0x397   : > { %v2871_v21 = vsel %vm313_vm1, %v2859_v33, %v2870_v53  ;;  %v6220_v16 = vpop.permute.xlu1 %2827  ;;  %v2868_v20 = vrot.slane %v6217_v35, 4 }
 0x398   : > { %2881 = vst [vmem:[#allocation2 + $0x20] sm:$0xff] %v2871_v21  ;;  %v2833_v45 = vrot.slane %v6220_v16, 4  ;;  %3652 = vrot.lane.b32.xlu0 %v6100_v25, %s6942_s11  ;;  %v4939_v11 = vcombine.low %v2836_v39, %v2871_v21  ;;  %v4940_v57 = vcombine.high %v2836_v39, %v2871_v21 }
 0x399   : > { %v2872_v19 = vsel %vm246_vm0, %v2867_v29, %v2868_v20  ;;  %3615 = vrot.lane.b32.xlu1 %v6108_v58, %s6943_s10 }
 0x39a   : > { %v2837_v4 = vsel %vm246_vm0, %v2832_v52, %v2833_v45  ;;  %v2873_v60 = vsel %vm313_vm1, %v2861_v63, %v2872_v19  ;;  %v2896_v32 = vpop.permute.xlu0 %2895  ;;  %4530 = vmatprep.subr.bf16.mxu0 %v4940_v57 }
 0x39b   : > { %v2838_v40 = vsel %vm248_vm2, %v2826_v30, %v2837_v4  ;;  %2882 = vst [vmem:[#allocation2 + $0x28] sm:$0xff] %v2873_v60  ;;  %v2894_v27 = vpop.permute.xlu1 %2893  ;;  %v2902_v31 = vrot.slane %v2896_v32, 4  ;;  %4531 = vmatpush1.bf16.msra.mxu0 %v4939_v11 }
 0x39c   : > { %2847 = vst [vmem:[#allocation2 + $0x8] sm:$0xff] %v2838_v40  ;;  %v2901_v1 = vrot.slane %v2894_v27, 4  ;;  %3693 = vrot.lane.b32.xlu0 %v6100_v25, %s6944_s9  ;;  %v4941_v22 = vcombine.low %v2838_v40, %v2873_v60  ;;  %v4942_v43 = vcombine.high %v2838_v40, %v2873_v60 }
 0x39d   : > { %3654 = vrot.lane.b32.xlu1 %v6104_v34, %s6942_s11 }
 0x39e   : > { %v2905_v47 = vsel %vm246_vm0, %v2901_v1, %v2902_v31  ;;  %v2933_v26 = vpop.permute.xlu0 %2932  ;;  %4571 = vmatprep.subr.bf16.mxu1 %v4942_v43 }
 0x39f   : > { %v2906_v36 = vsel %vm378_vm3, %v2894_v27, %v2905_v47  ;;  %v2931_v3 = vpop.permute.xlu1 %2930  ;;  %v2941_v41 = vrot.slane %v2933_v26, 4  ;;  %4572 = vmatpush1.bf16.msra.mxu1 %v4941_v22 }
 0x3a0   : > { %2916 = vst [vmem:[#allocation2 + $0x40] sm:$0xff] %v2906_v36  ;;  %v2940_v56 = vrot.slane %v2931_v3, 4  ;;  %3656 = vrot.lane.b32.xlu0 %v6108_v58, %s6942_s11 }
 0x3a1   : > { %3695 = vrot.lane.b32.xlu1 %v6104_v34, %s6944_s9 }
 0x3a2   : > { %v2945_v55 = vsel %vm246_vm0, %v2940_v56, %v2941_v41  ;;  %v6247_v8 = vpop.permute.xlu0 %2934  ;;  %v6296_v56 = vld [vmem:[#allocation3 + $0x18] sm:$0xff] }
 0x3a3   : > { %v2946_v51 = vsel %vm453_vm4, %v2931_v3, %v2945_v55  ;;  %v6250_v28 = vpop.permute.xlu1 %2897  ;;  %v6939_v49 = vrot.slane %v6247_v8, 4 }
 0x3a4   : > { %2957 = vst [vmem:[#allocation2 + $0x60] sm:$0xff] %v2946_v51  ;;  %v6937_v10 = vrot.slane %v6250_v28, 4  ;;  %3734 = vrot.lane.b32.xlu0 %v6100_v25, %s6917_s17  ;;  %v4947_v9 = vcombine.low %v2906_v36, %v2946_v51  ;;  %v4948_v42 = vcombine.high %v2906_v36, %v2946_v51 }
 0x3a5   : > { %v2947_v0 = vsel %vm246_vm0, %v2941_v41, %v6939_v49  ;;  %3697 = vrot.lane.b32.xlu1 %v6108_v58, %s6944_s9 }
 0x3a6   : > { %v2907_v2 = vsel %vm246_vm0, %v2902_v31, %v6937_v10  ;;  %v2948_v14 = vsel %vm453_vm4, %v2933_v26, %v2947_v0  ;;  %v2974_v30 = vpop.permute.xlu0 %2973  ;;  %4532 = vmatprep.subr.bf16.mxu0 %v4948_v42 }
 0x3a7   : > { %v2908_v48 = vsel %vm378_vm3, %v2896_v32, %v2907_v2  ;;  %2958 = vst [vmem:[#allocation2 + $0x68] sm:$0xff] %v2948_v14  ;;  %v2972_v52 = vpop.permute.xlu1 %2971  ;;  %v2982_v61 = vrot.slane %v2974_v30, 4  ;;  %4533 = vmatpush1.bf16.msra.mxu0 %v4947_v9 }
 0x3a8   : > { %2917 = vst [vmem:[#allocation2 + $0x48] sm:$0xff] %v2908_v48  ;;  %v2981_v63 = vrot.slane %v2972_v52, 4  ;;  %3775 = vrot.lane.b32.xlu0 %v6100_v25, %s6915_s19  ;;  %v4949_v39 = vcombine.low %v2908_v48, %v2948_v14  ;;  %v4950_v33 = vcombine.high %v2908_v48, %v2948_v14  ;;  %v6307_v48 = vld [vmem:[%s6869_s2] sm:$0xff] }
 0x3a9   : > { %3736 = vrot.lane.b32.xlu1 %v6104_v34, %s6917_s17 }
 0x3aa   : > { %v2986_v29 = vsel %vm246_vm0, %v2981_v63, %v2982_v61  ;;  %v3015_v18 = vpop.permute.xlu0 %3014  ;;  %4573 = vmatprep.subr.bf16.mxu1 %v4950_v33 }
 0x3ab   : > { %v2987_v53 = vsel %vm6985_vm5, %v2972_v52, %v2986_v29  ;;  %v3013_v21 = vpop.permute.xlu1 %3012  ;;  %v3023_v11 = vrot.slane %v3015_v18, 4  ;;  %4574 = vmatpush1.bf16.msra.mxu1 %v4949_v39  ;;  %vm6991_vm5 = vcmask 736256  }
 0x3ac   : > { %2998 = vst [vmem:[#allocation2 + $0x80] sm:$0xff] %v2987_v53  ;;  %v3022_v57 = vrot.slane %v3013_v21, 4  ;;  %3738 = vrot.lane.b32.xlu0 %v6108_v58, %s6917_s17 }
 0x3ad   : > { %3777 = vrot.lane.b32.xlu1 %v6104_v34, %s6915_s19 }
 0x3ae   : > { %v3027_v19 = vsel %vm246_vm0, %v3022_v57, %v3023_v11  ;;  %v6277_v4 = vpop.permute.xlu0 %3016 }
 0x3af   : > { %v3028_v60 = vsel %vm6986_vm7, %v3013_v21, %v3027_v19  ;;  %v6280_v32 = vpop.permute.xlu1 %2975  ;;  %v6933_v40 = vrot.slane %v6277_v4, 4  ;;  %vm6992_vm7 = vmmov %vm6991_vm5 }
 0x3b0   : > { %3039 = vst [vmem:[#allocation2 + $0xa0] sm:$0xff] %v3028_v60  ;;  %v6935_v27 = vrot.slane %v6280_v32, 4  ;;  %3816 = vrot.lane.b32.xlu0 %v6100_v25, %s6987_s13  ;;  %v4955_v31 = vcombine.low %v2987_v53, %v3028_v60  ;;  %v4956_v1 = vcombine.high %v2987_v53, %v3028_v60 }
 0x3b1   : > { %v3029_v22 = vsel %vm246_vm0, %v3023_v11, %v6933_v40  ;;  %3779 = vrot.lane.b32.xlu1 %v6108_v58, %s6915_s19 }
 0x3b2   : > { %v2988_v43 = vsel %vm246_vm0, %v2982_v61, %v6935_v27  ;;  %v3030_v47 = vsel %vm6988_vm6, %v3015_v18, %v3029_v22  ;;  %v3056_v26 = vpop.permute.xlu0 %3055  ;;  %4534 = vmatprep.subr.bf16.mxu0 %v4956_v1  ;;  %v6313_v61 = vcombine.high %v6307_v48, %v6307_v48  ;;  %vm6993_vm6 = vmmov %vm6990_vm14 }
 0x3b3   : > { %v2989_v36 = vsel %vm6989_vm8, %v2974_v30, %v2988_v43  ;;  %3040 = vst [vmem:[#allocation2 + $0xa8] sm:$0xff] %v3030_v47  ;;  %v3054_v3 = vpop.permute.xlu1 %3053  ;;  %v3064_v41 = vrot.slane %v3056_v26, 4  ;;  %4535 = vmatpush1.bf16.msra.mxu0 %v4955_v31  ;;  %vm6994_vm8 = vcmask 728064  }
 0x3b4   : > { %2999 = vst [vmem:[#allocation2 + $0x88] sm:$0xff] %v2989_v36  ;;  %v3063_v55 = vrot.slane %v3054_v3, 4  ;;  %2829 = vrot.lane.b32.xlu0 %v6296_v56, %s5138_s22  ;;  %v4957_v51 = vcombine.low %v2989_v36, %v3030_v47  ;;  %v4958_v9 = vcombine.high %v2989_v36, %v3030_v47  ;;  %5052 = vmatprep.mubr.msk.bf16.mxu0 %vm4502_vm11, %v6313_v61  ;;  %v2924_v47 = vld [vmem:[#allocation3 + $0x20] sm:$0xf]  ;;  %s7010_s22 = smov 38  }
 0x3b5   : > { %3818 = vrot.lane.b32.xlu1 %v6104_v34, %s6987_s13  ;;  %5054 = vmatprep.mubr.msk.bf16.mxu1 %vm4502_vm11, %v6313_v61 }
 0x3b6   : > { %v3068_v42 = vsel %vm246_vm0, %v3063_v55, %v3064_v41  ;;  %v3097_v0 = vpop.permute.xlu0 %3096  ;;  %4575 = vmatprep.subr.bf16.mxu1 %v4958_v9 }
 0x3b7   : > { %v3069_v2 = vsel %vm6990_vm14, %v3054_v3, %v3068_v42  ;;  %v3095_v14 = vpop.permute.xlu1 %3094  ;;  %v3105_v30 = vrot.slane %v3097_v0, 4  ;;  %4576 = vmatpush1.bf16.msra.mxu1 %v4957_v51  ;;  %v2965_v42 = vld [vmem:[#allocation3 + $0x20] sm:$0xf]  ;;  %vm6995_vm14 = vcmask 89088  }
 0x3b8   : > { %3080 = vst [vmem:[#allocation2 + $0xc0] sm:$0xff] %v3069_v2  ;;  %v3104_v52 = vrot.slane %v3095_v14, 4  ;;  %3820 = vrot.lane.b32.xlu0 %v6108_v58, %s6987_s13 }
 0x3b9   : > { %2864 = vrot.lane.b32.xlu1 %v6296_v56, %s5137_s21  ;;  %s7003_s21 = smov 9  }
 0x3ba   : > { %v3109_v63 = vsel %vm246_vm0, %v3104_v52, %v3105_v30  ;;  %v6318_v39 = vpop.permute.xlu0 %3098 }
 0x3bb   : > { %v3110_v58 = vsel %vm6991_vm5, %v3095_v14, %v3109_v63  ;;  %v6325_v33 = vpop.permute.xlu1 %3057  ;;  %v6929_v29 = vrot.slane %v6318_v39, 4  ;;  %vm6996_vm5 = vmmov %vm6995_vm14 }
 0x3bc   : > { %3121 = vst [vmem:[#allocation2 + $0xe0] sm:$0xff] %v3110_v58  ;;  %v6931_v18 = vrot.slane %v6325_v33, 4  ;;  %2936 = vrot.lane.b32.xlu0 %v6296_v56, %s5139_s23  ;;  %v4963_v53 = vcombine.low %v3069_v2, %v3110_v58  ;;  %v4964_v21 = vcombine.high %v3069_v2, %v3110_v58 }
 0x3bd   : > { %v3111_v11 = vsel %vm246_vm0, %v3105_v30, %v6929_v29  ;;  %2899 = vrot.lane.b32.xlu1 %v6296_v56, %s5140_s24  ;;  %s7016_s24 = smov 18  }
 0x3be   : > { %v3070_v57 = vsel %vm246_vm0, %v3064_v41, %v6931_v18  ;;  %v3112_v19 = vsel %vm6992_vm7, %v3097_v0, %v3111_v11  ;;  %v3138_v60 = vpop.permute.xlu0 %3137  ;;  %4536 = vmatprep.subr.bf16.mxu0 %v4964_v21  ;;  %vm6997_vm7 = vmmov %vm6994_vm8 }
 0x3bf   : > { %v3071_v31 = vsel %vm6993_vm6, %v3056_v26, %v3070_v57  ;;  %3122 = vst [vmem:[#allocation2 + $0xe8] sm:$0xff] %v3112_v19  ;;  %v3136_v1 = vpop.permute.xlu1 %3135  ;;  %v3146_v22 = vrot.slane %v3138_v60, 4  ;;  %4537 = vmatpush1.bf16.msra.mxu0 %v4963_v53  ;;  %v3006_v53 = vld [vmem:[#allocation3 + $0x20] sm:$0xf]  ;;  %vm6998_vm6 = vcmask 80896  }
 0x3c0   : > { %3081 = vst [vmem:[#allocation2 + $0xc8] sm:$0xff] %v3071_v31  ;;  %v3145_v43 = vrot.slane %v3136_v1, 4  ;;  %2977 = vrot.lane.b32.xlu0 %v6296_v56, %s5141_s25  ;;  %v4965_v36 = vcombine.low %v3071_v31, %v3112_v19  ;;  %v4966_v3 = vcombine.high %v3071_v31, %v3112_v19 }
 0x3c1   : > { %2938 = vrot.lane.b32.xlu1 %v2924_v47, %s5139_s23  ;;  %s7014_s23 = smov 19  }
 0x3c2   : > { %v3150_v41 = vsel %vm246_vm0, %v3145_v43, %v3146_v22  ;;  %v3179_v55 = vpop.permute.xlu0 %3178  ;;  %4577 = vmatprep.subr.bf16.mxu1 %v4966_v3  ;;  %v3047_v3 = vld [vmem:[#allocation3 + $0x20] sm:$0xf] }
 0x3c3   : > { %v3151_v26 = vsel %vm6994_vm8, %v3136_v1, %v3150_v41  ;;  %v3177_v51 = vpop.permute.xlu1 %3176  ;;  %v3187_v9 = vrot.slane %v3179_v55, 4  ;;  %4578 = vmatpush1.bf16.msra.mxu1 %v4965_v36  ;;  %vm6999_vm8 = vcmask 72704  }
 0x3c4   : > { %3162 = vst [vmem:[#allocation2 + $0x100] sm:$0xff] %v3151_v26  ;;  %v3186_v0 = vrot.slane %v3177_v51, 4  ;;  %2979 = vrot.lane.b32.xlu0 %v2965_v42, %s5141_s25  ;;  %s5061_s25 = sshll.u32 %s7089_s16, 6 }
 0x3c5   : > { %3018 = vrot.lane.b32.xlu1 %v6296_v56, %s5142_s26  ;;  %s197_s16 = scalar_lea.vmem %s6871_s4, %s5061_s25 }
 0x3c6   : > { %v3191_v2 = vsel %vm246_vm0, %v3186_v0, %v3187_v9  ;;  %v6350_v14 = vpop.permute.xlu0 %3180 }
 0x3c7   : > { %v3192_v30 = vsel %vm6995_vm14, %v3177_v51, %v3191_v2  ;;  %v6353_v52 = vpop.permute.xlu1 %3139  ;;  %v6925_v63 = vrot.slane %v6350_v14, 4  ;;  %v3088_v2 = vld [vmem:[#allocation3 + $0x20] sm:$0xf]  ;;  %vm7000_vm14 = vmmov %vm6999_vm8 }
 0x3c8   : > { %3203 = vst [vmem:[#allocation2 + $0x120] sm:$0xff] %v3192_v30  ;;  %v6927_v58 = vrot.slane %v6353_v52, 4  ;;  %3059 = vrot.lane.b32.xlu0 %v6296_v56, %s5143_s27  ;;  %v4971_v21 = vcombine.low %v3151_v26, %v3192_v30  ;;  %v4972_v11 = vcombine.high %v3151_v26, %v3192_v30 }
 0x3c9   : > { %v3193_v57 = vsel %vm246_vm0, %v3187_v9, %v6925_v63  ;;  %3020 = vrot.lane.b32.xlu1 %v3006_v53, %s5142_s26 }
 0x3ca   : > { %v3152_v19 = vsel %vm246_vm0, %v3146_v22, %v6927_v58  ;;  %v3194_v31 = vsel %vm6996_vm5, %v3179_v55, %v3193_v57  ;;  %v3220_v1 = vpop.permute.xlu0 %3219  ;;  %4538 = vmatprep.subr.bf16.mxu0 %v4972_v11  ;;  %vm7001_vm5 = vmmov %vm6998_vm6 }
 0x3cb   : > { %v3153_v43 = vsel %vm6997_vm7, %v3138_v60, %v3152_v19  ;;  %3204 = vst [vmem:[#allocation2 + $0x128] sm:$0xff] %v3194_v31  ;;  %v3218_v47 = vpop.permute.xlu1 %3217  ;;  %v3228_v36 = vrot.slane %v3220_v1, 4  ;;  %4539 = vmatpush1.bf16.msra.mxu0 %v4971_v21  ;;  %v3129_v19 = vld [vmem:[#allocation3 + $0x20] sm:$0xf]  ;;  %vm7002_vm7 = vcmask 7168  }
 0x3cc   : > { %3163 = vst [vmem:[#allocation2 + $0x108] sm:$0xff] %v3153_v43  ;;  %v3227_v41 = vrot.slane %v3218_v47, 4  ;;  %3061 = vrot.lane.b32.xlu0 %v3047_v3, %s5143_s27  ;;  %v4973_v26 = vcombine.low %v3153_v43, %v3194_v31  ;;  %v4974_v51 = vcombine.high %v3153_v43, %v3194_v31 }
 0x3cd   : > { %3100 = vrot.lane.b32.xlu1 %v6296_v56, %s5144_s28 }
 0x3ce   : > { %v3232_v22 = vsel %vm246_vm0, %v3227_v41, %v3228_v36  ;;  %v3261_v55 = vpop.permute.xlu0 %3260  ;;  %4579 = vmatprep.subr.bf16.mxu1 %v4974_v51 }
 0x3cf   : > { %v3233_v60 = vsel %vm6998_vm6, %v3218_v47, %v3232_v22  ;;  %v3259_v9 = vpop.permute.xlu1 %3258  ;;  %v3269_v42 = vrot.slane %v3261_v55, 4  ;;  %4580 = vmatpush1.bf16.msra.mxu1 %v4973_v26  ;;  %vm7004_vm6 = vmmov %vm7002_vm7 }
 0x3d0   : > { %3244 = vst [vmem:[#allocation2 + $0x140] sm:$0xff] %v3233_v60  ;;  %v3268_v0 = vrot.slane %v3259_v9, 4  ;;  %3141 = vrot.lane.b32.xlu0 %v6296_v56, %s5145_s29 }
 0x3d1   : > { %3102 = vrot.lane.b32.xlu1 %v3088_v2, %s5144_s28 }
 0x3d2   : > { %v3273_v30 = vsel %vm246_vm0, %v3268_v0, %v3269_v42  ;;  %v6377_v53 = vpop.permute.xlu0 %3262 }
 0x3d3   : > { %v3274_v21 = vsel %vm6999_vm8, %v3259_v9, %v3273_v30  ;;  %v6380_v11 = vpop.permute.xlu1 %3221  ;;  %v6922_v57 = vrot.slane %v6377_v53, 4  ;;  %vm7005_vm8 = vcmask 1039360  }
 0x3d4   : > { %3285 = vst [vmem:[#allocation2 + $0x160] sm:$0xff] %v3274_v21  ;;  %v6924_v31 = vrot.slane %v6380_v11, 4  ;;  %3143 = vrot.lane.b32.xlu0 %v3129_v19, %s5145_s29  ;;  %v4979_v43 = vcombine.low %v3233_v60, %v3274_v21  ;;  %v4980_v47 = vcombine.high %v3233_v60, %v3274_v21  ;;  %v3211_v19 = vld [vmem:[#allocation3 + $0x20] sm:$0xf] }
 0x3d5   : > { %v3275_v3 = vsel %vm246_vm0, %v3269_v42, %v6922_v57  ;;  %3182 = vrot.lane.b32.xlu1 %v6296_v56, %s5146_s30  ;;  %v3170_v42 = vld [vmem:[#allocation3 + $0x20] sm:$0xf] }
 0x3d6   : > { %v3234_v41 = vsel %vm246_vm0, %v3228_v36, %v6924_v31  ;;  %v3276_v26 = vsel %vm7000_vm14, %v3261_v55, %v3275_v3  ;;  %v3302_v51 = vpop.permute.xlu0 %3301  ;;  %4540 = vmatprep.subr.bf16.mxu0 %v4980_v47  ;;  %vm7006_vm14 = vmmov %vm7005_vm8 }
 0x3d7   : > { %v3235_v22 = vsel %vm7001_vm5, %v3220_v1, %v3234_v41  ;;  %3286 = vst [vmem:[#allocation2 + $0x168] sm:$0xff] %v3276_v26  ;;  %v3300_v9 = vpop.permute.xlu1 %3299  ;;  %v3310_v60 = vrot.slane %v3302_v51, 4  ;;  %4541 = vmatpush1.bf16.msra.mxu0 %v4979_v43  ;;  %vm7007_vm5 = vcmask 973824  }
 0x3d8   : > { %3245 = vst [vmem:[#allocation2 + $0x148] sm:$0xff] %v3235_v22  ;;  %v3309_v0 = vrot.slane %v3300_v9, 4  ;;  %3223 = vrot.lane.b32.xlu0 %v6296_v56, %s5147_s5  ;;  %v4981_v2 = vcombine.low %v3235_v22, %v3276_v26  ;;  %v4982_v30 = vcombine.high %v3235_v22, %v3276_v26 }
 0x3d9   : > { %3184 = vrot.lane.b32.xlu1 %v3170_v42, %s5146_s30 }
 0x3da   : > { %v3314_v36 = vsel %vm246_vm0, %v3309_v0, %v3310_v60  ;;  %v3347_v55 = vpop.permute.xlu0 %3346  ;;  %4581 = vmatprep.subr.bf16.mxu1 %v4982_v30 }
 0x3db   : > { %v3315_v1 = vsel %vm7002_vm7, %v3300_v9, %v3314_v36  ;;  %v6400_v21 = vpop.permute.xlu1 %3303  ;;  %4582 = vmatpush1.bf16.msra.mxu1 %v4981_v2  ;;  %v3354_v0 = vrot.slane %v3347_v55, 4  ;;  %v3252_v2 = vld [vmem:[#allocation3 + $0x20] sm:$0xf]  ;;  %vm7008_vm7 = vmmov %vm7007_vm5 }
 0x3dc   : > { %3326 = vst [vmem:[#allocation2 + $0x180] sm:$0xff] %v3315_v1  ;;  %v6920_v43 = vrot.slane %v6400_v21, 4  ;;  %3225 = vrot.lane.b32.xlu0 %v3211_v19, %s5147_s5  ;;  %v4987_v47 = vcombine.low %v3315_v1, %v6100_v25  ;;  %v4988_v3 = vcombine.high %v3315_v1, %v6100_v25 }
 0x3dd   : > { %3264 = vrot.lane.b32.xlu1 %v6296_v56, %s7003_s21 }
 0x3de   : > { %v3316_v41 = vsel %vm246_vm0, %v3310_v60, %v6920_v43  ;;  %v3382_v26 = vpop.permute.xlu0 %3381  ;;  %4542 = vmatprep.subr.bf16.mxu0 %v4988_v3 }
 0x3df   : > { %v3317_v22 = vsel %vm7004_vm6, %v3302_v51, %v3316_v41  ;;  %v3349_v9 = vpop.permute.xlu1 %3348  ;;  %4543 = vmatpush1.bf16.msra.mxu0 %v4987_v47  ;;  %v3389_v47 = vrot.slane %v3382_v26, 4  ;;  %vm7009_vm6 = vcmask 965632  }
 0x3e0   : > { %3327 = vst [vmem:[#allocation2 + $0x188] sm:$0xff] %v3317_v22  ;;  %v3355_v42 = vrot.slane %v3349_v9, 4  ;;  %3305 = vrot.lane.b32.xlu0 %v6296_v56, %s5149_s7  ;;  %v4989_v25 = vcombine.low %v3317_v22, %v6104_v34  ;;  %v4990_v30 = vcombine.high %v3317_v22, %v6104_v34  ;;  %v3293_v56 = vld [vmem:[#allocation3 + $0x20] sm:$0xf] }
 0x3e1   : > { %3266 = vrot.lane.b32.xlu1 %v3252_v2, %s7003_s21 }
 0x3e2   : > { %v3358_v60 = vsel %vm246_vm0, %v3354_v0, %v3355_v42  ;;  %v6418_v36 = vpop.permute.xlu0 %3350  ;;  %4583 = vmatprep.subr.bf16.mxu1 %v4990_v30 }
 0x3e3   : > { %v3359_v51 = vsel %vm7005_vm8, %v3347_v55, %v3358_v60  ;;  %v3384_v1 = vpop.permute.xlu1 %3383  ;;  %v6918_v19 = vrot.slane %v6418_v36, 4  ;;  %4584 = vmatpush1.bf16.msra.mxu1 %v4989_v25  ;;  %vm7011_vm8 = vmmov %vm7009_vm6 }
 0x3e4   : > { %v3390_v3 = vrot.slane %v3384_v1, 4  ;;  %3352 = vrot.lane.b32.xlu0 %v6128_v6, %s5150_s8 }
 0x3e5   : > { %v3360_v34 = vsel %vm246_vm0, %v3355_v42, %v6918_v19  ;;  %3307 = vrot.lane.b32.xlu1 %v3293_v56, %s5149_s7 }
 0x3e6   : > { %v3393_v41 = vsel %vm246_vm0, %v3389_v47, %v3390_v3  ;;  %v3361_v55 = vsel %vm7006_vm14, %v3349_v9, %v3360_v34  ;;  %v3417_v22 = vpop.permute.xlu0 %3416  ;;  %vm7012_vm14 = vcmask 957440  }
 0x3e7   : > { %v3394_v0 = vsel %vm7007_vm5, %v3382_v26, %v3393_v41  ;;  %v6431_v2 = vpop.permute.xlu1 %3385  ;;  %v3424_v56 = vrot.slane %v3417_v22, 4  ;;  %vm7013_vm5 = vmmov %vm7012_vm14 }
 0x3e8   : > { %v6919_v25 = vrot.slane %v6431_v2, 4  ;;  %3422 = vrot.lane.b32.xlu0 %v6128_v6, %s6983_s20  ;;  %v4995_v30 = vcombine.low %v3359_v51, %v3394_v0  ;;  %v4996_v60 = vcombine.high %v3359_v51, %v3394_v0 }
 0x3e9   : > { %3387 = vrot.lane.b32.xlu1 %v6128_v6, %s6982_s18 }
 0x3ea   : > { %v3395_v42 = vsel %vm246_vm0, %v3390_v3, %v6919_v25  ;;  %v3452_v9 = vpop.permute.xlu0 %3451  ;;  %4544 = vmatprep.subr.bf16.mxu0 %v4996_v60 }
 0x3eb   : > { %v3396_v26 = vsel %vm7008_vm7, %v3384_v1, %v3395_v42  ;;  %v3419_v47 = vpop.permute.xlu1 %3418  ;;  %4545 = vmatpush1.bf16.msra.mxu0 %v4995_v30  ;;  %v3459_v60 = vrot.slane %v3452_v9, 4  ;;  %vm7015_vm7 = vcmask 318464  }
 0x3ec   : > { %v3425_v34 = vrot.slane %v3419_v47, 4  ;;  %3494 = vrot.lane.b32.xlu0 %v6128_v6, %s5154_s12  ;;  %v4997_v41 = vcombine.low %v3361_v55, %v3396_v26  ;;  %v4998_v51 = vcombine.high %v3361_v55, %v3396_v26 }
 0x3ed   : > { %3457 = vrot.lane.b32.xlu1 %v6128_v6, %s6984_s6 }
 0x3ee   : > { %v3428_v0 = vsel %vm246_vm0, %v3424_v56, %v3425_v34  ;;  %v6447_v19 = vpop.permute.xlu0 %3420  ;;  %4585 = vmatprep.subr.bf16.mxu1 %v4998_v51 }
 0x3ef   : > { %v3429_v3 = vsel %vm7009_vm6, %v3417_v22, %v3428_v0  ;;  %v3454_v1 = vpop.permute.xlu1 %3453  ;;  %v6921_v30 = vrot.slane %v6447_v19, 4  ;;  %4586 = vmatpush1.bf16.msra.mxu1 %v4997_v41  ;;  %vm7017_vm6 = vmmov %vm7015_vm7 }
 0x3f0   : > { %v3460_v42 = vrot.slane %v3454_v1, 4  ;;  %3576 = vrot.lane.b32.xlu0 %v6128_v6, %s5156_s14 }
 0x3f1   : > { %v3430_v55 = vsel %vm246_vm0, %v3425_v34, %v6921_v30  ;;  %3535 = vrot.lane.b32.xlu1 %v6128_v6, %s7010_s22 }
 0x3f2   : > { %v3463_v26 = vsel %vm246_vm0, %v3459_v60, %v3460_v42  ;;  %v3431_v22 = vsel %vm7011_vm8, %v3419_v47, %v3430_v55  ;;  %v3489_v56 = vpop.permute.xlu0 %3488  ;;  %vm7018_vm8 = vcmask 310272  }
 0x3f3   : > { %v3464_v51 = vsel %vm7012_vm14, %v3452_v9, %v3463_v26  ;;  %v6461_v41 = vpop.permute.xlu1 %3455  ;;  %v3498_v55 = vrot.slane %v3489_v56, 4  ;;  %vm7019_vm14 = vmmov %vm7018_vm8 }
 0x3f4   : > { %v6923_v0 = vrot.slane %v6461_v41, 4  ;;  %3658 = vrot.lane.b32.xlu0 %v6128_v6, %s6942_s11  ;;  %v5003_v25 = vcombine.low %v3429_v3, %v3464_v51  ;;  %v5004_v43 = vcombine.high %v3429_v3, %v3464_v51 }
 0x3f5   : > { %3617 = vrot.lane.b32.xlu1 %v6128_v6, %s6943_s10 }
 0x3f6   : > { %v3465_v34 = vsel %vm246_vm0, %v3460_v42, %v6923_v0  ;;  %v3530_v47 = vpop.permute.xlu0 %3529  ;;  %4546 = vmatprep.subr.bf16.mxu0 %v5004_v43 }
 0x3f7   : > { %v3466_v9 = vsel %vm7013_vm5, %v3454_v1, %v3465_v34  ;;  %v3491_v60 = vpop.permute.xlu1 %3490  ;;  %4547 = vmatpush1.bf16.msra.mxu0 %v5003_v25  ;;  %v3539_v42 = vrot.slane %v3530_v47, 4  ;;  %vm7020_vm5 = vcmask 302080  }
 0x3f8   : > { %v3499_v26 = vrot.slane %v3491_v60, 4  ;;  %3740 = vrot.lane.b32.xlu0 %v6128_v6, %s7014_s23  ;;  %v5005_v30 = vcombine.low %v3431_v22, %v3466_v9  ;;  %v5006_v3 = vcombine.high %v3431_v22, %v3466_v9 }
 0x3f9   : > { %3699 = vrot.lane.b32.xlu1 %v6128_v6, %s6944_s9 }
 0x3fa   : > { %v3503_v51 = vsel %vm246_vm0, %v3498_v55, %v3499_v26  ;;  %v6477_v57 = vpop.permute.xlu0 %3492  ;;  %4587 = vmatprep.subr.bf16.mxu1 %v5006_v3  ;;  %v3769_v3 = vld [vmem:[#allocation3 + $0x24] sm:$0xf] }
 0x3fb   : > { %v3504_v43 = vsel %vm7015_vm7, %v3489_v56, %v3503_v51  ;;  %v3532_v1 = vpop.permute.xlu1 %3531  ;;  %v6926_v25 = vrot.slane %v6477_v57, 4  ;;  %4588 = vmatpush1.bf16.msra.mxu1 %v5005_v30  ;;  %vm7021_vm7 = vmmov %vm7020_vm5 }
 0x3fc   : > { %v3540_v34 = vrot.slane %v3532_v1, 4  ;;  %3822 = vrot.lane.b32.xlu0 %v6128_v6, %s6987_s13 }
 0x3fd   : > { %v3505_v22 = vsel %vm246_vm0, %v3499_v26, %v6926_v25  ;;  %3781 = vrot.lane.b32.xlu1 %v6128_v6, %s7016_s24 }
 0x3fe   : > { %v3544_v9 = vsel %vm246_vm0, %v3539_v42, %v3540_v34  ;;  %v3506_v56 = vsel %vm7017_vm6, %v3491_v60, %v3505_v22  ;;  %v3571_v55 = vpop.permute.xlu0 %3570  ;;  %v3810_v42 = vld [vmem:[#allocation3 + $0x24] sm:$0xf]  ;;  %vm7022_vm6 = vcmask 236544  }
 0x3ff   : > { %v3545_v30 = vsel %vm7018_vm8, %v3530_v47, %v3544_v9  ;;  %v6491_v51 = vpop.permute.xlu1 %3533  ;;  %v3580_v47 = vrot.slane %v3571_v55, 4  ;;  %vm7023_vm8 = vmmov %vm7022_vm6 }
 0x400   : > { %v6928_v0 = vrot.slane %v6491_v51, 4  ;;  %v5011_v31 = vcombine.low %v3504_v43, %v3545_v30  ;;  %v5012_v63 = vcombine.high %v3504_v43, %v3545_v30 }
 0x401   : > { %3783 = vrot.lane.b32.xlu1 %v3769_v3, %s7016_s24 }
 0x402   : > { %v3546_v6 = vsel %vm246_vm0, %v3540_v34, %v6928_v0  ;;  %v3612_v26 = vpop.permute.xlu0 %3611  ;;  %4548 = vmatprep.subr.bf16.mxu0 %v5012_v63 }
 0x403   : > { %v3547_v60 = vsel %vm7019_vm14, %v3532_v1, %v3546_v6  ;;  %v3573_v22 = vpop.permute.xlu1 %3572  ;;  %4549 = vmatpush1.bf16.msra.mxu0 %v5011_v31  ;;  %v3621_v1 = vrot.slane %v3612_v26, 4  ;;  %vm7024_vm14 = vcmask 228352  }
 0x404   : > { %v3581_v9 = vrot.slane %v3573_v22, 4  ;;  %v5013_v25 = vcombine.low %v3506_v56, %v3547_v60  ;;  %v5014_v58 = vcombine.high %v3506_v56, %v3547_v60 }
 0x405   : > { %3824 = vrot.lane.b32.xlu1 %v3810_v42, %s6987_s13 }
 0x406   : > { %v3585_v43 = vsel %vm246_vm0, %v3580_v47, %v3581_v9  ;;  %v6501_v3 = vpop.permute.xlu0 %3574  ;;  %4589 = vmatprep.subr.bf16.mxu1 %v5014_v58 }
 0x407   : > { %v3586_v34 = vsel %vm7020_vm5, %v3571_v55, %v3585_v43  ;;  %v3614_v30 = vpop.permute.xlu1 %3613  ;;  %v6930_v63 = vrot.slane %v6501_v3, 4  ;;  %4590 = vmatpush1.bf16.msra.mxu1 %v5013_v25  ;;  %vm7025_vm5 = vmmov %vm7024_vm14 }
 0x408   : > { %v3622_v6 = vrot.slane %v3614_v30, 4 }
 0x409   : > { %v3587_v31 = vsel %vm246_vm0, %v3581_v9, %v6930_v63 }
 0x40a   : > { %v3626_v56 = vsel %vm246_vm0, %v3621_v1, %v3622_v6  ;;  %v3588_v42 = vsel %vm7021_vm7, %v3573_v22, %v3587_v31  ;;  %v3653_v60 = vpop.permute.xlu0 %3652  ;;  %vm7026_vm7 = vcmask 220160  }
 0x40b   : > { %v3627_v47 = vsel %vm7022_vm6, %v3612_v26, %v3626_v56  ;;  %v6511_v58 = vpop.permute.xlu1 %3615  ;;  %v3662_v22 = vrot.slane %v3653_v60, 4  ;;  %vm7027_vm6 = vmmov %vm7026_vm7 }
 0x40c   : > { %v6932_v55 = vrot.slane %v6511_v58, 4  ;;  %v5019_v43 = vcombine.low %v3586_v34, %v3627_v47  ;;  %v5020_v0 = vcombine.high %v3586_v34, %v3627_v47 }
 0x40e   : > { %v3628_v25 = vsel %vm246_vm0, %v3622_v6, %v6932_v55  ;;  %v3694_v29 = vpop.permute.xlu0 %3693  ;;  %4550 = vmatprep.subr.bf16.mxu0 %v5020_v0 }
 0x40f   : > { %v3629_v9 = vsel %vm7023_vm8, %v3614_v30, %v3628_v25  ;;  %v3655_v1 = vpop.permute.xlu1 %3654  ;;  %4551 = vmatpush1.bf16.msra.mxu0 %v5019_v43  ;;  %v3703_v0 = vrot.slane %v3694_v29, 4 }
 0x410   : > { %v3663_v31 = vrot.slane %v3655_v1, 4  ;;  %v5021_v63 = vcombine.low %v3588_v42, %v3629_v9  ;;  %v5022_v26 = vcombine.high %v3588_v42, %v3629_v9 }
 0x412   : > { %v3667_v56 = vsel %vm246_vm0, %v3662_v22, %v3663_v31  ;;  %v6519_v18 = vpop.permute.xlu0 %3656  ;;  %4591 = vmatprep.subr.bf16.mxu1 %v5022_v26 }
 0x413   : > { %v3668_v34 = vsel %vm7024_vm14, %v3653_v60, %v3667_v56  ;;  %v3696_v47 = vpop.permute.xlu1 %3695  ;;  %v6934_v6 = vrot.slane %v6519_v18, 4  ;;  %4592 = vmatpush1.bf16.msra.mxu1 %v5021_v63  ;;  %vm7040_vm14 = vcmask 736256  }
 0x414   : > { %v3704_v55 = vrot.slane %v3696_v47, 4 }
 0x415   : > { %v3669_v30 = vsel %vm246_vm0, %v3663_v31, %v6934_v6 }
 0x416   : > { %v3708_v43 = vsel %vm246_vm0, %v3703_v0, %v3704_v55  ;;  %v3670_v42 = vsel %vm7025_vm5, %v3655_v1, %v3669_v30  ;;  %v3735_v25 = vpop.permute.xlu0 %3734  ;;  %vm7042_vm5 = vcmask 728064  }
 0x417   : > { %v3709_v9 = vsel %vm7026_vm7, %v3694_v29, %v3708_v43  ;;  %v6529_v22 = vpop.permute.xlu1 %3697  ;;  %v3744_v1 = vrot.slane %v3735_v25, 4  ;;  %vm7043_vm7 = vmmov %vm7040_vm14 }
 0x418   : > { %v6936_v60 = vrot.slane %v6529_v22, 4  ;;  %v5027_v26 = vcombine.low %v3668_v34, %v3709_v9  ;;  %v5028_v56 = vcombine.high %v3668_v34, %v3709_v9 }
 0x41a   : > { %v3710_v63 = vsel %vm246_vm0, %v3704_v55, %v6936_v60  ;;  %v3776_v40 = vpop.permute.xlu0 %3775  ;;  %4552 = vmatprep.subr.bf16.mxu0 %v5028_v56 }
 0x41b   : > { %v3711_v31 = vsel %vm7027_vm6, %v3696_v47, %v3710_v63  ;;  %v3737_v0 = vpop.permute.xlu1 %3736  ;;  %4553 = vmatpush1.bf16.msra.mxu0 %v5027_v26  ;;  %v3785_v56 = vrot.slane %v3776_v40, 4  ;;  %vm7045_vm6 = vmmov %vm7042_vm5 }
 0x41c   : > { %v3745_v30 = vrot.slane %v3737_v0, 4  ;;  %v5029_v6 = vcombine.low %v3670_v42, %v3711_v31  ;;  %v5030_v29 = vcombine.high %v3670_v42, %v3711_v31 }
 0x41e   : > { %v3749_v43 = vsel %vm246_vm0, %v3744_v1, %v3745_v30  ;;  %v6537_v27 = vpop.permute.xlu0 %3738  ;;  %4593 = vmatprep.subr.bf16.mxu1 %v5030_v29 }
 0x41f   : > { %v3750_v34 = vsel %vm1950_vm13, %v3735_v25, %v3749_v43  ;;  %v3778_v9 = vpop.permute.xlu1 %3777  ;;  %v6938_v55 = vrot.slane %v6537_v27, 4  ;;  %4594 = vmatpush1.bf16.msra.mxu1 %v5029_v6 }
 0x420   : > { %v3786_v60 = vrot.slane %v3778_v9, 4 }
 0x421   : > { %v3751_v47 = vsel %vm246_vm0, %v3745_v30, %v6938_v55 }
 0x422   : > { %v3790_v26 = vsel %vm246_vm0, %v3785_v56, %v3786_v60  ;;  %v3752_v42 = vsel %vm1950_vm13, %v3737_v0, %v3751_v47  ;;  %v3817_v63 = vpop.permute.xlu0 %3816 }
 0x423   : > { %v3791_v31 = vsel %vm2026_vm10, %v3776_v40, %v3790_v26  ;;  %v6547_v1 = vpop.permute.xlu1 %3779  ;;  %v3826_v0 = vrot.slane %v3817_v63, 4 }
 0x424   : > { %v3787_v25 = vrot.slane %v6547_v1, 4  ;;  %v5035_v29 = vcombine.low %v3750_v34, %v3791_v31  ;;  %v5036_v43 = vcombine.high %v3750_v34, %v3791_v31 }
 0x426   : > { %v3792_v6 = vsel %vm246_vm0, %v3786_v60, %v3787_v25  ;;  %v2830_v10 = vpop.permute.xlu0 %2829  ;;  %4554 = vmatprep.subr.bf16.mxu0 %v5036_v43 }
 0x427   : > { %v3793_v30 = vsel %vm2026_vm10, %v3778_v9, %v3792_v6  ;;  %v3819_v56 = vpop.permute.xlu1 %3818  ;;  %v2834_v55 = vrot.slane %v2830_v10, 4  ;;  %4555 = vmatpush1.bf16.msra.mxu0 %v5035_v29 }
 0x428   : > { %v3827_v47 = vrot.slane %v3819_v56, 4  ;;  %v5037_v40 = vcombine.low %v3752_v42, %v3793_v30  ;;  %v5038_v26 = vcombine.high %v3752_v42, %v3793_v30 }
 0x429   : > { %v2839_v49 = vsel %vm246_vm0, %v2833_v45, %v2834_v55  ;;  %v2841_v34 = vsel %vm248_vm2, %v2830_v10, %v2834_v55 }
 0x42a   : > { %v3831_v31 = vsel %vm246_vm0, %v3826_v0, %v3827_v47  ;;  %v2840_v60 = vsel %vm248_vm2, %v6220_v16, %v2839_v49  ;;  %2849 = vst.msk [vmem:[#allocation2 + $0x18] sm:$0xff] %vm6118_vm15, %v2841_v34  ;;  %v6563_v9 = vpop.permute.xlu0 %3820  ;;  %4595 = vmatprep.subr.bf16.mxu1 %v5038_v26  ;;  %v6572_v49 = vcombine.low %v6307_v48, %v6307_v48 }
 0x42b   : > { %v3832_v29 = vsel %vm2101_vm9, %v3817_v63, %v3831_v31  ;;  %2848 = vst [vmem:[#allocation2 + $0x10] sm:$0xff] %v2840_v60  ;;  %v2865_v42 = vpop.permute.xlu1 %2864  ;;  %v3828_v43 = vrot.slane %v6563_v9, 4  ;;  %4596 = vmatpush1.bf16.msra.mxu1 %v5037_v40 }
 0x42c   : > { %v2869_v45 = vrot.slane %v2865_v42, 4  ;;  %v5044_v10 = vcombine.high %v3832_v29, %v3832_v29  ;;  %v5043_v55 = vcombine.low %v3832_v29, %v3832_v29 }
 0x42d   : > { %v3833_v16 = vsel %vm246_vm0, %v3827_v47, %v3828_v43 }
 0x42e   : > { %v2874_v63 = vsel %vm246_vm0, %v2868_v20, %v2869_v45  ;;  %v2876_v6 = vsel %vm313_vm1, %v2865_v42, %v2869_v45  ;;  %v3834_v30 = vsel %vm2101_vm9, %v3819_v56, %v3833_v16  ;;  %v2937_v0 = vpop.permute.xlu0 %2936  ;;  %5051 = vmatprep.subr.msk.bf16.mxu0 %vm246_vm0, %v5044_v10  ;;  %v4507_v40 = vsel %vm246_vm0, %v5043_v55, 0 }
 0x42f   : > { %v2875_v47 = vsel %vm313_vm1, %v6217_v35, %v2874_v63  ;;  %2884 = vst.msk [vmem:[#allocation2 + $0x38] sm:$0xff] %vm6118_vm15, %v2876_v6  ;;  %v2900_v48 = vpop.permute.xlu1 %2899  ;;  %v2943_v26 = vrot.slane %v2937_v0, 4  ;;  %4557 = vmatpush1.bf16.msra.mxu0 %v4507_v40  ;;  %v5046_v34 = vcombine.high %v3834_v30, %v3834_v30  ;;  %v5045_v20 = vcombine.low %v3834_v30, %v3834_v30 }
 0x430   : > { %2883 = vst [vmem:[#allocation2 + $0x30] sm:$0xff] %v2875_v47  ;;  %v2904_v31 = vrot.slane %v2900_v48, 4  ;;  %v4943_v29 = vcombine.low %v2840_v60, %v2875_v47  ;;  %v4944_v56 = vcombine.high %v2840_v60, %v2875_v47  ;;  %v7028_v42 = vrot.slane %v6247_v8, 4 }
 0x431   : > { %5053 = vmatprep.subr.msk.bf16.mxu1 %vm246_vm0, %v5046_v34  ;;  %v4513_v35 = vsel %vm246_vm0, %v5045_v20, 0  ;;  %v7029_v10 = vrot.slane %v6250_v28, 4  ;;  %vm7031_vm1 = vcmask 818176  }
 0x432   : > { %v2949_v45 = vsel %vm246_vm0, %v7028_v42, %v2943_v26  ;;  %v2911_v16 = vsel %vm378_vm3, %v2900_v48, %v2904_v31  ;;  %v2978_v6 = vpop.permute.xlu0 %2977  ;;  %4612 = vmatprep.subr.bf16.mxu0 %v4944_v56  ;;  %4563 = vmatmul.mubr.bf16.vlgmr.msra.gmra.mrb[8].mxu0 %v6572_v49  ;;  %v3851_v42 = vld [vmem:[#allocation2 + $0x18] sm:$0xff]  ;;  %vm7033_vm2 = vmmov %vm7031_vm1 }
 0x433   : > { %v2909_v55 = vsel %vm246_vm0, %v7029_v10, %v2904_v31  ;;  %v2950_v63 = vsel %vm453_vm4, %v6247_v8, %v2949_v45  ;;  %2919 = vst.msk [vmem:[#allocation2 + $0x58] sm:$0xff] %vm6118_vm15, %v2911_v16  ;;  %v2939_v30 = vpop.permute.xlu1 %2938  ;;  %v2984_v40 = vrot.slane %v2978_v6, 4  ;;  %4598 = vmatpush1.bf16.msra.mxu1 %v4513_v35  ;;  %4613 = vmatpush1.bf16.msra.mxu0 %v4943_v29  ;;  %v7030_v8 = vrot.slane %v6280_v32, 4 }
 0x434   : > { %v2910_v60 = vsel %vm378_vm3, %v6250_v28, %v2909_v55  ;;  %2959 = vst [vmem:[#allocation2 + $0x70] sm:$0xff] %v2950_v63  ;;  %v2944_v47 = vrot.slane %v2939_v30, 4  ;;  %5056 = vmatprep.mubr.msk.bf16.mxu0 %vm4502_vm11, %v6313_v61  ;;  %vm7034_vm3 = vcmask 809984  }
 0x435   : > { %2918 = vst [vmem:[#allocation2 + $0x50] sm:$0xff] %v2910_v60  ;;  %v4951_v48 = vcombine.low %v2910_v60, %v2950_v63  ;;  %v4952_v34 = vcombine.high %v2910_v60, %v2950_v63  ;;  %v2990_v20 = vsel %vm246_vm0, %v7030_v8, %v2984_v40  ;;  %v7032_v63 = vrot.slane %v6277_v4, 4 }
 0x436   : > { %v2951_v28 = vsel %vm246_vm0, %v2943_v26, %v2944_v47  ;;  %v2991_v31 = vsel %vm7031_vm1, %v6280_v32, %v2990_v20  ;;  %v2980_v56 = vpop.permute.xlu0 %2979  ;;  %v3855_v45 = vld [vmem:[#allocation2 + $0x38] sm:$0xff]  ;;  %4604 = vmatmul.mubr.bf16.vlgmr.msra.gmra.mrb[8].mxu1 %v6572_v49  ;;  %v7035_v20 = vrot.slane %v6325_v33, 4  ;;  %vm7046_vm1 = vcmask 89088  }
 0x437   : > { %4614 = vmatprep.subr.bf16.mxu0 %v4952_v34  ;;  %v2952_v29 = vsel %vm453_vm4, %v2937_v0, %v2951_v28  ;;  %3000 = vst [vmem:[#allocation2 + $0x90] sm:$0xff] %v2991_v31  ;;  %v3019_v35 = vpop.permute.xlu1 %3018  ;;  %v2985_v10 = vrot.slane %v2980_v56, 4  ;;  %v4945_v55 = vcombine.low %v3851_v42, %v3855_v45  ;;  %v4946_v16 = vcombine.high %v3851_v42, %v3855_v45 }
 0x438   : > { %4615 = vmatpush1.bf16.msra.mxu0 %v4951_v48  ;;  %5058 = vmatprep.mubr.msk.bf16.mxu1 %vm4502_vm11, %v6313_v61  ;;  %2960 = vst.msk [vmem:[#allocation2 + $0x78] sm:$0xff] %vm6118_vm15, %v2952_v29  ;;  %v3025_v32 = vrot.slane %v3019_v35, 4  ;;  %vm7036_vm4 = vcmask 744448   ;;  %vm7037_vm11 = vmmov %vm7034_vm3 }
 0x439   : > { %v2992_v26 = vsel %vm246_vm0, %v2984_v40, %v2985_v10  ;;  %4653 = vmatprep.subr.bf16.mxu1 %v4946_v16  ;;  %vm7039_vm8 = vmmov %vm7036_vm4 }
 0x43a   : > { %v3031_v0 = vsel %vm246_vm0, %v7032_v63, %v3025_v32  ;;  %v2993_v60 = vsel %vm7033_vm2, %v2978_v6, %v2992_v26  ;;  %v3060_v30 = vpop.permute.xlu0 %3059  ;;  %4654 = vmatpush1.bf16.msra.mxu1 %v4945_v55  ;;  %v3859_v10 = vld [vmem:[#allocation2 + $0x58] sm:$0xff]  ;;  %vm7048_vm2 = vcmask 80896  }
 0x43b   : > { %v3032_v47 = vsel %vm7034_vm3, %v6277_v4, %v3031_v0  ;;  %3001 = vst.msk [vmem:[#allocation2 + $0x98] sm:$0xff] %vm6118_vm15, %v2993_v60  ;;  %v3021_v61 = vpop.permute.xlu1 %3020  ;;  %v3066_v48 = vrot.slane %v3060_v30, 4  ;;  %vm7049_vm3 = vmmov %vm7046_vm1 }
 0x43c   : > { %3041 = vst [vmem:[#allocation2 + $0xb0] sm:$0xff] %v3032_v47  ;;  %v3026_v34 = vrot.slane %v3021_v61, 4  ;;  %v4959_v40 = vcombine.low %v2991_v31, %v3032_v47  ;;  %v4960_v8 = vcombine.high %v2991_v31, %v3032_v47 }
 0x43d   : > { %v3072_v28 = vsel %vm246_vm0, %v7035_v20, %v3066_v48 }
 0x43e   : > { %v3033_v6 = vsel %vm246_vm0, %v3025_v32, %v3026_v34  ;;  %v3073_v56 = vsel %vm7036_vm4, %v6325_v33, %v3072_v28  ;;  %v3062_v42 = vpop.permute.xlu0 %3061  ;;  %4616 = vmatprep.subr.bf16.mxu0 %v4960_v8  ;;  %v7038_v33 = vrot.slane %v6318_v39, 4  ;;  %v7041_v8 = vrot.slane %v6353_v52, 4  ;;  %vm7051_vm4 = vmmov %vm7048_vm2 }
 0x43f   : > { %v3034_v4 = vsel %vm7037_vm11, %v3019_v35, %v3033_v6  ;;  %3082 = vst [vmem:[#allocation2 + $0xd0] sm:$0xff] %v3073_v56  ;;  %v3101_v45 = vpop.permute.xlu1 %3100  ;;  %v3067_v29 = vrot.slane %v3062_v42, 4  ;;  %v3863_v55 = vld [vmem:[#allocation2 + $0x78] sm:$0xff]  ;;  %4617 = vmatpush1.bf16.msra.mxu0 %v4959_v40  ;;  %vm7052_vm11 = vcmask 72704  }
 0x440   : > { %3042 = vst.msk [vmem:[#allocation2 + $0xb8] sm:$0xff] %vm6118_vm15, %v3034_v4  ;;  %v3107_v31 = vrot.slane %v3101_v45, 4  ;;  %v4953_v16 = vcombine.low %v3859_v10, %v3863_v55  ;;  %v4954_v26 = vcombine.high %v3859_v10, %v3863_v55 }
 0x441   : > { %v3074_v32 = vsel %vm246_vm0, %v3066_v48, %v3067_v29 }
 0x442   : > { %v3113_v63 = vsel %vm246_vm0, %v7038_v33, %v3107_v31  ;;  %v3075_v35 = vsel %vm7039_vm8, %v3060_v30, %v3074_v32  ;;  %4655 = vmatprep.subr.bf16.mxu1 %v4954_v26  ;;  %v3142_v0 = vpop.permute.xlu0 %3141  ;;  %v3867_v29 = vld [vmem:[#allocation2 + $0x98] sm:$0xff]  ;;  %vm7054_vm8 = vcmask 7168  }
 0x443   : > { %v3114_v60 = vsel %vm7040_vm14, %v6318_v39, %v3113_v63  ;;  %3083 = vst.msk [vmem:[#allocation2 + $0xd8] sm:$0xff] %vm6118_vm15, %v3075_v35  ;;  %v3103_v47 = vpop.permute.xlu1 %3102  ;;  %4656 = vmatpush1.bf16.msra.mxu1 %v4953_v16  ;;  %v3148_v61 = vrot.slane %v3142_v0, 4  ;;  %vm7055_vm14 = vmmov %vm7052_vm11 }
 0x444   : > { %3123 = vst [vmem:[#allocation2 + $0xf0] sm:$0xff] %v3114_v60  ;;  %v3108_v34 = vrot.slane %v3103_v47, 4  ;;  %v4967_v48 = vcombine.low %v3073_v56, %v3114_v60  ;;  %v4968_v40 = vcombine.high %v3073_v56, %v3114_v60 }
 0x445   : > { %v3154_v20 = vsel %vm246_vm0, %v7041_v8, %v3148_v61 }
 0x446   : > { %v3115_v30 = vsel %vm246_vm0, %v3107_v31, %v3108_v34  ;;  %v3155_v28 = vsel %vm7042_vm5, %v6353_v52, %v3154_v20  ;;  %v3144_v39 = vpop.permute.xlu0 %3143  ;;  %4618 = vmatprep.subr.bf16.mxu0 %v4968_v40  ;;  %v7044_v52 = vrot.slane %v6350_v14, 4  ;;  %v7047_v34 = vrot.slane %v6380_v11, 4 }
 0x447   : > { %v3116_v6 = vsel %vm7043_vm7, %v3101_v45, %v3115_v30  ;;  %3164 = vst [vmem:[#allocation2 + $0x110] sm:$0xff] %v3155_v28  ;;  %v3183_v42 = vpop.permute.xlu1 %3182  ;;  %v3149_v4 = vrot.slane %v3144_v39, 4  ;;  %v3871_v10 = vld [vmem:[#allocation2 + $0xb8] sm:$0xff]  ;;  %4619 = vmatpush1.bf16.msra.mxu0 %v4967_v48  ;;  %vm7057_vm5 = vcmask 1039360  }
 0x448   : > { %3124 = vst.msk [vmem:[#allocation2 + $0xf8] sm:$0xff] %vm6118_vm15, %v3116_v6  ;;  %v3189_v56 = vrot.slane %v3183_v42, 4  ;;  %v4961_v55 = vcombine.low %v3867_v29, %v3871_v10  ;;  %v4962_v16 = vcombine.high %v3867_v29, %v3871_v10  ;;  %vm7058_vm7 = vmmov %vm7057_vm5 }
 0x449   : > { %v3156_v31 = vsel %vm246_vm0, %v3148_v61, %v3149_v4 }
 0x44a   : > { %v3195_v26 = vsel %vm246_vm0, %v7044_v52, %v3189_v56  ;;  %v3157_v45 = vsel %vm7045_vm6, %v3142_v0, %v3156_v31  ;;  %4657 = vmatprep.subr.bf16.mxu1 %v4962_v16  ;;  %v3224_v32 = vpop.permute.xlu0 %3223  ;;  %v3875_v39 = vld [vmem:[#allocation2 + $0xd8] sm:$0xff]  ;;  %vm7059_vm6 = vmmov %vm7054_vm8 }
 0x44b   : > { %v3196_v33 = vsel %vm7046_vm1, %v6350_v14, %v3195_v26  ;;  %3165 = vst.msk [vmem:[#allocation2 + $0x118] sm:$0xff] %vm6118_vm15, %v3157_v45  ;;  %v3185_v63 = vpop.permute.xlu1 %3184  ;;  %4658 = vmatpush1.bf16.msra.mxu1 %v4961_v55  ;;  %v3230_v35 = vrot.slane %v3224_v32, 4  ;;  %vm7061_vm1 = vcmask 965632  }
 0x44c   : > { %3205 = vst [vmem:[#allocation2 + $0x130] sm:$0xff] %v3196_v33  ;;  %v3190_v60 = vrot.slane %v3185_v63, 4  ;;  %v4975_v47 = vcombine.low %v3155_v28, %v3196_v33  ;;  %v4976_v61 = vcombine.high %v3155_v28, %v3196_v33  ;;  %v7053_v63 = vrot.slane %v6400_v21, 4 }
 0x44d   : > { %v3236_v48 = vsel %vm246_vm0, %v7047_v34, %v3230_v35 }
 0x44e   : > { %v3197_v0 = vsel %vm246_vm0, %v3189_v56, %v3190_v60  ;;  %v3237_v40 = vsel %vm7048_vm2, %v6380_v11, %v3236_v48  ;;  %v3226_v14 = vpop.permute.xlu0 %3225  ;;  %4620 = vmatprep.subr.bf16.mxu0 %v4976_v61  ;;  %v7050_v11 = vrot.slane %v6377_v53, 4  ;;  %vm7063_vm2 = vcmask 973824  }
 0x44f   : > { %v3198_v8 = vsel %vm7049_vm3, %v3183_v42, %v3197_v0  ;;  %3246 = vst [vmem:[#allocation2 + $0x150] sm:$0xff] %v3237_v40  ;;  %v3265_v20 = vpop.permute.xlu1 %3264  ;;  %v3231_v30 = vrot.slane %v3226_v14, 4  ;;  %v3879_v6 = vld [vmem:[#allocation2 + $0xf8] sm:$0xff]  ;;  %4621 = vmatpush1.bf16.msra.mxu0 %v4975_v47  ;;  %v3902_v47 = vld [vmem:[#allocation2 + $0x1b0] sm:$0xff]  ;;  %vm7064_vm3 = vmmov %vm7061_vm1 }
 0x450   : > { %3206 = vst.msk [vmem:[#allocation2 + $0x138] sm:$0xff] %vm6118_vm15, %v3198_v8  ;;  %v3271_v28 = vrot.slane %v3265_v20, 4  ;;  %v4969_v4 = vcombine.low %v3875_v39, %v3879_v6  ;;  %v4970_v29 = vcombine.high %v3875_v39, %v3879_v6 }
 0x451   : > { %v3238_v10 = vsel %vm246_vm0, %v3230_v35, %v3231_v30 }
 0x452   : > { %v3277_v56 = vsel %vm246_vm0, %v7050_v11, %v3271_v28  ;;  %v3239_v42 = vsel %vm7051_vm4, %v3224_v32, %v3238_v10  ;;  %4659 = vmatprep.subr.bf16.mxu1 %v4970_v29  ;;  %v3306_v55 = vpop.permute.xlu0 %3305  ;;  %v3883_v0 = vld [vmem:[#allocation2 + $0x118] sm:$0xff]  ;;  %vm7065_vm4 = vmmov %vm7063_vm2 }
 0x453   : > { %v3278_v16 = vsel %vm7052_vm11, %v6377_v53, %v3277_v56  ;;  %3247 = vst.msk [vmem:[#allocation2 + $0x158] sm:$0xff] %vm6118_vm15, %v3239_v42  ;;  %v3267_v31 = vpop.permute.xlu1 %3266  ;;  %4660 = vmatpush1.bf16.msra.mxu1 %v4969_v4  ;;  %v3312_v52 = vrot.slane %v3306_v55, 4  ;;  %vm7068_vm11 = vcmask 957440  }
 0x454   : > { %3287 = vst [vmem:[#allocation2 + $0x170] sm:$0xff] %v3278_v16  ;;  %v3272_v26 = vrot.slane %v3267_v31, 4  ;;  %v4983_v45 = vcombine.low %v3237_v40, %v3278_v16  ;;  %v4984_v33 = vcombine.high %v3237_v40, %v3278_v16  ;;  %v7060_v31 = vrot.slane %v6447_v19, 4 }
 0x455   : > { %v3318_v35 = vsel %vm246_vm0, %v7053_v63, %v3312_v52 }
 0x456   : > { %v3279_v32 = vsel %vm246_vm0, %v3271_v28, %v3272_v26  ;;  %v3319_v60 = vsel %vm7054_vm8, %v6400_v21, %v3318_v35  ;;  %v3353_v53 = vpop.permute.xlu0 %3352  ;;  %4622 = vmatprep.subr.bf16.mxu0 %v4984_v33  ;;  %v7056_v21 = vrot.slane %v6418_v36, 4  ;;  %v7062_v26 = vrot.slane %v6431_v2, 4 }
 0x457   : > { %v3280_v61 = vsel %vm7055_vm14, %v3265_v20, %v3279_v32  ;;  %3328 = vst [vmem:[#allocation2 + $0x190] sm:$0xff] %v3319_v60  ;;  %v3308_v34 = vpop.permute.xlu1 %3307  ;;  %v3357_v48 = vrot.slane %v3353_v53, 4  ;;  %v3887_v14 = vld [vmem:[#allocation2 + $0x138] sm:$0xff]  ;;  %4623 = vmatpush1.bf16.msra.mxu0 %v4983_v45  ;;  %v4991_v40 = vcombine.low %v3319_v60, %v3902_v47  ;;  %v4992_v8 = vcombine.high %v3319_v60, %v3902_v47 }
 0x458   : > { %3288 = vst.msk [vmem:[#allocation2 + $0x178] sm:$0xff] %vm6118_vm15, %v3280_v61  ;;  %v3313_v30 = vrot.slane %v3308_v34, 4  ;;  %v4977_v39 = vcombine.low %v3883_v0, %v3887_v14  ;;  %v4978_v6 = vcombine.high %v3883_v0, %v3887_v14  ;;  %v3502_v35 = vrot.slane %v6077_v15, 4 }
 0x459   : > { %v3362_v28 = vsel %vm246_vm0, %v7056_v21, %v3357_v48  ;;  %v3364_v20 = vsel %vm7057_vm5, %v3353_v53, %v3357_v48  ;;  %4624 = vmatprep.subr.bf16.mxu0 %v4992_v8  ;;  %v7066_v14 = vrot.slane %v6477_v57, 4  ;;  %vm7069_vm8 = vcmask 318464   ;;  %vm7071_vm5 = vmmov %vm7068_vm11 }
 0x45a   : > { %v3320_v4 = vsel %vm246_vm0, %v3312_v52, %v3313_v30  ;;  %v3363_v29 = vsel %vm7058_vm7, %v6418_v36, %v3362_v28  ;;  %3372 = vst.msk [vmem:[#allocation2 + $0x1d8] sm:$0xff] %vm6118_vm15, %v3364_v20  ;;  %4661 = vmatprep.subr.bf16.mxu1 %v4978_v6  ;;  %v3423_v10 = vpop.permute.xlu0 %3422  ;;  %v3891_v47 = vld [vmem:[#allocation2 + $0x158] sm:$0xff]  ;;  %vm7070_vm14 = vmmov %vm7069_vm8  ;;  %v3543_v20 = vrot.slane %v6079_v54, 4  ;;  %vm7074_vm7 = vcmask 302080  }
 0x45b   : > { %v3321_v11 = vsel %vm7059_vm6, %v3306_v55, %v3320_v4  ;;  %v3388_v56 = vpop.permute.xlu1 %3387  ;;  %4662 = vmatpush1.bf16.msra.mxu1 %v4977_v39  ;;  %v3427_v42 = vrot.slane %v3423_v10, 4  ;;  %4625 = vmatpush1.bf16.msra.mxu0 %v4991_v40  ;;  %v3584_v4 = vrot.slane %v6081_v24, 4  ;;  %vm7075_vm6 = vmmov %vm7074_vm7 }
 0x45c   : > { %3329 = vst.msk [vmem:[#allocation2 + $0x198] sm:$0xff] %vm6118_vm15, %v3321_v11  ;;  %v3392_v16 = vrot.slane %v3388_v56, 4 }
 0x45d   : > { %v3432_v52 = vsel %vm246_vm0, %v7060_v31, %v3427_v42  ;;  %v3434_v36 = vsel %vm7061_vm1, %v3423_v10, %v3427_v42  ;;  %v3625_v31 = vrot.slane %v6083_v17, 4  ;;  %vm7076_vm1 = vcmask 310272  }
 0x45e   : > { %v3397_v45 = vsel %vm246_vm0, %v7062_v26, %v3392_v16  ;;  %v3399_v55 = vsel %vm7063_vm2, %v3388_v56, %v3392_v16  ;;  %v3433_v33 = vsel %vm7064_vm3, %v6447_v19, %v3432_v52  ;;  %3442 = vst.msk [vmem:[#allocation2 + $0x218] sm:$0xff] %vm6118_vm15, %v3434_v36  ;;  %v3495_v63 = vpop.permute.xlu0 %3494  ;;  %v3903_v56 = vld [vmem:[#allocation2 + $0x1b8] sm:$0xff]  ;;  %vm7077_vm2 = vmmov %vm7076_vm1  ;;  %vm7080_vm3 = vcmask 228352  }
 0x45f   : > { %v3398_v32 = vsel %vm7065_vm4, %v6431_v2, %v3397_v45  ;;  %3407 = vst.msk [vmem:[#allocation2 + $0x1f8] sm:$0xff] %vm6118_vm15, %v3399_v55  ;;  %v3458_v60 = vpop.permute.xlu1 %3457  ;;  %v3501_v53 = vrot.slane %v3495_v63, 4  ;;  %v3895_v61 = vld [vmem:[#allocation2 + $0x178] sm:$0xff]  ;;  %v7067_v2 = vrot.slane %v6461_v41, 4  ;;  %v7073_v45 = vrot.slane %v6491_v51, 4  ;;  %vm7081_vm4 = vmmov %vm7080_vm3 }
 0x460   : > { %v3462_v34 = vrot.slane %v3458_v60, 4  ;;  %v4985_v48 = vcombine.low %v3891_v47, %v3895_v61  ;;  %v4986_v0 = vcombine.high %v3891_v47, %v3895_v61  ;;  %v4999_v19 = vcombine.low %v3363_v29, %v3398_v32 }
 0x461   : > { %v3507_v40 = vsel %vm246_vm0, %v7066_v14, %v3501_v53  ;;  %v3509_v15 = vsel %vm246_vm0, %v3501_v53, %v3502_v35  ;;  %v5000_v8 = vcombine.high %v3363_v29, %v3398_v32  ;;  %v3666_v53 = vrot.slane %v6085_v50, 4 }
 0x462   : > { %v3467_v30 = vsel %vm246_vm0, %v7067_v2, %v3462_v34  ;;  %v3469_v39 = vsel %vm7068_vm11, %v3458_v60, %v3462_v34  ;;  %v6726_v6 = vsel %vm7069_vm8, %v6477_v57, %v3507_v40  ;;  %v3510_v21 = vsel %vm7070_vm14, %v3495_v63, %v3509_v15  ;;  %4663 = vmatprep.subr.bf16.mxu1 %v4986_v0  ;;  %v3577_v28 = vpop.permute.xlu0 %3576 }
 0x463   : > { %v3468_v29 = vsel %vm7071_vm5, %v6461_v41, %v3467_v30  ;;  %3477 = vst.msk [vmem:[#allocation2 + $0x238] sm:$0xff] %vm6118_vm15, %v3469_v39  ;;  %3518 = vst.msk [vmem:[#allocation2 + $0x258] sm:$0xff] %vm6118_vm15, %v3510_v21  ;;  %v3536_v10 = vpop.permute.xlu1 %3535  ;;  %4664 = vmatpush1.bf16.msra.mxu1 %v4985_v48  ;;  %v3583_v57 = vrot.slane %v3577_v28, 4  ;;  %v3899_v11 = vld [vmem:[#allocation2 + $0x198] sm:$0xff]  ;;  %4626 = vmatprep.subr.bf16.mxu0 %v5000_v8  ;;  %v7072_v41 = vrot.slane %v6501_v3, 4  ;;  %v7078_v14 = vrot.slane %v6519_v18, 4 }
 0x464   : > { %v3542_v42 = vrot.slane %v3536_v10, 4  ;;  %v4993_v16 = vcombine.low %v3899_v11, %v3903_v56  ;;  %v4994_v54 = vcombine.high %v3899_v11, %v3903_v56  ;;  %4627 = vmatpush1.bf16.msra.mxu0 %v4999_v19  ;;  %v5007_v24 = vcombine.low %v3433_v33, %v3468_v29 }
 0x465   : > { %v3589_v52 = vsel %vm246_vm0, %v7072_v41, %v3583_v57  ;;  %v3591_v36 = vsel %vm246_vm0, %v3583_v57, %v3584_v4  ;;  %v5008_v26 = vcombine.high %v3433_v33, %v3468_v29  ;;  %v3707_v19 = vrot.slane %v6087_v37, 4  ;;  %v3915_v11 = vld [vmem:[#allocation2 + $0x218] sm:$0xff] }
 0x466   : > { %v3548_v55 = vsel %vm246_vm0, %v7073_v45, %v3542_v42  ;;  %v3550_v63 = vsel %vm246_vm0, %v3542_v42, %v3543_v20  ;;  %v6748_v35 = vsel %vm7074_vm7, %v6501_v3, %v3589_v52  ;;  %v3592_v32 = vsel %vm7075_vm6, %v3577_v28, %v3591_v36  ;;  %4665 = vmatprep.subr.bf16.mxu1 %v4994_v54  ;;  %v3659_v17 = vpop.permute.xlu0 %3658  ;;  %v3911_v60 = vld [vmem:[#allocation2 + $0x1f8] sm:$0xff] }
 0x467   : > { %v3549_v33 = vsel %vm7076_vm1, %v6491_v51, %v3548_v55  ;;  %v3551_v47 = vsel %vm7077_vm2, %v3536_v10, %v3550_v63  ;;  %3600 = vst.msk [vmem:[#allocation2 + $0x298] sm:$0xff] %vm6118_vm15, %v3592_v32  ;;  %v3618_v61 = vpop.permute.xlu1 %3617  ;;  %4666 = vmatpush1.bf16.msra.mxu1 %v4993_v16  ;;  %v3665_v34 = vrot.slane %v3659_v17, 4  ;;  %v3907_v3 = vld [vmem:[#allocation2 + $0x1d8] sm:$0xff]  ;;  %4628 = vmatprep.subr.bf16.mxu0 %v5008_v26  ;;  %v7079_v2 = vrot.slane %v6511_v58, 4 }
 0x468   : > { %3559 = vst.msk [vmem:[#allocation2 + $0x278] sm:$0xff] %vm6118_vm15, %v3551_v47  ;;  %v3624_v48 = vrot.slane %v3618_v61, 4  ;;  %v5002_v0 = vcombine.high %v3907_v3, %v3911_v60  ;;  %4629 = vmatpush1.bf16.msra.mxu0 %v5007_v24  ;;  %v5015_v50 = vcombine.low %v6726_v6, %v3549_v33  ;;  %v5016_v51 = vcombine.high %v6726_v6, %v3549_v33 }
 0x469   : > { %v3671_v40 = vsel %vm246_vm0, %v7078_v14, %v3665_v34  ;;  %v3673_v15 = vsel %vm246_vm0, %v3665_v34, %v3666_v53  ;;  %v5001_v8 = vcombine.low %v3907_v3, %v3911_v60  ;;  %v3748_v20 = vrot.slane %v6089_v5, 4 }
 0x46a   : > { %v3630_v30 = vsel %vm246_vm0, %v7079_v2, %v3624_v48  ;;  %v3632_v39 = vsel %vm246_vm0, %v3624_v48, %v3625_v31  ;;  %v3672_v21 = vsel %vm7080_vm3, %v6519_v18, %v3671_v40  ;;  %v3674_v6 = vsel %vm7081_vm4, %v3659_v17, %v3673_v15  ;;  %4667 = vmatprep.subr.bf16.mxu1 %v5002_v0  ;;  %v3741_v37 = vpop.permute.xlu0 %3740  ;;  %v3919_v28 = vld [vmem:[#allocation2 + $0x238] sm:$0xff] }
 0x46b   : > { %vm7082_vm11 = vcmask 236544   ;;  %3682 = vst.msk [vmem:[#allocation2 + $0x2d8] sm:$0xff] %vm6118_vm15, %v3674_v6  ;;  %v3700_v10 = vpop.permute.xlu1 %3699  ;;  %4668 = vmatpush1.bf16.msra.mxu1 %v5001_v8  ;;  %v3747_v57 = vrot.slane %v3741_v37, 4  ;;  %4630 = vmatprep.subr.bf16.mxu0 %v5016_v51  ;;  %v5010_v56 = vcombine.high %v3915_v11, %v3919_v28  ;;  %v7084_v42 = vrot.slane %v6537_v27, 4  ;;  %v3923_v17 = vld [vmem:[#allocation2 + $0x258] sm:$0xff] }
 0x46c   : > { %v3631_v4 = vsel %vm7082_vm11, %v6511_v58, %v3630_v30  ;;  %vm7083_vm8 = vmmov %vm7082_vm11  ;;  %v3706_v18 = vrot.slane %v3700_v10, 4  ;;  %4631 = vmatpush1.bf16.msra.mxu0 %v5015_v50  ;;  %v5009_v24 = vcombine.low %v3915_v11, %v3919_v28  ;;  %v7085_v31 = vrot.slane %v6529_v22, 4 }
 0x46d   : > { %v3633_v29 = vsel %vm7083_vm8, %v3618_v61, %v3632_v39  ;;  %v5023_v5 = vcombine.low %v6748_v35, %v3631_v4  ;;  %v5024_v58 = vcombine.high %v6748_v35, %v3631_v4  ;;  %v3753_v16 = vsel %vm246_vm0, %v7084_v42, %v3747_v57  ;;  %4669 = vmatprep.subr.bf16.mxu1 %v5010_v56 }
 0x46e   : > { %3641 = vst.msk [vmem:[#allocation2 + $0x2b8] sm:$0xff] %vm6118_vm15, %v3633_v29  ;;  %v3755_v54 = vsel %vm246_vm0, %v3747_v57, %v3748_v20  ;;  %v3712_v41 = vsel %vm246_vm0, %v7085_v31, %v3706_v18  ;;  %v3714_v52 = vsel %vm246_vm0, %v3706_v18, %v3707_v19  ;;  %v3754_v36 = vsel %vm1950_vm13, %v6537_v27, %v3753_v16  ;;  %v3823_v45 = vpop.permute.xlu0 %3822  ;;  %v3931_v50 = vld [vmem:[#allocation2 + $0x298] sm:$0xff] }
 0x46f   : > { %v3756_v26 = vsel %vm1950_vm13, %v3741_v37, %v3755_v54  ;;  %vm7086_vm14 = vcmask 220160   ;;  %v3782_v35 = vpop.permute.xlu1 %3781  ;;  %4670 = vmatpush1.bf16.msra.mxu1 %v5009_v24  ;;  %v3829_v32 = vrot.slane %v3823_v45, 4  ;;  %v3927_v60 = vld [vmem:[#allocation2 + $0x278] sm:$0xff]  ;;  %4632 = vmatprep.subr.bf16.mxu0 %v5024_v58 }
 0x470   : > { %v3713_v55 = vsel %vm7086_vm14, %v6529_v22, %v3712_v41  ;;  %vm7087_vm5 = vmmov %vm7086_vm14  ;;  %3764 = vst.msk [vmem:[#allocation2 + $0x318] sm:$0xff] %vm6118_vm15, %v3756_v26  ;;  %v3788_v27 = vrot.slane %v3782_v35, 4  ;;  %v5017_v53 = vcombine.low %v3923_v17, %v3927_v60  ;;  %v5018_v33 = vcombine.high %v3923_v17, %v3927_v60  ;;  %4633 = vmatpush1.bf16.msra.mxu0 %v5023_v5 }
 0x471   : > { %v3715_v63 = vsel %vm7087_vm5, %v3700_v10, %v3714_v52  ;;  %v5031_v47 = vcombine.low %v3672_v21, %v3713_v55  ;;  %v3835_v22 = vsel %vm246_vm0, %v3828_v43, %v3829_v32  ;;  %v5032_v61 = vcombine.high %v3672_v21, %v3713_v55 }
 0x472   : > { %3723 = vst.msk [vmem:[#allocation2 + $0x2f8] sm:$0xff] %vm6118_vm15, %v3715_v63  ;;  %v3794_v34 = vsel %vm246_vm0, %v3787_v25, %v3788_v27  ;;  %v3836_v3 = vsel %vm2101_vm9, %v6563_v9, %v3835_v22  ;;  %4671 = vmatprep.subr.bf16.mxu1 %v5018_v33  ;;  %v3939_v2 = vld [vmem:[#allocation2 + $0x2d8] sm:$0xff] }
 0x473   : > { %v3795_v48 = vsel %vm2026_vm10, %v6547_v1, %v3794_v34  ;;  %v3784_v0 = vpop.permute.xlu1 %3783  ;;  %4672 = vmatpush1.bf16.msra.mxu1 %v5017_v53  ;;  %4634 = vmatprep.subr.bf16.mxu0 %v5032_v61  ;;  %v5048_v30 = vcombine.high %v3836_v3, %v3836_v3  ;;  %v5047_v39 = vcombine.low %v3836_v3, %v3836_v3 }
 0x474   : > { %v3789_v19 = vrot.slane %v3784_v0, 4  ;;  %4635 = vmatpush1.bf16.msra.mxu0 %v5031_v47  ;;  %v5039_v40 = vcombine.low %v3754_v36, %v3795_v48  ;;  %v5040_v15 = vcombine.high %v3754_v36, %v3795_v48 }
 0x475   : > { %v3935_v51 = vld [vmem:[#allocation2 + $0x2b8] sm:$0xff]  ;;  %v4519_v4 = vsel %vm246_vm0, %v5047_v39, 0 }
 0x476   : > { %v5025_v14 = vcombine.low %v3931_v50, %v3935_v51  ;;  %v5026_v43 = vcombine.high %v3931_v50, %v3935_v51  ;;  %v3796_v25 = vsel %vm246_vm0, %v3788_v27, %v3789_v19  ;;  %4636 = vmatprep.subr.bf16.mxu0 %v5040_v15 }
 0x477   : > { %v3797_v9 = vsel %vm2026_vm10, %v3782_v35, %v3796_v25  ;;  %v3825_v8 = vpop.permute.xlu1 %3824  ;;  %v3947_v29 = vld [vmem:[#allocation2 + $0x318] sm:$0xff] }
 0x478   : > { %4673 = vmatprep.subr.bf16.mxu1 %v5026_v43  ;;  %3805 = vst.msk [vmem:[#allocation2 + $0x338] sm:$0xff] %vm6118_vm15, %v3797_v9  ;;  %v3830_v21 = vrot.slane %v3825_v8, 4  ;;  %4637 = vmatpush1.bf16.msra.mxu0 %v5039_v40 }
 0x479   : > { %4674 = vmatpush1.bf16.msra.mxu1 %v5025_v14  ;;  %v3943_v1 = vld [vmem:[#allocation2 + $0x2f8] sm:$0xff]  ;;  %5055 = vmatprep.subr.msk.bf16.mxu0 %vm246_vm0, %v5048_v30 }
 0x47a   : > { %v5033_v6 = vcombine.low %v3939_v2, %v3943_v1  ;;  %v5034_v37 = vcombine.high %v3939_v2, %v3943_v1  ;;  %v3837_v28 = vsel %vm246_vm0, %v3829_v32, %v3830_v21 }
 0x47b   : > { %v3838_v20 = vsel %vm2101_vm9, %v3823_v45, %v3837_v28 }
 0x47c   : > { %4675 = vmatprep.subr.bf16.mxu1 %v5034_v37  ;;  %3846 = vst.msk [vmem:[#allocation2 + $0x358] sm:$0xff] %vm6118_vm15, %v3838_v20  ;;  %4639 = vmatpush1.bf16.msra.mxu0 %v4519_v4 }
 0x47d   : > { %4676 = vmatpush1.bf16.msra.mxu1 %v5033_v6 }
 0x47f   : > { %v3951_v10 = vld [vmem:[#allocation2 + $0x338] sm:$0xff]  ;;  %4645 = vmatmul.mubr.bf16.vlgmr.msra.gmra.mrb[12].mxu0 %v6572_v49 }
 0x480   : > { %v5041_v57 = vcombine.low %v3947_v29, %v3951_v10  ;;  %v5042_v11 = vcombine.high %v3947_v29, %v3951_v10 }
 0x482   : > { %4677 = vmatprep.subr.bf16.mxu1 %v5042_v11 }
 0x483   : > { %4678 = vmatpush1.bf16.msra.mxu1 %v5041_v57  ;;  %v3955_v18 = vld [vmem:[#allocation2 + $0x358] sm:$0xff] }
 0x484   : > { %v5050_v56 = vcombine.high %v3955_v18, %v3955_v18  ;;  %v5049_v5 = vcombine.low %v3955_v18, %v3955_v18 }
 0x486   : > { %5057 = vmatprep.subr.msk.bf16.mxu1 %vm246_vm0, %v5050_v56  ;;  %v4525_v58 = vsel %vm246_vm0, %v5049_v5, 0 }
 0x487   : > { %4680 = vmatpush1.bf16.msra.mxu1 %v4525_v58 }
 0x48a   : > { %4686 = vmatmul.mubr.bf16.vlgmr.msra.gmra.mrb[12].mxu1 %v6572_v49 }
 0x505   : > { %v6825_v7 = vpop.f32.mrb[8].mxu0 }
 0x506   : > { %v4694_v42 = vmul.f32 %v6825_v7, %v6030_v12  ;;  %v6829_v16 = vpop.f32.mrb[9].mxu0 }
 0x507   : > { %v4695_v54 = vmul.f32 %v6829_v16, %v6032_v23  ;;  %v4568_v24 = vpop.f32.mrb[10].mxu0 }
 0x508   : > { %v4712_v31 = vmul.f32 %v4694_v42, %v4694_v42  ;;  %v4569_v41 = vpop.f32.mrb[11].mxu0 }
 0x509   : > { %v4702_v52 = vadd.f32 %v4695_v54, %v4694_v42  ;;  %v4713_v36 = vmul.f32 %v4695_v54, %v4695_v54  ;;  %v4605_v26 = vpop.f32.mrb[8].mxu1 }
 0x50a   : > { %v4696_v45 = vmul.f32 %v4605_v26, %v6044_v59  ;;  %v4607_v55 = vpop.f32.mrb[9].mxu1 }
 0x50b   : > { %v4720_v49 = vadd.f32 %v4713_v36, %v4712_v31  ;;  %v4697_v63 = vmul.f32 %v4607_v55, %v6046_v44  ;;  %v4609_v35 = vpop.f32.mrb[10].mxu1 }
 0x50c   : > { %v4703_v32 = vadd.f32 %v4702_v52, %v4696_v45  ;;  %v4714_v17 = vmul.f32 %v4696_v45, %v4696_v45  ;;  %v4610_v60 = vpop.f32.mrb[11].mxu1 }
 0x50d   : > { %v4715_v27 = vmul.f32 %v4697_v63, %v4697_v63 }
 0x50e   : > { %v4721_v53 = vadd.f32 %v4720_v49, %v4714_v17  ;;  %v4704_v33 = vadd.f32 %v4703_v32, %v4697_v63 }
 0x510   : > { %v4722_v47 = vadd.f32 %v4721_v53, %v4715_v27 }
 0x552   : > { %v4646_v22 = vpop.f32.mrb[12].mxu0 }
 0x553   : > { %v4698_v61 = vmul.f32 %v4646_v22, %v6058_v46  ;;  %v4648_v34 = vpop.f32.mrb[13].mxu0 }
 0x554   : > { %v4699_v3 = vmul.f32 %v4648_v34, %v6060_v38  ;;  %v4650_v48 = vpop.f32.mrb[14].mxu0 }
 0x555   : > { %v4705_v0 = vadd.f32 %v4704_v33, %v4698_v61  ;;  %v4716_v50 = vmul.f32 %v4698_v61, %v4698_v61  ;;  %v4651_v51 = vpop.f32.mrb[15].mxu0 }
 0x556   : > { %v4717_v19 = vmul.f32 %v4699_v3, %v4699_v3 }
 0x557   : > { %v4723_v14 = vadd.f32 %v4722_v47, %v4716_v50  ;;  %v4706_v43 = vadd.f32 %v4705_v0, %v4699_v3 }
 0x559   : > { %v4724_v40 = vadd.f32 %v4723_v14, %v4717_v19 }
 0x55d   : > { %v4687_v15 = vpop.f32.mrb[12].mxu1 }
 0x55e   : > { %v4700_v25 = vmul.f32 %v4687_v15, %v6069_v13  ;;  %v4689_v9 = vpop.f32.mrb[13].mxu1 }
 0x55f   : > { %v4701_v8 = vmul.f32 %v4689_v9, %v6071_v62  ;;  %v4691_v2 = vpop.f32.mrb[14].mxu1 }
 0x560   : > { %v4707_v1 = vadd.f32 %v4706_v43, %v4700_v25  ;;  %v4718_v30 = vmul.f32 %v4700_v25, %v4700_v25  ;;  %v4692_v39 = vpop.f32.mrb[15].mxu1 }
 0x561   : > { %v4708_v21 = vsel %vm2694_vm12, %v4701_v8, 0.0  ;;  %v4719_v6 = vmul.f32 %v4701_v8, %v4701_v8 }
 0x562   : > { %v4725_v37 = vadd.f32 %v4724_v40, %v4718_v30  ;;  %v4709_v28 = vadd.f32 %v4708_v21, %v4707_v1 }
 0x563   : > { %v4726_v20 = vsel %vm2694_vm12, %v4719_v6, 0.0 }
 0x564   : > { %4710 = vadd.xlane.f32.xlu0 %v4709_v28  ;;  %v4727_v4 = vadd.f32 %v4726_v20, %v4725_v37 }
 0x566   : > { %4728 = vadd.xlane.f32.xlu1 %v4727_v4 }
 0x5f1   : > { %v4711_v29 = vpop.xlane.xlu0 %4710 }
 0x5f2   : > { %v4730_v10 = vmul.f32 0.001953125, %v4711_v29 }
 0x5f3   : > { %v4729_v57 = vpop.xlane.xlu1 %4728 }
 0x5f4   : > { %v4731_v11 = vmul.f32 0.001953125, %v4729_v57  ;;  %v4732_v18 = vmul.f32 %v4730_v10, %v4730_v10  ;;  %v4735_v42 = vsub.f32 %v6825_v7, %v4730_v10  ;;  %v4736_v54 = vsub.f32 %v6829_v16, %v4730_v10 }
 0x5f5   : > { %v4737_v24 = vsub.f32 %v4605_v26, %v4730_v10  ;;  %v4738_v31 = vsub.f32 %v4607_v55, %v4730_v10  ;;  %v4739_v52 = vsub.f32 %v4646_v22, %v4730_v10  ;;  %v4740_v36 = vsub.f32 %v4648_v34, %v4730_v10 }
 0x5f6   : > { %v4733_v56 = vsub.f32 %v4731_v11, %v4732_v18  ;;  %v4741_v45 = vsub.f32 %v4687_v15, %v4730_v10  ;;  %v4742_v49 = vsub.f32 %v4689_v9, %v4730_v10 }
 0x5f8   : > { %v4734_v5 = vmax.f32 %v4733_v56, 0.0 }
 0x5fa   : > { %v4743_v58 = vadd.f32 1e-05, %v4734_v5 }
 0x5fc   : > { %5126 = vrsqrt.f32 %v4743_v58 }
 0x606   : > { %v5127_v41 = vpop.eup %5126 }
 0x607   : > { %v4745_v63 = vmul.f32 %v5127_v41, %v4735_v42  ;;  %v4746_v35 = vmul.f32 %v5127_v41, %v4736_v54  ;;  %v4747_v32 = vmul.f32 %v5127_v41, %v4737_v24  ;;  %v4748_v17 = vmul.f32 %v5127_v41, %v4738_v31 }
 0x608   : > { %v4749_v60 = vmul.f32 %v5127_v41, %v4739_v52  ;;  %v4750_v27 = vmul.f32 %v5127_v41, %v4740_v36  ;;  %v4751_v53 = vmul.f32 %v5127_v41, %v4741_v45  ;;  %v4752_v33 = vmul.f32 %v5127_v41, %v4742_v49 }
 0x609   : > { %vm4753_vm0 = vcmp.ge.f32.partialorder %v4745_v63, 0.0  ;;  %vm4754_vm13 = vcmp.ge.f32.partialorder %v4746_v35, 0.0  ;;  %vm4755_vm9 = vcmp.ge.f32.partialorder %v4747_v32, 0.0  ;;  %vm4756_vm10 = vcmp.ge.f32.partialorder %v4748_v17, 0.0 }
 0x60a   : > { %vm4757_vm15 = vcmp.ge.f32.partialorder %v4749_v60, 0.0  ;;  %vm4758_vm7 = vcmp.ge.f32.partialorder %v4750_v27, 0.0  ;;  %vm4759_vm6 = vcmp.ge.f32.partialorder %v4751_v53, 0.0  ;;  %vm4760_vm1 = vcmp.ge.f32.partialorder %v4752_v33, 0.0 }
 0x60b   : > { %v4761_v7 = vmul.f32 0.01, %v4745_v63  ;;  %v4762_v16 = vmul.f32 0.01, %v4746_v35  ;;  %v4763_v26 = vmul.f32 0.01, %v4747_v32 }
 0x60c   : > { %v4764_v55 = vmul.f32 0.01, %v4748_v17  ;;  %v4765_v47 = vmul.f32 0.01, %v4749_v60  ;;  %v4766_v22 = vmul.f32 0.01, %v4750_v27 }
 0x60d   : > { %v4767_v61 = vmul.f32 0.01, %v4751_v53  ;;  %v4768_v34 = vmul.f32 0.01, %v4752_v33  ;;  %v4769_v3 = vsel %vm4753_vm0, %v4745_v63, %v4761_v7  ;;  %v4770_v48 = vsel %vm4754_vm13, %v4746_v35, %v4762_v16 }
 0x60e   : > { %v4771_v0 = vsel %vm4755_vm9, %v4747_v32, %v4763_v26  ;;  %v4772_v50 = vsel %vm4756_vm10, %v4748_v17, %v4764_v55  ;;  %v4773_v51 = vsel %vm4757_vm15, %v4749_v60, %v4765_v47  ;;  %v4774_v19 = vsel %vm4758_vm7, %v4750_v27, %v4766_v22 }
 0x60f   : > { %v4775_v14 = vsel %vm4759_vm6, %v4751_v53, %v4767_v61  ;;  %v4776_v43 = vsel %vm4760_vm1, %v4752_v33, %v4768_v34  ;;  %v4777_v40 = vmul.f32 %v4769_v3, %v6030_v12  ;;  %v4778_v15 = vmul.f32 %v4770_v48, %v6032_v23 }
 0x610   : > { %v4779_v25 = vmul.f32 %v4771_v0, %v6044_v59  ;;  %v4780_v9 = vmul.f32 %v4772_v50, %v6046_v44  ;;  %v4781_v8 = vmul.f32 %v4773_v51, %v6058_v46  ;;  %v4782_v2 = vmul.f32 %v4774_v19, %v6060_v38 }
 0x611   : > { %v4783_v1 = vmul.f32 %v4775_v14, %v6069_v13  ;;  %v4784_v30 = vmul.f32 %v4776_v43, %v6071_v62  ;;  %4785 = vst [vmem:[%s197_s16] sm:$0xff] %v4777_v40  ;;  %4786 = vst [vmem:[%s197_s16 + $0x8] sm:$0xff] %v4778_v15 }
 0x612   : > { %4787 = vst [vmem:[%s197_s16 + $0x10] sm:$0xff] %v4779_v25  ;;  %4788 = vst [vmem:[%s197_s16 + $0x18] sm:$0xff] %v4780_v9 }
 0x613   : > { %4789 = vst [vmem:[%s197_s16 + $0x20] sm:$0xff] %v4781_v8  ;;  %4790 = vst [vmem:[%s197_s16 + $0x28] sm:$0xff] %v4782_v2 }
 0x614   : > { %4791 = vst [vmem:[%s197_s16 + $0x30] sm:$0xff] %v4783_v1  ;;  %4792 = vst.msk [vmem:[%s197_s16 + $0x38] sm:$0xff] %vm2694_vm12, %v4784_v30 }
 0x615 PF: > { %s14_s15 = sadd.s32 1, %s5134_s15  }
 0x616   : > { %p11_p4 = scmp.ge.s32.totalorder %s14_s15, 4  }
 0x618   :  { %13 = sbr.rel (!%p11_p4) target bundleno = 1 (0x1), region = 66 }

</bundles_post_ra>
